<compile_context>
chip_gen: v6e
topology: v6e:2x2x1
jax: 0.10.0
libtpu: 0.0.40
codegen_flags: <defaults>
</compile_context>

<pallas_src>
import functools

import jax
import jax.numpy as jnp
from jax.experimental import pallas as pl
from jax.experimental.pallas import tpu as pltpu


def _cdiv(a, b):
    return (a + b - 1) // b


def _round_up(x, m):
    return ((x + m - 1) // m) * m


# ----------------------------------------------------------------------------
# Pallas kernel: fused (bf16 matmul on MXU) + bias + optional ELU
# ----------------------------------------------------------------------------
def _mm_bias_act_kernel(x_ref, w_ref, b_ref, o_ref, *, activation):
    acc = jnp.dot(x_ref[...], w_ref[...], preferred_element_type=jnp.float32)
    acc = acc + b_ref[...]
    if activation == "elu":
        # ELU(alpha=1): x if x > 0 else exp(x) - 1  (guard exp against overflow)
        acc = jnp.where(acc > 0.0, acc, jnp.exp(jnp.minimum(acc, 0.0)) - 1.0)
    o_ref[...] = acc.astype(o_ref.dtype)


def _pick_tm(m):
    # >= 2 grid steps per layer (v7x shards the "parallel" axis over 2 TCs)
    # while amortizing the ~0.35us/step overhead with tiles up to 512 rows.
    tm = _round_up(max(_cdiv(m, 2), 16), 16)
    return min(512, tm)


def matmul_bias_act(x, w, b, activation, out_dtype=jnp.bfloat16):
    """x: (M, K) bf16, w: (K, N) bf16, b: (1, N) f32 -> (M, N) out_dtype."""
    m, k = x.shape
    _, n = w.shape
    tm = _pick_tm(m)
    mp = _round_up(m, tm)
    if mp != m:                      # bounded pad: fewer than TM junk rows
        x = jnp.pad(x, ((0, mp - m), (0, 0)))

    out = pl.pallas_call(
        functools.partial(_mm_bias_act_kernel, activation=activation),
        out_shape=jax.ShapeDtypeStruct((mp, n), out_dtype),
        grid_spec=pl.GridSpec(
            grid=(mp // tm,),
            in_specs=[
                pl.BlockSpec((tm, k), lambda i: (i, 0)),
                pl.BlockSpec((k, n), lambda i: (0, 0)),
                pl.BlockSpec((1, n), lambda i: (0, 0)),
            ],
            out_specs=pl.BlockSpec((tm, n), lambda i: (i, 0)),
        ),
        compiler_params=pltpu.CompilerParams(
            dimension_semantics=("parallel",),
            # Explicit VMEM budget: worst-case double-buffered tiles here are
            # ~4 MiB; 32 MiB is safe on v5e/v6e (128 MiB) and v7x (64 MiB).
            vmem_limit_bytes=32 * 1024 * 1024,
        ),
    )(x, w, b)
    return out[:m] if mp != m else out


# ----------------------------------------------------------------------------
# Convolution wrappers (XLA glue: padding, tap extraction, phase interleave)
# ----------------------------------------------------------------------------
def _im2col(x, kh, kw, stride, padding, dilation):
    """x: (N,H,W,C) -> patches (N*Ho*Wo, kh*kw*C); column order (kh, kw, c)."""
    n, h, w, c = x.shape
    sh, sw = stride
    ph, pw = padding
    dh, dw = dilation
    ho = (h + 2 * ph - dh * (kh - 1) - 1) // sh + 1
    wo = (w + 2 * pw - dw * (kw - 1) - 1) // sw + 1
    xp = jnp.pad(x, ((0, 0), (ph, ph), (pw, pw), (0, 0))) if (ph or pw) else x
    cols = []
    for a in range(kh):
        for bb in range(kw):
            h0 = a * dh
            w0 = bb * dw
            cols.append(xp[:, h0:h0 + (ho - 1) * sh + 1:sh,
                              w0:w0 + (wo - 1) * sw + 1:sw, :])
    patches = jnp.concatenate(cols, axis=-1).reshape(n * ho * wo, kh * kw * c)
    return patches, ho, wo


def conv2d_packed(x, wm, b, cfg, activation="elu",
                  out_dtype=jnp.bfloat16, cout=None):
    """Conv2d with pre-packed weights. x: (N,H,W,Cin) bf16, wm: (K, Np) bf16."""
    kh, kw, stride, pad, dil = cfg
    n = x.shape[0]
    patches, ho, wo = _im2col(x, kh, kw, stride, pad, dil)
    nout = wm.shape[1]
    y = matmul_bias_act(patches, wm, b, activation, out_dtype)
    y = y.reshape(n, ho, wo, nout)
    if cout is not None and cout != nout:
        y = y[..., :cout]            # drop lane padding (final conv)
    return y


def deconv2d_packed(x, wm, b):
    """ConvTranspose2d(ks=4, stride=2, padding=1) + ELU via the exact 4-phase
    decomposition: a single fused 2x2 VALID conv over the 1-padded input whose
    4*Cout output channels are the 4 output parities, interleaved afterwards."""
    n, h, w, _ = x.shape
    cout = wm.shape[1] // 4
    xp = jnp.pad(x, ((0, 0), (1, 1), (1, 1), (0, 0)))
    patches, ho, wo = _im2col(xp, 2, 2, (1, 1), (0, 0), (1, 1))  # ho=h+1, wo=w+1
    y = matmul_bias_act(patches, wm, b, "elu")
    y = y.reshape(n, ho, wo, 4 * cout)
    p00 = y[:, :h, :w, 0 * cout:1 * cout]
    p01 = y[:, :h, 1:, 1 * cout:2 * cout]
    p10 = y[:, 1:, :w, 2 * cout:3 * cout]
    p11 = y[:, 1:, 1:, 3 * cout:4 * cout]
    row_e = jnp.stack([p00, p01], axis=3).reshape(n, h, 2 * w, cout)
    row_o = jnp.stack([p10, p11], axis=3).reshape(n, h, 2 * w, cout)
    return jnp.stack([row_e, row_o], axis=2).reshape(n, 2 * h, 2 * w, cout)


# ----------------------------------------------------------------------------
# Weight pre-packing (done once, outside the forward pass)
# ----------------------------------------------------------------------------
def pack_conv(w, b, n_pad_to=None):
    """PyTorch Conv2d weight (Cout,Cin,KH,KW) -> ((KH*KW*Cin, Np) bf16, (1,Np) f32)."""
    cout, cin, kh, kw = w.shape
    wm = jnp.transpose(w, (2, 3, 1, 0)).reshape(kh * kw * cin, cout)
    npad = (n_pad_to or cout) - cout
    if npad > 0:
        wm = jnp.pad(wm, ((0, 0), (0, npad)))
        b = jnp.pad(b, ((0, npad),))
    return wm.astype(jnp.bfloat16), b.reshape(1, -1).astype(jnp.float32)


# _PHASE_TAPS[parity][a] = ConvTranspose kernel index used at row/col offset a
_PHASE_TAPS = ((3, 1), (2, 0))


def pack_deconv(w, b):
    """PyTorch ConvTranspose2d weight (Cin,Cout,4,4) -> packed weights of the
    equivalent fused 2x2 phase conv: ((2*2*Cin, 4*Cout) bf16, (1, 4*Cout) f32)."""
    cin, cout, kh, kw = w.shape
    assert kh == 4 and kw == 4
    blocks = []
    for ry in range(2):
        for rx in range(2):
            rows = []
            for a in range(2):
                taps = [w[:, :, _PHASE_TAPS[ry][a], _PHASE_TAPS[rx][bb]]
                        for bb in range(2)]                   # each (Cin, Cout)
                rows.append(jnp.stack(taps, axis=0))          # (2, Cin, Cout)
            blocks.append(jnp.stack(rows, axis=0))            # (2, 2, Cin, Cout)
    wc = jnp.concatenate(blocks, axis=-1)                     # (2, 2, Cin, 4*Cout)
    wm = wc.reshape(4 * cin, 4 * cout)
    bc = jnp.concatenate([b] * 4, axis=0)
    return wm.astype(jnp.bfloat16), bc.reshape(1, -1).astype(jnp.float32)


# ----------------------------------------------------------------------------
# LidCamNet parameters (deterministic, synthetic) + packing
# ----------------------------------------------------------------------------
def init_lidcamnet_params(key, input_channels=32, num_classes=1):
    c = input_channels
    keys = iter(jax.random.split(key, 64))

    def conv_p(cout, cin, kh, kw):
        # He / kaiming_normal, mode='fan_out', nonlinearity='relu'; bias = 0
        std = (2.0 / (cout * kh * kw)) ** 0.5
        w = std * jax.random.normal(next(keys), (cout, cin, kh, kw), jnp.float32)
        return w, jnp.zeros((cout,), jnp.float32)

    def deconv_p(cin, cout, kh, kw):
        # ConvTranspose2d keeps PyTorch default-ish init (not touched by He loop)
        bound = 1.0 / ((cout * kh * kw) ** 0.5)
        w = jax.random.uniform(next(keys), (cin, cout, kh, kw), jnp.float32,
                               -bound, bound)
        return w, jnp.zeros((cout,), jnp.float32)

    return {
        "enc": [conv_p(c, 3, 4, 4), conv_p(c, c, 3, 3), conv_p(2 * c, c, 4, 4),
                conv_p(2 * c, 2 * c, 3, 3), conv_p(4 * c, 2 * c, 4, 4)],
        "center": [conv_p(4 * c, 4 * c, 3, 3) for _ in range(8)]
                  + [conv_p(4 * c, 4 * c, 1, 1)],
        "dec": {
            "deconv0": deconv_p(4 * c, 2 * c, 4, 4),
            "conv0": conv_p(2 * c, 2 * c, 3, 3),
            "deconv1": deconv_p(2 * c, c, 4, 4),
            "conv1": conv_p(c, c, 3, 3),
            "deconv2": deconv_p(c, 8, 4, 4),
            "final": conv_p(num_classes, 8, 3, 3),
        },
    }


def pack_lidcamnet_params(raw):
    return {
        "enc": [pack_conv(w, b) for (w, b) in raw["enc"]],
        "center": [pack_conv(w, b) for (w, b) in raw["center"]],
        "dec": {
            "deconv0": pack_deconv(*raw["dec"]["deconv0"]),
            "conv0": pack_conv(*raw["dec"]["conv0"]),
            "deconv1": pack_deconv(*raw["dec"]["deconv1"]),
            "conv1": pack_conv(*raw["dec"]["conv1"]),
            "deconv2": pack_deconv(*raw["dec"]["deconv2"]),
            # lane-dense stores for the 1-channel head: pad Cout to 128,
            # sliced back to num_classes in XLA.
            "final": pack_conv(*raw["dec"]["final"], n_pad_to=128),
        },
    }


# static layer configs: (KH, KW, stride, padding, dilation)
_CONV3 = (3, 3, (1, 1), (1, 1), (1, 1))
_ENC_CFG = [
    (4, 4, (2, 2), (1, 1), (1, 1)),
    _CONV3,
    (4, 4, (2, 2), (1, 1), (1, 1)),
    _CONV3,
    (4, 4, (2, 2), (1, 1), (1, 1)),
]
_CENTER_CFG = [
    _CONV3,
    _CONV3,
    (3, 3, (1, 1), (1, 2), (1, 2)),
    (3, 3, (1, 1), (2, 4), (2, 4)),
    (3, 3, (1, 1), (4, 8), (4, 8)),
    (3, 3, (1, 1), (8, 16), (8, 16)),
    (3, 3, (1, 1), (16, 32), (16, 32)),
    _CONV3,
    (1, 1, (1, 1), (0, 0), (1, 1)),
]


def lidcamnet_forward(params, x_nchw, *, num_classes=1):
    x = jnp.transpose(x_nchw, (0, 2, 3, 1)).astype(jnp.bfloat16)  # NCHW -> NHWC

    # encoder
    for cfg, (wm, b) in zip(_ENC_CFG, params["enc"]):
        x = conv2d_packed(x, wm, b, cfg, activation="elu")

    # center (Dropout2d = identity at inference)
    for cfg, (wm, b) in zip(_CENTER_CFG, params["center"]):
        x = conv2d_packed(x, wm, b, cfg, activation="elu")

    # decoder
    d = params["dec"]
    x = deconv2d_packed(x, *d["deconv0"])
    x = conv2d_packed(x, *d["conv0"], _CONV3, activation="elu")
    x = deconv2d_packed(x, *d["deconv1"])
    x = conv2d_packed(x, *d["conv1"], _CONV3, activation="elu")
    x = deconv2d_packed(x, *d["deconv2"])
    x = conv2d_packed(x, *d["final"], _CONV3, activation="none",
                      out_dtype=jnp.float32, cout=num_classes)

    return jnp.transpose(x, (0, 3, 1, 2))  # NHWC -> NCHW


if __name__ == "__main__":
    key = jax.random.PRNGKey(0)
    k_params, k_x = jax.random.split(key)

    raw = init_lidcamnet_params(k_params, input_channels=32, num_classes=1)
    params = pack_lidcamnet_params(raw)
    # small spatial consistent with 3 stride-2 encoder stages (16 -> 2 -> 16)
    x = jax.random.normal(k_x, (2, 3, 16, 16), jnp.float32)

    fwd = jax.jit(functools.partial(lidcamnet_forward, num_classes=1))
    out = jax.block_until_ready(fwd(params, x))

    assert out.shape == (2, 1, 16, 16), out.shape
    assert jnp.all(jnp.isfinite(out))
    print("KERNEL_OK")
</pallas_src>

<mosaic_0001>
module attributes {stable_mosaic.version = 11 : i64} {
  func.func @_mm_bias_act_kernel(%arg0: i32, %arg1: memref<64x48xbf16, #tpu.memory_space<vmem>>, %arg2: memref<48x32xbf16, #tpu.memory_space<vmem>>, %arg3: memref<1x32xf32, #tpu.memory_space<vmem>>, %arg4: memref<64x32xbf16, #tpu.memory_space<vmem>>) attributes {dimension_semantics = [#tpu.dimension_semantics<parallel>], iteration_bounds = array<i64: 2>, scalar_prefetch = 0 : i64, scratch_operands = 0 : i64, tpu.core_type = #tpu.core_type<tc>, window_params = [{transform_indices = @transform_0, window_bounds = array<i64: 64, 48>}, {pipeline_mode = #tpu.pipeline_mode<synchronous>, transform_indices = @transform_1, window_bounds = array<i64: 48, 32>}, {pipeline_mode = #tpu.pipeline_mode<synchronous>, transform_indices = @transform_2, window_bounds = array<i64: 1, 32>}, {transform_indices = @transform_3, window_bounds = array<i64: 64, 32>}]} {
    %c0 = arith.constant 0 : index
    %c0_0 = arith.constant 0 : index
    %0 = vector.load %arg1[%c0, %c0_0] : memref<64x48xbf16, #tpu.memory_space<vmem>>, vector<64x48xbf16>
    %c0_1 = arith.constant 0 : index
    %c0_2 = arith.constant 0 : index
    %1 = vector.load %arg2[%c0_1, %c0_2] : memref<48x32xbf16, #tpu.memory_space<vmem>>, vector<48x32xbf16>
    %cst = arith.constant dense<0.000000e+00> : vector<64x32xf32>
    %2 = tpu.matmul %0, %1, %cst {dimension_numbers = #tpu.dot_dimension_numbers<[1], [0], [0], [1], [0, 0, 1, 1], [], []>} : vector<64x48xbf16>, vector<48x32xbf16>, vector<64x32xf32> -> vector<64x32xf32>
    %c0_3 = arith.constant 0 : index
    %c0_4 = arith.constant 0 : index
    %3 = vector.load %arg3[%c0_3, %c0_4] : memref<1x32xf32, #tpu.memory_space<vmem>>, vector<1x32xf32>
    %4 = vector.broadcast %3 : vector<1x32xf32> to vector<64x32xf32>
    %5 = arith.addf %2, %4 : vector<64x32xf32>
    %cst_5 = arith.constant 0.000000e+00 : f32
    %6 = vector.broadcast %cst_5 : f32 to vector<64x32xf32>
    %7 = arith.cmpf ogt, %5, %6 : vector<64x32xf32>
    %cst_6 = arith.constant 0.000000e+00 : f32
    %8 = vector.broadcast %cst_6 : f32 to vector<64x32xf32>
    %9 = arith.minimumf %5, %8 : vector<64x32xf32>
    %10 = math.exp %9 : vector<64x32xf32>
    %cst_7 = arith.constant 1.000000e+00 : f32
    %11 = vector.broadcast %cst_7 : f32 to vector<64x32xf32>
    %12 = arith.subf %10, %11 : vector<64x32xf32>
    %13 = arith.select %7, %5, %12 : vector<64x32xi1>, vector<64x32xf32>
    %14 = arith.truncf %13 : vector<64x32xf32> to vector<64x32xbf16>
    %c0_8 = arith.constant 0 : index
    %c0_9 = arith.constant 0 : index
    %15 = vector.load %arg4[%c0_8, %c0_9] : memref<64x32xbf16, #tpu.memory_space<vmem>>, vector<64x32xbf16>
    tpu.vector_store %arg4[%c0_8, %c0_9], %14 {strides = array<i32>} : memref<64x32xbf16, #tpu.memory_space<vmem>>, vector<64x32xbf16>,
    return
  }
  func.func @transform_0(%arg0: i32) -> (i32, i32) {
    %c0_i32 = arith.constant 0 : i32
    %c0_i32_0 = arith.constant 0 : i32
    return %arg0, %c0_i32 : i32, i32
  }
  func.func @transform_1(%arg0: i32) -> (i32, i32) {
    %c0_i32 = arith.constant 0 : i32
    %c0_i32_0 = arith.constant 0 : i32
    %c0_i32_1 = arith.constant 0 : i32
    return %c0_i32, %c0_i32_0 : i32, i32
  }
  func.func @transform_2(%arg0: i32) -> (i32, i32) {
    %c0_i32 = arith.constant 0 : i32
    %c0_i32_0 = arith.constant 0 : i32
    %c0_i32_1 = arith.constant 0 : i32
    return %c0_i32, %c0_i32_0 : i32, i32
  }
  func.func @transform_3(%arg0: i32) -> (i32, i32) {
    %c0_i32 = arith.constant 0 : i32
    %c0_i32_0 = arith.constant 0 : i32
    return %arg0, %c0_i32 : i32, i32
  }
}

module attributes {stable_mosaic.version = 11 : i64} {
  func.func @_mm_bias_act_kernel(%arg0: i32, %arg1: memref<64x288xbf16, #tpu.memory_space<vmem>>, %arg2: memref<288x32xbf16, #tpu.memory_space<vmem>>, %arg3: memref<1x32xf32, #tpu.memory_space<vmem>>, %arg4: memref<64x32xbf16, #tpu.memory_space<vmem>>) attributes {dimension_semantics = [#tpu.dimension_semantics<parallel>], iteration_bounds = array<i64: 2>, scalar_prefetch = 0 : i64, scratch_operands = 0 : i64, tpu.core_type = #tpu.core_type<tc>, window_params = [{transform_indices = @transform_0, window_bounds = array<i64: 64, 288>}, {pipeline_mode = #tpu.pipeline_mode<synchronous>, transform_indices = @transform_1, window_bounds = array<i64: 288, 32>}, {pipeline_mode = #tpu.pipeline_mode<synchronous>, transform_indices = @transform_2, window_bounds = array<i64: 1, 32>}, {transform_indices = @transform_3, window_bounds = array<i64: 64, 32>}]} {
    %c0 = arith.constant 0 : index
    %c0_0 = arith.constant 0 : index
    %0 = vector.load %arg1[%c0, %c0_0] : memref<64x288xbf16, #tpu.memory_space<vmem>>, vector<64x288xbf16>
    %c0_1 = arith.constant 0 : index
    %c0_2 = arith.constant 0 : index
    %1 = vector.load %arg2[%c0_1, %c0_2] : memref<288x32xbf16, #tpu.memory_space<vmem>>, vector<288x32xbf16>
    %cst = arith.constant dense<0.000000e+00> : vector<64x32xf32>
    %2 = tpu.matmul %0, %1, %cst {dimension_numbers = #tpu.dot_dimension_numbers<[1], [0], [0], [1], [0, 0, 1, 1], [], []>} : vector<64x288xbf16>, vector<288x32xbf16>, vector<64x32xf32> -> vector<64x32xf32>
    %c0_3 = arith.constant 0 : index
    %c0_4 = arith.constant 0 : index
    %3 = vector.load %arg3[%c0_3, %c0_4] : memref<1x32xf32, #tpu.memory_space<vmem>>, vector<1x32xf32>
    %4 = vector.broadcast %3 : vector<1x32xf32> to vector<64x32xf32>
    %5 = arith.addf %2, %4 : vector<64x32xf32>
    %cst_5 = arith.constant 0.000000e+00 : f32
    %6 = vector.broadcast %cst_5 : f32 to vector<64x32xf32>
    %7 = arith.cmpf ogt, %5, %6 : vector<64x32xf32>
    %cst_6 = arith.constant 0.000000e+00 : f32
    %8 = vector.broadcast %cst_6 : f32 to vector<64x32xf32>
    %9 = arith.minimumf %5, %8 : vector<64x32xf32>
    %10 = math.exp %9 : vector<64x32xf32>
    %cst_7 = arith.constant 1.000000e+00 : f32
    %11 = vector.broadcast %cst_7 : f32 to vector<64x32xf32>
    %12 = arith.subf %10, %11 : vector<64x32xf32>
    %13 = arith.select %7, %5, %12 : vector<64x32xi1>, vector<64x32xf32>
    %14 = arith.truncf %13 : vector<64x32xf32> to vector<64x32xbf16>
    %c0_8 = arith.constant 0 : index
    %c0_9 = arith.constant 0 : index
    %15 = vector.load %arg4[%c0_8, %c0_9] : memref<64x32xbf16, #tpu.memory_space<vmem>>, vector<64x32xbf16>
    tpu.vector_store %arg4[%c0_8, %c0_9], %14 {strides = array<i32>} : memref<64x32xbf16, #tpu.memory_space<vmem>>, vector<64x32xbf16>,
    return
  }
  func.func @transform_0(%arg0: i32) -> (i32, i32) {
    %c0_i32 = arith.constant 0 : i32
    %c0_i32_0 = arith.constant 0 : i32
    return %arg0, %c0_i32 : i32, i32
  }
  func.func @transform_1(%arg0: i32) -> (i32, i32) {
    %c0_i32 = arith.constant 0 : i32
    %c0_i32_0 = arith.constant 0 : i32
    %c0_i32_1 = arith.constant 0 : i32
    return %c0_i32, %c0_i32_0 : i32, i32
  }
  func.func @transform_2(%arg0: i32) -> (i32, i32) {
    %c0_i32 = arith.constant 0 : i32
    %c0_i32_0 = arith.constant 0 : i32
    %c0_i32_1 = arith.constant 0 : i32
    return %c0_i32, %c0_i32_0 : i32, i32
  }
  func.func @transform_3(%arg0: i32) -> (i32, i32) {
    %c0_i32 = arith.constant 0 : i32
    %c0_i32_0 = arith.constant 0 : i32
    return %arg0, %c0_i32 : i32, i32
  }
}

module attributes {stable_mosaic.version = 11 : i64} {
  func.func @_mm_bias_act_kernel(%arg0: i32, %arg1: memref<16x512xbf16, #tpu.memory_space<vmem>>, %arg2: memref<512x64xbf16, #tpu.memory_space<vmem>>, %arg3: memref<1x64xf32, #tpu.memory_space<vmem>>, %arg4: memref<16x64xbf16, #tpu.memory_space<vmem>>) attributes {dimension_semantics = [#tpu.dimension_semantics<parallel>], iteration_bounds = array<i64: 2>, scalar_prefetch = 0 : i64, scratch_operands = 0 : i64, tpu.core_type = #tpu.core_type<tc>, window_params = [{transform_indices = @transform_0, window_bounds = array<i64: 16, 512>}, {pipeline_mode = #tpu.pipeline_mode<synchronous>, transform_indices = @transform_1, window_bounds = array<i64: 512, 64>}, {pipeline_mode = #tpu.pipeline_mode<synchronous>, transform_indices = @transform_2, window_bounds = array<i64: 1, 64>}, {transform_indices = @transform_3, window_bounds = array<i64: 16, 64>}]} {
    %c0 = arith.constant 0 : index
    %c0_0 = arith.constant 0 : index
    %0 = vector.load %arg1[%c0, %c0_0] : memref<16x512xbf16, #tpu.memory_space<vmem>>, vector<16x512xbf16>
    %c0_1 = arith.constant 0 : index
    %c0_2 = arith.constant 0 : index
    %1 = vector.load %arg2[%c0_1, %c0_2] : memref<512x64xbf16, #tpu.memory_space<vmem>>, vector<512x64xbf16>
    %cst = arith.constant dense<0.000000e+00> : vector<16x64xf32>
    %2 = tpu.matmul %0, %1, %cst {dimension_numbers = #tpu.dot_dimension_numbers<[1], [0], [0], [1], [0, 0, 1, 1], [], []>} : vector<16x512xbf16>, vector<512x64xbf16>, vector<16x64xf32> -> vector<16x64xf32>
    %c0_3 = arith.constant 0 : index
    %c0_4 = arith.constant 0 : index
    %3 = vector.load %arg3[%c0_3, %c0_4] : memref<1x64xf32, #tpu.memory_space<vmem>>, vector<1x64xf32>
    %4 = vector.broadcast %3 : vector<1x64xf32> to vector<16x64xf32>
    %5 = arith.addf %2, %4 : vector<16x64xf32>
    %cst_5 = arith.constant 0.000000e+00 : f32
    %6 = vector.broadcast %cst_5 : f32 to vector<16x64xf32>
    %7 = arith.cmpf ogt, %5, %6 : vector<16x64xf32>
    %cst_6 = arith.constant 0.000000e+00 : f32
    %8 = vector.broadcast %cst_6 : f32 to vector<16x64xf32>
    %9 = arith.minimumf %5, %8 : vector<16x64xf32>
    %10 = math.exp %9 : vector<16x64xf32>
    %cst_7 = arith.constant 1.000000e+00 : f32
    %11 = vector.broadcast %cst_7 : f32 to vector<16x64xf32>
    %12 = arith.subf %10, %11 : vector<16x64xf32>
    %13 = arith.select %7, %5, %12 : vector<16x64xi1>, vector<16x64xf32>
    %14 = arith.truncf %13 : vector<16x64xf32> to vector<16x64xbf16>
    %c0_8 = arith.constant 0 : index
    %c0_9 = arith.constant 0 : index
    %15 = vector.load %arg4[%c0_8, %c0_9] : memref<16x64xbf16, #tpu.memory_space<vmem>>, vector<16x64xbf16>
    tpu.vector_store %arg4[%c0_8, %c0_9], %14 {strides = array<i32>} : memref<16x64xbf16, #tpu.memory_space<vmem>>, vector<16x64xbf16>,
    return
  }
  func.func @transform_0(%arg0: i32) -> (i32, i32) {
    %c0_i32 = arith.constant 0 : i32
    %c0_i32_0 = arith.constant 0 : i32
    return %arg0, %c0_i32 : i32, i32
  }
  func.func @transform_1(%arg0: i32) -> (i32, i32) {
    %c0_i32 = arith.constant 0 : i32
    %c0_i32_0 = arith.constant 0 : i32
    %c0_i32_1 = arith.constant 0 : i32
    return %c0_i32, %c0_i32_0 : i32, i32
  }
  func.func @transform_2(%arg0: i32) -> (i32, i32) {
    %c0_i32 = arith.constant 0 : i32
    %c0_i32_0 = arith.constant 0 : i32
    %c0_i32_1 = arith.constant 0 : i32
    return %c0_i32, %c0_i32_0 : i32, i32
  }
  func.func @transform_3(%arg0: i32) -> (i32, i32) {
    %c0_i32 = arith.constant 0 : i32
    %c0_i32_0 = arith.constant 0 : i32
    return %arg0, %c0_i32 : i32, i32
  }
}

module attributes {stable_mosaic.version = 11 : i64} {
  func.func @_mm_bias_act_kernel(%arg0: i32, %arg1: memref<16x576xbf16, #tpu.memory_space<vmem>>, %arg2: memref<576x64xbf16, #tpu.memory_space<vmem>>, %arg3: memref<1x64xf32, #tpu.memory_space<vmem>>, %arg4: memref<16x64xbf16, #tpu.memory_space<vmem>>) attributes {dimension_semantics = [#tpu.dimension_semantics<parallel>], iteration_bounds = array<i64: 2>, scalar_prefetch = 0 : i64, scratch_operands = 0 : i64, tpu.core_type = #tpu.core_type<tc>, window_params = [{transform_indices = @transform_0, window_bounds = array<i64: 16, 576>}, {pipeline_mode = #tpu.pipeline_mode<synchronous>, transform_indices = @transform_1, window_bounds = array<i64: 576, 64>}, {pipeline_mode = #tpu.pipeline_mode<synchronous>, transform_indices = @transform_2, window_bounds = array<i64: 1, 64>}, {transform_indices = @transform_3, window_bounds = array<i64: 16, 64>}]} {
    %c0 = arith.constant 0 : index
    %c0_0 = arith.constant 0 : index
    %0 = vector.load %arg1[%c0, %c0_0] : memref<16x576xbf16, #tpu.memory_space<vmem>>, vector<16x576xbf16>
    %c0_1 = arith.constant 0 : index
    %c0_2 = arith.constant 0 : index
    %1 = vector.load %arg2[%c0_1, %c0_2] : memref<576x64xbf16, #tpu.memory_space<vmem>>, vector<576x64xbf16>
    %cst = arith.constant dense<0.000000e+00> : vector<16x64xf32>
    %2 = tpu.matmul %0, %1, %cst {dimension_numbers = #tpu.dot_dimension_numbers<[1], [0], [0], [1], [0, 0, 1, 1], [], []>} : vector<16x576xbf16>, vector<576x64xbf16>, vector<16x64xf32> -> vector<16x64xf32>
    %c0_3 = arith.constant 0 : index
    %c0_4 = arith.constant 0 : index
    %3 = vector.load %arg3[%c0_3, %c0_4] : memref<1x64xf32, #tpu.memory_space<vmem>>, vector<1x64xf32>
    %4 = vector.broadcast %3 : vector<1x64xf32> to vector<16x64xf32>
    %5 = arith.addf %2, %4 : vector<16x64xf32>
    %cst_5 = arith.constant 0.000000e+00 : f32
    %6 = vector.broadcast %cst_5 : f32 to vector<16x64xf32>
    %7 = arith.cmpf ogt, %5, %6 : vector<16x64xf32>
    %cst_6 = arith.constant 0.000000e+00 : f32
    %8 = vector.broadcast %cst_6 : f32 to vector<16x64xf32>
    %9 = arith.minimumf %5, %8 : vector<16x64xf32>
    %10 = math.exp %9 : vector<16x64xf32>
    %cst_7 = arith.constant 1.000000e+00 : f32
    %11 = vector.broadcast %cst_7 : f32 to vector<16x64xf32>
    %12 = arith.subf %10, %11 : vector<16x64xf32>
    %13 = arith.select %7, %5, %12 : vector<16x64xi1>, vector<16x64xf32>
    %14 = arith.truncf %13 : vector<16x64xf32> to vector<16x64xbf16>
    %c0_8 = arith.constant 0 : index
    %c0_9 = arith.constant 0 : index
    %15 = vector.load %arg4[%c0_8, %c0_9] : memref<16x64xbf16, #tpu.memory_space<vmem>>, vector<16x64xbf16>
    tpu.vector_store %arg4[%c0_8, %c0_9], %14 {strides = array<i32>} : memref<16x64xbf16, #tpu.memory_space<vmem>>, vector<16x64xbf16>,
    return
  }
  func.func @transform_0(%arg0: i32) -> (i32, i32) {
    %c0_i32 = arith.constant 0 : i32
    %c0_i32_0 = arith.constant 0 : i32
    return %arg0, %c0_i32 : i32, i32
  }
  func.func @transform_1(%arg0: i32) -> (i32, i32) {
    %c0_i32 = arith.constant 0 : i32
    %c0_i32_0 = arith.constant 0 : i32
    %c0_i32_1 = arith.constant 0 : i32
    return %c0_i32, %c0_i32_0 : i32, i32
  }
  func.func @transform_2(%arg0: i32) -> (i32, i32) {
    %c0_i32 = arith.constant 0 : i32
    %c0_i32_0 = arith.constant 0 : i32
    %c0_i32_1 = arith.constant 0 : i32
    return %c0_i32, %c0_i32_0 : i32, i32
  }
  func.func @transform_3(%arg0: i32) -> (i32, i32) {
    %c0_i32 = arith.constant 0 : i32
    %c0_i32_0 = arith.constant 0 : i32
    return %arg0, %c0_i32 : i32, i32
  }
}

module attributes {stable_mosaic.version = 11 : i64} {
  func.func @_mm_bias_act_kernel(%arg0: i32, %arg1: memref<16x1024xbf16, #tpu.memory_space<vmem>>, %arg2: memref<1024x128xbf16, #tpu.memory_space<vmem>>, %arg3: memref<1x128xf32, #tpu.memory_space<vmem>>, %arg4: memref<16x128xbf16, #tpu.memory_space<vmem>>) attributes {dimension_semantics = [#tpu.dimension_semantics<parallel>], iteration_bounds = array<i64: 1>, scalar_prefetch = 0 : i64, scratch_operands = 0 : i64, tpu.core_type = #tpu.core_type<tc>, window_params = [{transform_indices = @transform_0, window_bounds = array<i64: 16, 1024>}, {pipeline_mode = #tpu.pipeline_mode<synchronous>, transform_indices = @transform_1, window_bounds = array<i64: 1024, 128>}, {pipeline_mode = #tpu.pipeline_mode<synchronous>, transform_indices = @transform_2, window_bounds = array<i64: 1, 128>}, {transform_indices = @transform_3, window_bounds = array<i64: 16, 128>}]} {
    %c0 = arith.constant 0 : index
    %c0_0 = arith.constant 0 : index
    %0 = vector.load %arg1[%c0, %c0_0] : memref<16x1024xbf16, #tpu.memory_space<vmem>>, vector<16x1024xbf16>
    %c0_1 = arith.constant 0 : index
    %c0_2 = arith.constant 0 : index
    %1 = vector.load %arg2[%c0_1, %c0_2] : memref<1024x128xbf16, #tpu.memory_space<vmem>>, vector<1024x128xbf16>
    %cst = arith.constant dense<0.000000e+00> : vector<16x128xf32>
    %2 = tpu.matmul %0, %1, %cst {dimension_numbers = #tpu.dot_dimension_numbers<[1], [0], [0], [1], [0, 0, 1, 1], [], []>} : vector<16x1024xbf16>, vector<1024x128xbf16>, vector<16x128xf32> -> vector<16x128xf32>
    %c0_3 = arith.constant 0 : index
    %c0_4 = arith.constant 0 : index
    %3 = vector.load %arg3[%c0_3, %c0_4] : memref<1x128xf32, #tpu.memory_space<vmem>>, vector<1x128xf32>
    %4 = vector.broadcast %3 : vector<1x128xf32> to vector<16x128xf32>
    %5 = arith.addf %2, %4 : vector<16x128xf32>
    %cst_5 = arith.constant 0.000000e+00 : f32
    %6 = vector.broadcast %cst_5 : f32 to vector<16x128xf32>
    %7 = arith.cmpf ogt, %5, %6 : vector<16x128xf32>
    %cst_6 = arith.constant 0.000000e+00 : f32
    %8 = vector.broadcast %cst_6 : f32 to vector<16x128xf32>
    %9 = arith.minimumf %5, %8 : vector<16x128xf32>
    %10 = math.exp %9 : vector<16x128xf32>
    %cst_7 = arith.constant 1.000000e+00 : f32
    %11 = vector.broadcast %cst_7 : f32 to vector<16x128xf32>
    %12 = arith.subf %10, %11 : vector<16x128xf32>
    %13 = arith.select %7, %5, %12 : vector<16x128xi1>, vector<16x128xf32>
    %14 = arith.truncf %13 : vector<16x128xf32> to vector<16x128xbf16>
    %c0_8 = arith.constant 0 : index
    %c0_9 = arith.constant 0 : index
    %15 = vector.load %arg4[%c0_8, %c0_9] : memref<16x128xbf16, #tpu.memory_space<vmem>>, vector<16x128xbf16>
    tpu.vector_store %arg4[%c0_8, %c0_9], %14 {strides = array<i32>} : memref<16x128xbf16, #tpu.memory_space<vmem>>, vector<16x128xbf16>,
    return
  }
  func.func @transform_0(%arg0: i32) -> (i32, i32) {
    %c0_i32 = arith.constant 0 : i32
    %c0_i32_0 = arith.constant 0 : i32
    return %arg0, %c0_i32 : i32, i32
  }
  func.func @transform_1(%arg0: i32) -> (i32, i32) {
    %c0_i32 = arith.constant 0 : i32
    %c0_i32_0 = arith.constant 0 : i32
    %c0_i32_1 = arith.constant 0 : i32
    return %c0_i32, %c0_i32_0 : i32, i32
  }
  func.func @transform_2(%arg0: i32) -> (i32, i32) {
    %c0_i32 = arith.constant 0 : i32
    %c0_i32_0 = arith.constant 0 : i32
    %c0_i32_1 = arith.constant 0 : i32
    return %c0_i32, %c0_i32_0 : i32, i32
  }
  func.func @transform_3(%arg0: i32) -> (i32, i32) {
    %c0_i32 = arith.constant 0 : i32
    %c0_i32_0 = arith.constant 0 : i32
    return %arg0, %c0_i32 : i32, i32
  }
}

module attributes {stable_mosaic.version = 11 : i64} {
  func.func @_mm_bias_act_kernel(%arg0: i32, %arg1: memref<16x128xbf16, #tpu.memory_space<vmem>>, %arg2: memref<128x128xbf16, #tpu.memory_space<vmem>>, %arg3: memref<1x128xf32, #tpu.memory_space<vmem>>, %arg4: memref<16x128xbf16, #tpu.memory_space<vmem>>) attributes {dimension_semantics = [#tpu.dimension_semantics<parallel>], iteration_bounds = array<i64: 1>, scalar_prefetch = 0 : i64, scratch_operands = 0 : i64, tpu.core_type = #tpu.core_type<tc>, window_params = [{transform_indices = @transform_0, window_bounds = array<i64: 16, 128>}, {pipeline_mode = #tpu.pipeline_mode<synchronous>, transform_indices = @transform_1, window_bounds = array<i64: 128, 128>}, {pipeline_mode = #tpu.pipeline_mode<synchronous>, transform_indices = @transform_2, window_bounds = array<i64: 1, 128>}, {transform_indices = @transform_3, window_bounds = array<i64: 16, 128>}]} {
    %c0 = arith.constant 0 : index
    %c0_0 = arith.constant 0 : index
    %0 = vector.load %arg1[%c0, %c0_0] : memref<16x128xbf16, #tpu.memory_space<vmem>>, vector<16x128xbf16>
    %c0_1 = arith.constant 0 : index
    %c0_2 = arith.constant 0 : index
    %1 = vector.load %arg2[%c0_1, %c0_2] : memref<128x128xbf16, #tpu.memory_space<vmem>>, vector<128x128xbf16>
    %cst = arith.constant dense<0.000000e+00> : vector<16x128xf32>
    %2 = tpu.matmul %0, %1, %cst {dimension_numbers = #tpu.dot_dimension_numbers<[1], [0], [0], [1], [0, 0, 1, 1], [], []>} : vector<16x128xbf16>, vector<128x128xbf16>, vector<16x128xf32> -> vector<16x128xf32>
    %c0_3 = arith.constant 0 : index
    %c0_4 = arith.constant 0 : index
    %3 = vector.load %arg3[%c0_3, %c0_4] : memref<1x128xf32, #tpu.memory_space<vmem>>, vector<1x128xf32>
    %4 = vector.broadcast %3 : vector<1x128xf32> to vector<16x128xf32>
    %5 = arith.addf %2, %4 : vector<16x128xf32>
    %cst_5 = arith.constant 0.000000e+00 : f32
    %6 = vector.broadcast %cst_5 : f32 to vector<16x128xf32>
    %7 = arith.cmpf ogt, %5, %6 : vector<16x128xf32>
    %cst_6 = arith.constant 0.000000e+00 : f32
    %8 = vector.broadcast %cst_6 : f32 to vector<16x128xf32>
    %9 = arith.minimumf %5, %8 : vector<16x128xf32>
    %10 = math.exp %9 : vector<16x128xf32>
    %cst_7 = arith.constant 1.000000e+00 : f32
    %11 = vector.broadcast %cst_7 : f32 to vector<16x128xf32>
    %12 = arith.subf %10, %11 : vector<16x128xf32>
    %13 = arith.select %7, %5, %12 : vector<16x128xi1>, vector<16x128xf32>
    %14 = arith.truncf %13 : vector<16x128xf32> to vector<16x128xbf16>
    %c0_8 = arith.constant 0 : index
    %c0_9 = arith.constant 0 : index
    %15 = vector.load %arg4[%c0_8, %c0_9] : memref<16x128xbf16, #tpu.memory_space<vmem>>, vector<16x128xbf16>
    tpu.vector_store %arg4[%c0_8, %c0_9], %14 {strides = array<i32>} : memref<16x128xbf16, #tpu.memory_space<vmem>>, vector<16x128xbf16>,
    return
  }
  func.func @transform_0(%arg0: i32) -> (i32, i32) {
    %c0_i32 = arith.constant 0 : i32
    %c0_i32_0 = arith.constant 0 : i32
    return %arg0, %c0_i32 : i32, i32
  }
  func.func @transform_1(%arg0: i32) -> (i32, i32) {
    %c0_i32 = arith.constant 0 : i32
    %c0_i32_0 = arith.constant 0 : i32
    %c0_i32_1 = arith.constant 0 : i32
    return %c0_i32, %c0_i32_0 : i32, i32
  }
  func.func @transform_2(%arg0: i32) -> (i32, i32) {
    %c0_i32 = arith.constant 0 : i32
    %c0_i32_0 = arith.constant 0 : i32
    %c0_i32_1 = arith.constant 0 : i32
    return %c0_i32, %c0_i32_0 : i32, i32
  }
  func.func @transform_3(%arg0: i32) -> (i32, i32) {
    %c0_i32 = arith.constant 0 : i32
    %c0_i32_0 = arith.constant 0 : i32
    return %arg0, %c0_i32 : i32, i32
  }
}

module attributes {stable_mosaic.version = 11 : i64} {
  func.func @_mm_bias_act_kernel(%arg0: i32, %arg1: memref<16x1152xbf16, #tpu.memory_space<vmem>>, %arg2: memref<1152x128xbf16, #tpu.memory_space<vmem>>, %arg3: memref<1x128xf32, #tpu.memory_space<vmem>>, %arg4: memref<16x128xbf16, #tpu.memory_space<vmem>>) attributes {dimension_semantics = [#tpu.dimension_semantics<parallel>], iteration_bounds = array<i64: 1>, scalar_prefetch = 0 : i64, scratch_operands = 0 : i64, tpu.core_type = #tpu.core_type<tc>, window_params = [{transform_indices = @transform_0, window_bounds = array<i64: 16, 1152>}, {pipeline_mode = #tpu.pipeline_mode<synchronous>, transform_indices = @transform_1, window_bounds = array<i64: 1152, 128>}, {pipeline_mode = #tpu.pipeline_mode<synchronous>, transform_indices = @transform_2, window_bounds = array<i64: 1, 128>}, {transform_indices = @transform_3, window_bounds = array<i64: 16, 128>}]} {
    %c0 = arith.constant 0 : index
    %c0_0 = arith.constant 0 : index
    %0 = vector.load %arg1[%c0, %c0_0] : memref<16x1152xbf16, #tpu.memory_space<vmem>>, vector<16x1152xbf16>
    %c0_1 = arith.constant 0 : index
    %c0_2 = arith.constant 0 : index
    %1 = vector.load %arg2[%c0_1, %c0_2] : memref<1152x128xbf16, #tpu.memory_space<vmem>>, vector<1152x128xbf16>
    %cst = arith.constant dense<0.000000e+00> : vector<16x128xf32>
    %2 = tpu.matmul %0, %1, %cst {dimension_numbers = #tpu.dot_dimension_numbers<[1], [0], [0], [1], [0, 0, 1, 1], [], []>} : vector<16x1152xbf16>, vector<1152x128xbf16>, vector<16x128xf32> -> vector<16x128xf32>
    %c0_3 = arith.constant 0 : index
    %c0_4 = arith.constant 0 : index
    %3 = vector.load %arg3[%c0_3, %c0_4] : memref<1x128xf32, #tpu.memory_space<vmem>>, vector<1x128xf32>
    %4 = vector.broadcast %3 : vector<1x128xf32> to vector<16x128xf32>
    %5 = arith.addf %2, %4 : vector<16x128xf32>
    %cst_5 = arith.constant 0.000000e+00 : f32
    %6 = vector.broadcast %cst_5 : f32 to vector<16x128xf32>
    %7 = arith.cmpf ogt, %5, %6 : vector<16x128xf32>
    %cst_6 = arith.constant 0.000000e+00 : f32
    %8 = vector.broadcast %cst_6 : f32 to vector<16x128xf32>
    %9 = arith.minimumf %5, %8 : vector<16x128xf32>
    %10 = math.exp %9 : vector<16x128xf32>
    %cst_7 = arith.constant 1.000000e+00 : f32
    %11 = vector.broadcast %cst_7 : f32 to vector<16x128xf32>
    %12 = arith.subf %10, %11 : vector<16x128xf32>
    %13 = arith.select %7, %5, %12 : vector<16x128xi1>, vector<16x128xf32>
    %14 = arith.truncf %13 : vector<16x128xf32> to vector<16x128xbf16>
    %c0_8 = arith.constant 0 : index
    %c0_9 = arith.constant 0 : index
    %15 = vector.load %arg4[%c0_8, %c0_9] : memref<16x128xbf16, #tpu.memory_space<vmem>>, vector<16x128xbf16>
    tpu.vector_store %arg4[%c0_8, %c0_9], %14 {strides = array<i32>} : memref<16x128xbf16, #tpu.memory_space<vmem>>, vector<16x128xbf16>,
    return
  }
  func.func @transform_0(%arg0: i32) -> (i32, i32) {
    %c0_i32 = arith.constant 0 : i32
    %c0_i32_0 = arith.constant 0 : i32
    return %arg0, %c0_i32 : i32, i32
  }
  func.func @transform_1(%arg0: i32) -> (i32, i32) {
    %c0_i32 = arith.constant 0 : i32
    %c0_i32_0 = arith.constant 0 : i32
    %c0_i32_1 = arith.constant 0 : i32
    return %c0_i32, %c0_i32_0 : i32, i32
  }
  func.func @transform_2(%arg0: i32) -> (i32, i32) {
    %c0_i32 = arith.constant 0 : i32
    %c0_i32_0 = arith.constant 0 : i32
    %c0_i32_1 = arith.constant 0 : i32
    return %c0_i32, %c0_i32_0 : i32, i32
  }
  func.func @transform_3(%arg0: i32) -> (i32, i32) {
    %c0_i32 = arith.constant 0 : i32
    %c0_i32_0 = arith.constant 0 : i32
    return %arg0, %c0_i32 : i32, i32
  }
}

module attributes {stable_mosaic.version = 11 : i64} {
  func.func @_mm_bias_act_kernel(%arg0: i32, %arg1: memref<16x512xbf16, #tpu.memory_space<vmem>>, %arg2: memref<512x256xbf16, #tpu.memory_space<vmem>>, %arg3: memref<1x256xf32, #tpu.memory_space<vmem>>, %arg4: memref<16x256xbf16, #tpu.memory_space<vmem>>) attributes {dimension_semantics = [#tpu.dimension_semantics<parallel>], iteration_bounds = array<i64: 2>, scalar_prefetch = 0 : i64, scratch_operands = 0 : i64, tpu.core_type = #tpu.core_type<tc>, window_params = [{transform_indices = @transform_0, window_bounds = array<i64: 16, 512>}, {pipeline_mode = #tpu.pipeline_mode<synchronous>, transform_indices = @transform_1, window_bounds = array<i64: 512, 256>}, {pipeline_mode = #tpu.pipeline_mode<synchronous>, transform_indices = @transform_2, window_bounds = array<i64: 1, 256>}, {transform_indices = @transform_3, window_bounds = array<i64: 16, 256>}]} {
    %c0 = arith.constant 0 : index
    %c0_0 = arith.constant 0 : index
    %0 = vector.load %arg1[%c0, %c0_0] : memref<16x512xbf16, #tpu.memory_space<vmem>>, vector<16x512xbf16>
    %c0_1 = arith.constant 0 : index
    %c0_2 = arith.constant 0 : index
    %1 = vector.load %arg2[%c0_1, %c0_2] : memref<512x256xbf16, #tpu.memory_space<vmem>>, vector<512x256xbf16>
    %cst = arith.constant dense<0.000000e+00> : vector<16x256xf32>
    %2 = tpu.matmul %0, %1, %cst {dimension_numbers = #tpu.dot_dimension_numbers<[1], [0], [0], [1], [0, 0, 1, 1], [], []>} : vector<16x512xbf16>, vector<512x256xbf16>, vector<16x256xf32> -> vector<16x256xf32>
    %c0_3 = arith.constant 0 : index
    %c0_4 = arith.constant 0 : index
    %3 = vector.load %arg3[%c0_3, %c0_4] : memref<1x256xf32, #tpu.memory_space<vmem>>, vector<1x256xf32>
    %4 = vector.broadcast %3 : vector<1x256xf32> to vector<16x256xf32>
    %5 = arith.addf %2, %4 : vector<16x256xf32>
    %cst_5 = arith.constant 0.000000e+00 : f32
    %6 = vector.broadcast %cst_5 : f32 to vector<16x256xf32>
    %7 = arith.cmpf ogt, %5, %6 : vector<16x256xf32>
    %cst_6 = arith.constant 0.000000e+00 : f32
    %8 = vector.broadcast %cst_6 : f32 to vector<16x256xf32>
    %9 = arith.minimumf %5, %8 : vector<16x256xf32>
    %10 = math.exp %9 : vector<16x256xf32>
    %cst_7 = arith.constant 1.000000e+00 : f32
    %11 = vector.broadcast %cst_7 : f32 to vector<16x256xf32>
    %12 = arith.subf %10, %11 : vector<16x256xf32>
    %13 = arith.select %7, %5, %12 : vector<16x256xi1>, vector<16x256xf32>
    %14 = arith.truncf %13 : vector<16x256xf32> to vector<16x256xbf16>
    %c0_8 = arith.constant 0 : index
    %c0_9 = arith.constant 0 : index
    %15 = vector.load %arg4[%c0_8, %c0_9] : memref<16x256xbf16, #tpu.memory_space<vmem>>, vector<16x256xbf16>
    tpu.vector_store %arg4[%c0_8, %c0_9], %14 {strides = array<i32>} : memref<16x256xbf16, #tpu.memory_space<vmem>>, vector<16x256xbf16>,
    return
  }
  func.func @transform_0(%arg0: i32) -> (i32, i32) {
    %c0_i32 = arith.constant 0 : i32
    %c0_i32_0 = arith.constant 0 : i32
    return %arg0, %c0_i32 : i32, i32
  }
  func.func @transform_1(%arg0: i32) -> (i32, i32) {
    %c0_i32 = arith.constant 0 : i32
    %c0_i32_0 = arith.constant 0 : i32
    %c0_i32_1 = arith.constant 0 : i32
    return %c0_i32, %c0_i32_0 : i32, i32
  }
  func.func @transform_2(%arg0: i32) -> (i32, i32) {
    %c0_i32 = arith.constant 0 : i32
    %c0_i32_0 = arith.constant 0 : i32
    %c0_i32_1 = arith.constant 0 : i32
    return %c0_i32, %c0_i32_0 : i32, i32
  }
  func.func @transform_3(%arg0: i32) -> (i32, i32) {
    %c0_i32 = arith.constant 0 : i32
    %c0_i32_0 = arith.constant 0 : i32
    return %arg0, %c0_i32 : i32, i32
  }
}

module attributes {stable_mosaic.version = 11 : i64} {
  func.func @_mm_bias_act_kernel(%arg0: i32, %arg1: memref<32x256xbf16, #tpu.memory_space<vmem>>, %arg2: memref<256x128xbf16, #tpu.memory_space<vmem>>, %arg3: memref<1x128xf32, #tpu.memory_space<vmem>>, %arg4: memref<32x128xbf16, #tpu.memory_space<vmem>>) attributes {dimension_semantics = [#tpu.dimension_semantics<parallel>], iteration_bounds = array<i64: 2>, scalar_prefetch = 0 : i64, scratch_operands = 0 : i64, tpu.core_type = #tpu.core_type<tc>, window_params = [{transform_indices = @transform_0, window_bounds = array<i64: 32, 256>}, {pipeline_mode = #tpu.pipeline_mode<synchronous>, transform_indices = @transform_1, window_bounds = array<i64: 256, 128>}, {pipeline_mode = #tpu.pipeline_mode<synchronous>, transform_indices = @transform_2, window_bounds = array<i64: 1, 128>}, {transform_indices = @transform_3, window_bounds = array<i64: 32, 128>}]} {
    %c0 = arith.constant 0 : index
    %c0_0 = arith.constant 0 : index
    %0 = vector.load %arg1[%c0, %c0_0] : memref<32x256xbf16, #tpu.memory_space<vmem>>, vector<32x256xbf16>
    %c0_1 = arith.constant 0 : index
    %c0_2 = arith.constant 0 : index
    %1 = vector.load %arg2[%c0_1, %c0_2] : memref<256x128xbf16, #tpu.memory_space<vmem>>, vector<256x128xbf16>
    %cst = arith.constant dense<0.000000e+00> : vector<32x128xf32>
    %2 = tpu.matmul %0, %1, %cst {dimension_numbers = #tpu.dot_dimension_numbers<[1], [0], [0], [1], [0, 0, 1, 1], [], []>} : vector<32x256xbf16>, vector<256x128xbf16>, vector<32x128xf32> -> vector<32x128xf32>
    %c0_3 = arith.constant 0 : index
    %c0_4 = arith.constant 0 : index
    %3 = vector.load %arg3[%c0_3, %c0_4] : memref<1x128xf32, #tpu.memory_space<vmem>>, vector<1x128xf32>
    %4 = vector.broadcast %3 : vector<1x128xf32> to vector<32x128xf32>
    %5 = arith.addf %2, %4 : vector<32x128xf32>
    %cst_5 = arith.constant 0.000000e+00 : f32
    %6 = vector.broadcast %cst_5 : f32 to vector<32x128xf32>
    %7 = arith.cmpf ogt, %5, %6 : vector<32x128xf32>
    %cst_6 = arith.constant 0.000000e+00 : f32
    %8 = vector.broadcast %cst_6 : f32 to vector<32x128xf32>
    %9 = arith.minimumf %5, %8 : vector<32x128xf32>
    %10 = math.exp %9 : vector<32x128xf32>
    %cst_7 = arith.constant 1.000000e+00 : f32
    %11 = vector.broadcast %cst_7 : f32 to vector<32x128xf32>
    %12 = arith.subf %10, %11 : vector<32x128xf32>
    %13 = arith.select %7, %5, %12 : vector<32x128xi1>, vector<32x128xf32>
    %14 = arith.truncf %13 : vector<32x128xf32> to vector<32x128xbf16>
    %c0_8 = arith.constant 0 : index
    %c0_9 = arith.constant 0 : index
    %15 = vector.load %arg4[%c0_8, %c0_9] : memref<32x128xbf16, #tpu.memory_space<vmem>>, vector<32x128xbf16>
    tpu.vector_store %arg4[%c0_8, %c0_9], %14 {strides = array<i32>} : memref<32x128xbf16, #tpu.memory_space<vmem>>, vector<32x128xbf16>,
    return
  }
  func.func @transform_0(%arg0: i32) -> (i32, i32) {
    %c0_i32 = arith.constant 0 : i32
    %c0_i32_0 = arith.constant 0 : i32
    return %arg0, %c0_i32 : i32, i32
  }
  func.func @transform_1(%arg0: i32) -> (i32, i32) {
    %c0_i32 = arith.constant 0 : i32
    %c0_i32_0 = arith.constant 0 : i32
    %c0_i32_1 = arith.constant 0 : i32
    return %c0_i32, %c0_i32_0 : i32, i32
  }
  func.func @transform_2(%arg0: i32) -> (i32, i32) {
    %c0_i32 = arith.constant 0 : i32
    %c0_i32_0 = arith.constant 0 : i32
    %c0_i32_1 = arith.constant 0 : i32
    return %c0_i32, %c0_i32_0 : i32, i32
  }
  func.func @transform_3(%arg0: i32) -> (i32, i32) {
    %c0_i32 = arith.constant 0 : i32
    %c0_i32_0 = arith.constant 0 : i32
    return %arg0, %c0_i32 : i32, i32
  }
}

module attributes {stable_mosaic.version = 11 : i64} {
  func.func @_mm_bias_act_kernel(%arg0: i32, %arg1: memref<96x128xbf16, #tpu.memory_space<vmem>>, %arg2: memref<128x32xbf16, #tpu.memory_space<vmem>>, %arg3: memref<1x32xf32, #tpu.memory_space<vmem>>, %arg4: memref<96x32xbf16, #tpu.memory_space<vmem>>) attributes {dimension_semantics = [#tpu.dimension_semantics<parallel>], iteration_bounds = array<i64: 2>, scalar_prefetch = 0 : i64, scratch_operands = 0 : i64, tpu.core_type = #tpu.core_type<tc>, window_params = [{transform_indices = @transform_0, window_bounds = array<i64: 96, 128>}, {pipeline_mode = #tpu.pipeline_mode<synchronous>, transform_indices = @transform_1, window_bounds = array<i64: 128, 32>}, {pipeline_mode = #tpu.pipeline_mode<synchronous>, transform_indices = @transform_2, window_bounds = array<i64: 1, 32>}, {transform_indices = @transform_3, window_bounds = array<i64: 96, 32>}]} {
    %c0 = arith.constant 0 : index
    %c0_0 = arith.constant 0 : index
    %0 = vector.load %arg1[%c0, %c0_0] : memref<96x128xbf16, #tpu.memory_space<vmem>>, vector<96x128xbf16>
    %c0_1 = arith.constant 0 : index
    %c0_2 = arith.constant 0 : index
    %1 = vector.load %arg2[%c0_1, %c0_2] : memref<128x32xbf16, #tpu.memory_space<vmem>>, vector<128x32xbf16>
    %cst = arith.constant dense<0.000000e+00> : vector<96x32xf32>
    %2 = tpu.matmul %0, %1, %cst {dimension_numbers = #tpu.dot_dimension_numbers<[1], [0], [0], [1], [0, 0, 1, 1], [], []>} : vector<96x128xbf16>, vector<128x32xbf16>, vector<96x32xf32> -> vector<96x32xf32>
    %c0_3 = arith.constant 0 : index
    %c0_4 = arith.constant 0 : index
    %3 = vector.load %arg3[%c0_3, %c0_4] : memref<1x32xf32, #tpu.memory_space<vmem>>, vector<1x32xf32>
    %4 = vector.broadcast %3 : vector<1x32xf32> to vector<96x32xf32>
    %5 = arith.addf %2, %4 : vector<96x32xf32>
    %cst_5 = arith.constant 0.000000e+00 : f32
    %6 = vector.broadcast %cst_5 : f32 to vector<96x32xf32>
    %7 = arith.cmpf ogt, %5, %6 : vector<96x32xf32>
    %cst_6 = arith.constant 0.000000e+00 : f32
    %8 = vector.broadcast %cst_6 : f32 to vector<96x32xf32>
    %9 = arith.minimumf %5, %8 : vector<96x32xf32>
    %10 = math.exp %9 : vector<96x32xf32>
    %cst_7 = arith.constant 1.000000e+00 : f32
    %11 = vector.broadcast %cst_7 : f32 to vector<96x32xf32>
    %12 = arith.subf %10, %11 : vector<96x32xf32>
    %13 = arith.select %7, %5, %12 : vector<96x32xi1>, vector<96x32xf32>
    %14 = arith.truncf %13 : vector<96x32xf32> to vector<96x32xbf16>
    %c0_8 = arith.constant 0 : index
    %c0_9 = arith.constant 0 : index
    %15 = vector.load %arg4[%c0_8, %c0_9] : memref<96x32xbf16, #tpu.memory_space<vmem>>, vector<96x32xbf16>
    tpu.vector_store %arg4[%c0_8, %c0_9], %14 {strides = array<i32>} : memref<96x32xbf16, #tpu.memory_space<vmem>>, vector<96x32xbf16>,
    return
  }
  func.func @transform_0(%arg0: i32) -> (i32, i32) {
    %c0_i32 = arith.constant 0 : i32
    %c0_i32_0 = arith.constant 0 : i32
    return %arg0, %c0_i32 : i32, i32
  }
  func.func @transform_1(%arg0: i32) -> (i32, i32) {
    %c0_i32 = arith.constant 0 : i32
    %c0_i32_0 = arith.constant 0 : i32
    %c0_i32_1 = arith.constant 0 : i32
    return %c0_i32, %c0_i32_0 : i32, i32
  }
  func.func @transform_2(%arg0: i32) -> (i32, i32) {
    %c0_i32 = arith.constant 0 : i32
    %c0_i32_0 = arith.constant 0 : i32
    %c0_i32_1 = arith.constant 0 : i32
    return %c0_i32, %c0_i32_0 : i32, i32
  }
  func.func @transform_3(%arg0: i32) -> (i32, i32) {
    %c0_i32 = arith.constant 0 : i32
    %c0_i32_0 = arith.constant 0 : i32
    return %arg0, %c0_i32 : i32, i32
  }
}

module attributes {stable_mosaic.version = 11 : i64} {
  func.func @_mm_bias_act_kernel(%arg0: i32, %arg1: memref<256x72xbf16, #tpu.memory_space<vmem>>, %arg2: memref<72x128xbf16, #tpu.memory_space<vmem>>, %arg3: memref<1x128xf32, #tpu.memory_space<vmem>>, %arg4: memref<256x128xf32, #tpu.memory_space<vmem>>) attributes {dimension_semantics = [#tpu.dimension_semantics<parallel>], iteration_bounds = array<i64: 2>, scalar_prefetch = 0 : i64, scratch_operands = 0 : i64, tpu.core_type = #tpu.core_type<tc>, window_params = [{transform_indices = @transform_0, window_bounds = array<i64: 256, 72>}, {pipeline_mode = #tpu.pipeline_mode<synchronous>, transform_indices = @transform_1, window_bounds = array<i64: 72, 128>}, {pipeline_mode = #tpu.pipeline_mode<synchronous>, transform_indices = @transform_2, window_bounds = array<i64: 1, 128>}, {transform_indices = @transform_3, window_bounds = array<i64: 256, 128>}]} {
    %c0 = arith.constant 0 : index
    %c0_0 = arith.constant 0 : index
    %0 = vector.load %arg1[%c0, %c0_0] : memref<256x72xbf16, #tpu.memory_space<vmem>>, vector<256x72xbf16>
    %c0_1 = arith.constant 0 : index
    %c0_2 = arith.constant 0 : index
    %1 = vector.load %arg2[%c0_1, %c0_2] : memref<72x128xbf16, #tpu.memory_space<vmem>>, vector<72x128xbf16>
    %cst = arith.constant dense<0.000000e+00> : vector<256x128xf32>
    %2 = tpu.matmul %0, %1, %cst {dimension_numbers = #tpu.dot_dimension_numbers<[1], [0], [0], [1], [0, 0, 1, 1], [], []>} : vector<256x72xbf16>, vector<72x128xbf16>, vector<256x128xf32> -> vector<256x128xf32>
    %c0_3 = arith.constant 0 : index
    %c0_4 = arith.constant 0 : index
    %3 = vector.load %arg3[%c0_3, %c0_4] : memref<1x128xf32, #tpu.memory_space<vmem>>, vector<1x128xf32>
    %4 = vector.broadcast %3 : vector<1x128xf32> to vector<256x128xf32>
    %5 = arith.addf %2, %4 : vector<256x128xf32>
    %c0_5 = arith.constant 0 : index
    %c0_6 = arith.constant 0 : index
    %6 = vector.load %arg4[%c0_5, %c0_6] : memref<256x128xf32, #tpu.memory_space<vmem>>, vector<256x128xf32>
    tpu.vector_store %arg4[%c0_5, %c0_6], %5 {strides = array<i32>} : memref<256x128xf32, #tpu.memory_space<vmem>>, vector<256x128xf32>,
    return
  }
  func.func @transform_0(%arg0: i32) -> (i32, i32) {
    %c0_i32 = arith.constant 0 : i32
    %c0_i32_0 = arith.constant 0 : i32
    return %arg0, %c0_i32 : i32, i32
  }
  func.func @transform_1(%arg0: i32) -> (i32, i32) {
    %c0_i32 = arith.constant 0 : i32
    %c0_i32_0 = arith.constant 0 : i32
    %c0_i32_1 = arith.constant 0 : i32
    return %c0_i32, %c0_i32_0 : i32, i32
  }
  func.func @transform_2(%arg0: i32) -> (i32, i32) {
    %c0_i32 = arith.constant 0 : i32
    %c0_i32_0 = arith.constant 0 : i32
    %c0_i32_1 = arith.constant 0 : i32
    return %c0_i32, %c0_i32_0 : i32, i32
  }
  func.func @transform_3(%arg0: i32) -> (i32, i32) {
    %c0_i32 = arith.constant 0 : i32
    %c0_i32_0 = arith.constant 0 : i32
    return %arg0, %c0_i32 : i32, i32
  }
}

</mosaic_0001>

<bundles_post_ra>
// kernel: lidcamnet_forward.20
= control target key start
LH: loop header
LB: loop body
LE: loop exit
PB: predicated region body
PF: predicated region fallthrough
CT: control target
= control target key end

     0   :  { %s590_s12 = smov 0   ;;  %s644_s0 = inlined_call_operand.vmem [shape: bf16[128,48], index: 0, kind: input, shape index: {}]   ;;  %s645_s1 = inlined_call_operand.vmem [shape: bf16[48,32], index: 1, kind: input, shape index: {}]   ;;  %s646_s2 = inlined_call_operand.vmem [shape: f32[1,32], index: 2, kind: input, shape index: {}]   ;;  %s647_s3 = inlined_call_operand.vmem [shape: bf16[128,32], index: 3, kind: output, shape index: {}]  }
   0x1 LB: > { %s457_s13 = sadd.s32 4294967295, %s568_s12   ;;  %p461_p0 = scmp.ge.s32.totalorder %s568_s12, 1  ;;  %s568_s12 = sphi %s590_s12, %s13_s12  }
   0x2   : > { %p138_p1 = scmp.lt.s32.totalorder %s568_s12, 3 }
   0x4   : > { %p139_p2 = pnand %p461_p0, %p138_p1 }
   0x5   : > { %s462_s16 = sshll.u32 (!%p139_p2), %s457_s13, 3 }
   0x6   : > { %142 = sbr.rel (%p139_p2) target bundleno = 251 (0xfb), region = 32  ;;  %p163_p3 = scmp.lt.s32.totalorder (!%p139_p2), %s462_s16, 15 }
   0xb   : > { %v539_v0 = vld [vmem:[%s645_s1 + $0x10] sm:$0xff]   ;;  %v540_v1 = vld [vmem:[%s645_s1 + $0x8] sm:$0xff]   ;;  %s649_s16 = smov (!%p163_p3, %s462_s16), 15  ;;  %v541_v2 = vld [vmem:[%s645_s1] sm:$0xff]   ;;  %vm234_vm0 = vcmask 392192   ;;  %vm392_vm2 = vcmask 257024  }
   0xc   : > { %511 = vmatprep.subr.bf16.mxu0 %v539_v0  ;;  %525 = vmatprep.subr.bf16.mxu1 %v539_v0  ;;  %s463_s21 = sshll.u32 %s649_s16, 2  ;;  %v466_v7 = vld [vmem:[%s646_s2] ss:$0 sm:$0xff] }
   0xd   : > { %512 = vmatpush3.bf16.msra.mxu0 %v539_v0  ;;  %528 = vmatpush3.bf16.msra.mxu1 %v539_v0  ;;  %s166_s24 = scalar_lea.vmem %s644_s0, %s463_s21  ;;  %s623_s29 = scalar_lea.vmem %s647_s3, %s463_s21 }
   0xe   : > { %513 = vmatprep.subr.bf16.mxu0 %v540_v1  ;;  %526 = vmatprep.subr.bf16.mxu1 %v540_v1  ;;  %v542_v3 = vld [vmem:[%s166_s24] sm:$0xff]   ;;  %v543_v4 = vld [vmem:[%s166_s24 + $0x10] sm:$0xff]   ;;  %v544_v5 = vld [vmem:[%s166_s24 + $0x8] sm:$0xff]  }
   0xf   : > { %517 = vmatprep.mubr.msk.bf16.mxu0 %vm234_vm0, %v542_v3  ;;  %521 = vmatprep.mubr.msk.bf16.mxu1 %vm234_vm0, %v543_v4  ;;  %v545_v6 = vld [vmem:[%s166_s24 + $0x18] sm:$0xff]  }
  0x11   : > { %514 = vmatpush3.bf16.msra.mxu0 %v540_v1  ;;  %529 = vmatpush3.bf16.msra.mxu1 %v540_v1 }
  0x12   : > { %515 = vmatprep.subr.bf16.mxu0 %v541_v2  ;;  %527 = vmatprep.subr.bf16.mxu1 %v541_v2 }
  0x15   : > { %516 = vmatpush3.bf16.msra.mxu0 %v541_v2  ;;  %530 = vmatpush3.bf16.msra.mxu1 %v541_v2 }
  0x18   : > { %518 = vmatmul.mubr.msk.bf16.vlgmr.msra.gmra.mxu0 %vm234_vm0, %v544_v5  ;;  %522 = vmatmul.mubr.msk.bf16.vlgmr.msra.gmra.mxu1 %vm234_vm0, %v545_v6 }
  0xd8   : > { %v519_v8 = vpop.f32.mrf.mxu0  ;;  %v523_v9 = vpop.f32.mrf.mxu1 }
  0xd9   : > { %v290_v10 = vadd.f32 %v519_v8, %v466_v7  ;;  %v306_v11 = vadd.f32 %v523_v9, %v466_v7 }
  0xda   : > { %v281_v12 = vpop.f32.mrf.mxu0  ;;  %v297_v13 = vpop.f32.mrf.mxu1 }
  0xdb   : > { %v322_v14 = vmin.f32 %v290_v10, 0.0  ;;  %v326_v15 = vmin.f32 %v306_v11, 0.0  ;;  %v282_v16 = vadd.f32 %v466_v7, %v281_v12  ;;  %v298_v17 = vadd.f32 %v466_v7, %v297_v13 }
  0xdc   : > { %v520_v18 = vpop.f32.mrf.mxu0  ;;  %v524_v19 = vpop.f32.mrf.mxu1  ;;  %vm314_vm1 = vcmp.gt.f32.partialorder %v290_v10, 0.0  ;;  %vm318_vm3 = vcmp.gt.f32.partialorder %v306_v11, 0.0 }
  0xdd   : > { %v332_v20 = vmul.f32 1.442695, %v322_v14  ;;  %v340_v21 = vmul.f32 1.442695, %v326_v15  ;;  %v293_v22 = vadd.f32 %v520_v18, %v466_v7  ;;  %v309_v23 = vadd.f32 %v524_v19, %v466_v7 }
  0xde   : > { %v320_v24 = vmin.f32 %v282_v16, 0.0  ;;  %v324_v25 = vmin.f32 %v298_v17, 0.0  ;;  %v284_v26 = vpop.f32.mrf.mxu0  ;;  %v300_v27 = vpop.f32.mrf.mxu1  ;;  %vm312_vm4 = vcmp.gt.f32.partialorder %v282_v16, 0.0  ;;  %vm316_vm5 = vcmp.gt.f32.partialorder %v298_v17, 0.0 }
  0xdf   : > { %546 = vpow2.f32 %v332_v20  ;;  %v323_v28 = vmin.f32 %v293_v22, 0.0  ;;  %v327_v31 = vmin.f32 %v309_v23, 0.0  ;;  %v285_v33 = vadd.f32 %v466_v7, %v284_v26 }
  0xe0   : > { %548 = vpow2.f32 %v340_v21  ;;  %v328_v29 = vmul.f32 1.442695, %v320_v24  ;;  %v336_v30 = vmul.f32 1.442695, %v324_v25  ;;  %v301_v34 = vadd.f32 %v466_v7, %v300_v27 }
  0xe1   : > { %v334_v32 = vmul.f32 1.442695, %v323_v28  ;;  %v342_v35 = vmul.f32 1.442695, %v327_v31  ;;  %v321_v36 = vmin.f32 %v285_v33, 0.0  ;;  %vm315_vm6 = vcmp.gt.f32.partialorder %v293_v22, 0.0 }
  0xe2   : > { %550 = vpow2.f32 %v328_v29  ;;  %v325_v37 = vmin.f32 %v301_v34, 0.0  ;;  %vm319_vm7 = vcmp.gt.f32.partialorder %v309_v23, 0.0  ;;  %vm313_vm8 = vcmp.gt.f32.partialorder %v285_v33, 0.0 }
  0xe3   : > { %552 = vpow2.f32 %v336_v30  ;;  %v330_v38 = vmul.f32 1.442695, %v321_v36  ;;  %vm317_vm9 = vcmp.gt.f32.partialorder %v301_v34, 0.0 }
  0xe4   : > { %554 = vpow2.f32 %v334_v32  ;;  %v338_v39 = vmul.f32 1.442695, %v325_v37 }
  0xe5   : > { %556 = vpow2.f32 %v342_v35 }
  0xe6   : > { %558 = vpow2.f32 %v330_v38 }
  0xe7   : > { %560 = vpow2.f32 %v338_v39 }
  0xec   : > { %v547_v40 = vpop.eup %546 }
  0xed   : > { %v549_v41 = vpop.eup %548  ;;  %v480_v42 = vadd.f32 -1.0, %v547_v40 }
  0xee   : > { %v484_v43 = vadd.f32 -1.0, %v549_v41 }
  0xef   : > { %v551_v44 = vpop.eup %550  ;;  %v354_v45 = vsel %vm314_vm1, %v290_v10, %v480_v42 }
  0xf0   : > { %v553_v46 = vpop.eup %552  ;;  %v498_v47 = vpack.c.bf16 %v354_v45, %v354_v45  ;;  %v358_v48 = vsel %vm318_vm3, %v306_v11, %v484_v43  ;;  %v478_v49 = vadd.f32 -1.0, %v551_v44 }
  0xf1   : > { %v555_v50 = vpop.eup %554  ;;  %v502_v51 = vpack.c.bf16 %v358_v48, %v358_v48  ;;  %v482_v52 = vadd.f32 -1.0, %v553_v46 }
  0xf2   : > { %v557_v53 = vpop.eup %556  ;;  %395 = vst.msk [vmem:[%s623_s29 + $0x8] sm:$0xf] %vm392_vm2, %v498_v47  ;;  %v352_v54 = vsel %vm312_vm4, %v282_v16, %v478_v49  ;;  %v481_v55 = vadd.f32 -1.0, %v555_v50 }
  0xf3   : > { %399 = vst.msk [vmem:[%s623_s29 + $0x18] sm:$0xf] %vm392_vm2, %v502_v51  ;;  %v496_v56 = vpack.c.bf16 %v352_v54, %v352_v54  ;;  %v356_v57 = vsel %vm316_vm5, %v298_v17, %v482_v52  ;;  %v485_v58 = vadd.f32 -1.0, %v557_v53  ;;  %v559_v59 = vpop.eup %558 }
  0xf4   : > { %v500_v60 = vpack.c.bf16 %v356_v57, %v356_v57  ;;  %v355_v61 = vsel %vm315_vm6, %v293_v22, %v481_v55  ;;  %v561_v62 = vpop.eup %560  ;;  %v479_v1 = vadd.f32 -1.0, %v559_v59 }
  0xf5   : > { %393 = vst.msk [vmem:[%s623_s29] sm:$0xf] %vm392_vm2, %v496_v56  ;;  %v499_v63 = vpack.c.bf16 %v355_v61, %v355_v61  ;;  %v359_v0 = vsel %vm319_vm7, %v309_v23, %v485_v58  ;;  %v483_v3 = vadd.f32 -1.0, %v561_v62 }
  0xf6   : > { %397 = vst.msk [vmem:[%s623_s29 + $0x10] sm:$0xf] %vm392_vm2, %v500_v60  ;;  %v503_v2 = vpack.c.bf16 %v359_v0, %v359_v0  ;;  %v353_v4 = vsel %vm313_vm8, %v285_v33, %v479_v1 }
  0xf7   : > { %396 = vst.msk [vmem:[%s623_s29 + $0xc] sm:$0xf] %vm392_vm2, %v499_v63  ;;  %v497_v5 = vpack.c.bf16 %v353_v4, %v353_v4  ;;  %v357_v6 = vsel %vm317_vm9, %v301_v34, %v483_v3 }
  0xf8   : > { %400 = vst.msk [vmem:[%s623_s29 + $0x1c] sm:$0xf] %vm392_vm2, %v503_v2  ;;  %v501_v7 = vpack.c.bf16 %v357_v6, %v357_v6 }
  0xf9   : > { %394 = vst.msk [vmem:[%s623_s29 + $0x4] sm:$0xf] %vm392_vm2, %v497_v5 }
  0xfa   : > { %398 = vst.msk [vmem:[%s623_s29 + $0x14] sm:$0xf] %vm392_vm2, %v501_v7 }
  0xfb PF: > { %s13_s12 = sadd.s32 1, %s568_s12  }
  0xfc   : > { %p10_p4 = scmp.ge.s32.totalorder %s13_s12, 4  }
  0xfe   :  { %12 = sbr.rel (!%p10_p4) target bundleno = 1 (0x1), region = 62 }

// kernel: lidcamnet_forward.21
= control target key start
LH: loop header
LB: loop body
LE: loop exit
PB: predicated region body
PF: predicated region fallthrough
CT: control target
= control target key end

     0   :  { %s924_s12 = smov 0   ;;  %s1048_s0 = inlined_call_operand.vmem [shape: bf16[128,288], index: 0, kind: input, shape index: {}]   ;;  %s1049_s1 = inlined_call_operand.vmem [shape: bf16[288,32], index: 1, kind: input, shape index: {}]   ;;  %s1050_s2 = inlined_call_operand.vmem [shape: f32[1,32], index: 2, kind: input, shape index: {}]   ;;  %s1051_s3 = inlined_call_operand.vmem [shape: bf16[128,32], index: 3, kind: output, shape index: {}]  }
   0x1 LB: > { %s693_s13 = sadd.s32 4294967295, %s902_s12   ;;  %p697_p0 = scmp.ge.s32.totalorder %s902_s12, 1  ;;  %s902_s12 = sphi %s924_s12, %s13_s12  }
   0x2   : > { %p139_p1 = scmp.lt.s32.totalorder %s902_s12, 3 }
   0x4   : > { %p140_p2 = pnand %p697_p0, %p139_p1 }
   0x5   : > { %s698_s16 = sshll.u32 (!%p140_p2), %s693_s13, 3 }
   0x6   : > { %143 = sbr.rel (%p140_p2) target bundleno = 289 (0x121), region = 32  ;;  %p165_p3 = scmp.lt.s32.totalorder (!%p140_p2), %s698_s16, 15 }
   0xb   : > { %v846_v0 = vld [vmem:[%s1049_s1 + $0x78] sm:$0xff]   ;;  %v848_v2 = vld [vmem:[%s1049_s1 + $0x70] sm:$0xff]   ;;  %v850_v4 = vld [vmem:[%s1049_s1 + $0x68] sm:$0xff]   ;;  %s1053_s16 = smov (!%p165_p3, %s698_s16), 15  ;;  %vm405_vm0 = vcmask 261120   ;;  %vm628_vm2 = vcmask 257024  }
   0xc   : > { %v847_v1 = vld [vmem:[%s1049_s1 + $0x38] sm:$0xff]   ;;  %763 = vmatprep.subr.bf16.mxu0 %v846_v0  ;;  %821 = vmatprep.subr.bf16.mxu1 %v846_v0  ;;  %v849_v3 = vld [vmem:[%s1049_s1 + $0x30] sm:$0xff]   ;;  %v851_v5 = vld [vmem:[%s1049_s1 + $0x28] sm:$0xff]   ;;  %s837_s29 = smul.u32 12, %s1053_s16  ;;  %s701_s5 = sshll.u32 %s1053_s16, 2 }
   0xd   : > { %764 = vmatpush3.bf16.msra.mxu0 %v847_v1  ;;  %829 = vmatpush3.bf16.msra.mxu1 %v847_v1  ;;  %v852_v6 = vld [vmem:[%s1049_s1 + $0x60] sm:$0xff]   ;;  %v854_v8 = vld [vmem:[%s1049_s1 + $0x58] sm:$0xff]   ;;  %v856_v10 = vld [vmem:[%s1049_s1 + $0x50] sm:$0xff]   ;;  %s1023_s8 = scalar_lea.vmem %s1051_s3, %s701_s5 }
   0xe   : > { %765 = vmatprep.subr.bf16.mxu0 %v848_v2  ;;  %822 = vmatprep.subr.bf16.mxu1 %v848_v2  ;;  %v853_v7 = vld [vmem:[%s1049_s1 + $0x20] sm:$0xff]   ;;  %s965_s9 = scalar_lea.vmem %s1048_s0, %s837_s29  ;;  %v855_v9 = vld [vmem:[%s1049_s1 + $0x18] sm:$0xff]   ;;  %v857_v13 = vld [vmem:[%s1049_s1 + $0x10] sm:$0xff]  }
   0xf   : > { %v864_v11 = vld [vmem:[%s965_s9 + $0x4] ss:$12 sps:$4 sm:$0xff]   ;;  %v867_v12 = vld [vmem:[%s965_s9 + $0x4c] ss:$12 sps:$4 sm:$0xff]   ;;  %v865_v20 = vld [vmem:[%s965_s9 + $0x48] ss:$12 sps:$4 sm:$0xff]  }
  0x10   : > { %v858_v14 = vld [vmem:[%s1049_s1 + $0x48] sm:$0xff]   ;;  %450 = vmatprep.mubr.bf16.mxu0 %v864_v11  ;;  %474 = vmatprep.mubr.bf16.mxu1 %v867_v12  ;;  %v860_v16 = vld [vmem:[%s1049_s1 + $0x40] sm:$0xff]   ;;  %v878_v28 = vld [vmem:[%s965_s9 + $0x30] ss:$12 sps:$4 sm:$0xff]  }
  0x11   : > { %766 = vmatpush3.bf16.msra.mxu0 %v849_v3  ;;  %830 = vmatpush3.bf16.msra.mxu1 %v849_v3  ;;  %v859_v15 = vld [vmem:[%s1049_s1 + $0x8] sm:$0xff]   ;;  %v861_v17 = vld [vmem:[%s1049_s1] sm:$0xff]   ;;  %v879_v29 = vld [vmem:[%s965_s9 + $0x50] ss:$12 sps:$4 sm:$0xff]  }
  0x12   : > { %767 = vmatprep.subr.bf16.mxu0 %v850_v4  ;;  %823 = vmatprep.subr.bf16.mxu1 %v850_v4  ;;  %v868_v18 = vld [vmem:[%s1049_s1 + $0x88] sm:$0xff]   ;;  %v869_v22 = vld [vmem:[%s1049_s1 + $0x80] sm:$0xff]  }
  0x13   : > { %v862_v19 = vld [vmem:[%s965_s9] ss:$12 sps:$4 sm:$0xff]   ;;  %v870_v21 = vld [vmem:[%s965_s9 + $0x1c] ss:$12 sps:$4 sm:$0xff]   ;;  %v873_v24 = vld [vmem:[%s965_s9 + $0x18] ss:$12 sps:$4 sm:$0xff]  }
  0x14   : > { %v872_v23 = vld [vmem:[%s965_s9 + $0x8] ss:$12 sps:$4 sm:$0xff]   ;;  %v874_v25 = vld [vmem:[%s965_s9 + $0x20] ss:$12 sps:$4 sm:$0xff]   ;;  %v877_v27 = vld [vmem:[%s965_s9 + $0x38] ss:$12 sps:$4 sm:$0xff]  }
  0x15   : > { %768 = vmatpush3.bf16.msra.mxu0 %v851_v5  ;;  %831 = vmatpush3.bf16.msra.mxu1 %v851_v5  ;;  %v875_v26 = vld [vmem:[%s965_s9 + $0x34] ss:$12 sps:$4 sm:$0xff]  }
  0x16   : > { %769 = vmatprep.subr.bf16.mxu0 %v852_v6  ;;  %824 = vmatprep.subr.bf16.mxu1 %v852_v6  ;;  %v702_v39 = vld [vmem:[%s1050_s2] ss:$0 sm:$0xff] }
  0x19   : > { %770 = vmatpush3.bf16.msra.mxu0 %v853_v7  ;;  %832 = vmatpush3.bf16.msra.mxu1 %v853_v7 }
  0x1a   : > { %771 = vmatprep.subr.bf16.mxu0 %v854_v8  ;;  %825 = vmatprep.subr.bf16.mxu1 %v854_v8 }
  0x1d   : > { %772 = vmatpush3.bf16.msra.mxu0 %v855_v9  ;;  %833 = vmatpush3.bf16.msra.mxu1 %v855_v9 }
  0x1e   : > { %773 = vmatprep.subr.bf16.mxu0 %v856_v10  ;;  %826 = vmatprep.subr.bf16.mxu1 %v856_v10 }
  0x21   : > { %774 = vmatpush3.bf16.msra.mxu0 %v857_v13  ;;  %834 = vmatpush3.bf16.msra.mxu1 %v857_v13 }
  0x22   : > { %775 = vmatprep.subr.bf16.mxu0 %v858_v14  ;;  %827 = vmatprep.subr.bf16.mxu1 %v858_v14 }
  0x25   : > { %776 = vmatpush3.bf16.msra.mxu0 %v859_v15  ;;  %835 = vmatpush3.bf16.msra.mxu1 %v859_v15 }
  0x26   : > { %777 = vmatprep.subr.bf16.mxu0 %v860_v16  ;;  %828 = vmatprep.subr.bf16.mxu1 %v860_v16 }
  0x29   : > { %778 = vmatpush3.bf16.msra.mxu0 %v861_v17  ;;  %836 = vmatpush3.bf16.msra.mxu1 %v861_v17 }
  0x2a   : > { %809 = vmatprep.subr.bf16.mxu1 %v868_v18 }
  0x2c   : > { %451 = vmatmul.mubr.bf16.vlgmr.msra.gmra.mxu0 %v862_v19  ;;  %475 = vmatmul.mubr.bf16.vlgmr.msra.gmra.mxu1 %v865_v20 }
  0x2d   : > { %810 = vmatpush3.bf16.msra.mxu1 %v868_v18  ;;  %458 = vmatprep.mubr.bf16.mxu0 %v870_v21 }
  0x2e   : > { %811 = vmatprep.subr.bf16.mxu1 %v869_v22  ;;  %813 = vmatprep.mubr.msk.bf16.mxu1 %vm405_vm0, %v872_v23 }
  0x31   : > { %812 = vmatpush3.bf16.msra.mxu1 %v869_v22 }
  0x34   : > { %459 = vmatmul.mubr.bf16.gmra.mxu0 %v873_v24  ;;  %814 = vmatmul.mubr.msk.bf16.vlgmr.msra.gmra.mxu1 %vm405_vm0, %v874_v25 }
  0x35   : > { %466 = vmatprep.mubr.bf16.mxu0 %v875_v26  ;;  %817 = vmatprep.mubr.msk.bf16.mxu1 %vm405_vm0, %v877_v27 }
  0x3c   : > { %467 = vmatmul.mubr.bf16.gmra.mxu0 %v878_v28  ;;  %818 = vmatmul.mubr.msk.bf16.gmra.mxu1 %vm405_vm0, %v879_v29 }
  0xec   : > { %v779_v30 = vpop.f32.mrf.mxu0  ;;  %v797_v31 = vpop.f32.mrf.mxu1 }
  0xee   : > { %v780_v32 = vpop.f32.mrf.mxu0  ;;  %v798_v33 = vpop.f32.mrf.mxu1 }
  0xef   : > { %v781_v36 = vadd.f32 %v780_v32, %v779_v30  ;;  %v799_v48 = vadd.f32 %v798_v33, %v797_v31 }
  0xf0   : > { %v782_v34 = vpop.f32.mrf.mxu0  ;;  %v800_v35 = vpop.f32.mrf.mxu1 }
  0xf1   : > { %v453_v43 = vadd.f32 %v781_v36, %v702_v39  ;;  %v477_v62 = vadd.f32 %v799_v48, %v702_v39 }
  0xf2   : > { %v783_v37 = vpop.f32.mrf.mxu0  ;;  %v801_v38 = vpop.f32.mrf.mxu1 }
  0xf3   : > { %v784_v42 = vadd.f32 %v783_v37, %v782_v34  ;;  %v802_v60 = vadd.f32 %v801_v38, %v800_v35 }
  0xf4   : > { %v785_v40 = vpop.f32.mrf.mxu0  ;;  %v815_v41 = vpop.f32.mrf.mxu1 }
  0xf5   : > { %v456_v53 = vadd.f32 %v784_v42, %v702_v39  ;;  %v480_v12 = vadd.f32 %v802_v60, %v702_v39 }
  0xf6   : > { %v786_v44 = vpop.f32.mrf.mxu0  ;;  %v517_v45 = vpop.f32.mrf.mxu1 }
  0xf7   : > { %v787_v46 = vadd.f32 %v786_v44, %v785_v40  ;;  %v518_v47 = vadd.f32 %v517_v45, %v453_v43 }
  0xf8   : > { %v788_v49 = vpop.f32.mrf.mxu0  ;;  %v816_v50 = vpop.f32.mrf.mxu1 }
  0xf9   : > { %v461_v51 = vadd.f32 %v787_v46, %v702_v39  ;;  %v556_v52 = vmin.f32 %v518_v47, 0.0  ;;  %vm548_vm1 = vcmp.gt.f32.partialorder %v518_v47, 0.0 }
  0xfa   : > { %v789_v54 = vpop.f32.mrf.mxu0  ;;  %v520_v55 = vpop.f32.mrf.mxu1 }
  0xfb   : > { %v1013_v56 = vadd.f32 %v815_v41, %v461_v51  ;;  %v564_v57 = vmul.f32 1.442695, %v556_v52  ;;  %v790_v58 = vadd.f32 %v789_v54, %v788_v49  ;;  %v1015_v59 = vadd.f32 %v520_v55, %v456_v53 }
  0xfc   : > { %v791_v61 = vpop.f32.mrf.mxu0  ;;  %v819_v63 = vpop.f32.mrf.mxu1 }
  0xfd   : > { %v558_v0 = vmin.f32 %v1013_v56, 0.0  ;;  %880 = vpow2.f32 %v564_v57  ;;  %v464_v1 = vadd.f32 %v790_v58, %v702_v39  ;;  %v557_v2 = vmin.f32 %v1015_v59, 0.0 }
  0xfe   : > { %v542_v3 = vadd.f32 %v819_v63, %v477_v62  ;;  %v792_v4 = vpop.f32.mrf.mxu0  ;;  %v533_v5 = vpop.f32.mrf.mxu1  ;;  %vm550_vm3 = vcmp.gt.f32.partialorder %v1013_v56, 0.0  ;;  %vm549_vm4 = vcmp.gt.f32.partialorder %v1015_v59, 0.0 }
  0xff   : > { %v568_v6 = vmul.f32 1.442695, %v558_v0  ;;  %v529_v7 = vadd.f32 %v816_v50, %v464_v1  ;;  %v793_v8 = vadd.f32 %v792_v4, %v791_v61  ;;  %v566_v9 = vmul.f32 1.442695, %v557_v2 }
 0x100   : > { %v562_v10 = vmin.f32 %v542_v3, 0.0  ;;  %v794_v11 = vpop.f32.mrf.mxu0  ;;  %v820_v13 = vpop.f32.mrf.mxu1  ;;  %vm554_vm5 = vcmp.gt.f32.partialorder %v542_v3, 0.0 }
 0x101   : > { %882 = vpow2.f32 %v568_v6  ;;  %v559_v14 = vmin.f32 %v529_v7, 0.0  ;;  %v469_v15 = vadd.f32 %v793_v8, %v702_v39  ;;  %v545_v17 = vadd.f32 %v820_v13, %v480_v12 }
 0x102   : > { %884 = vpow2.f32 %v566_v9  ;;  %v576_v16 = vmul.f32 1.442695, %v562_v10  ;;  %v795_v18 = vpop.f32.mrf.mxu0  ;;  %v536_v26 = vpop.f32.mrf.mxu1  ;;  %vm551_vm6 = vcmp.gt.f32.partialorder %v529_v7, 0.0 }
 0x103   : > { %v570_v19 = vmul.f32 1.442695, %v559_v14  ;;  %v534_v20 = vadd.f32 %v533_v5, %v469_v15  ;;  %v796_v21 = vadd.f32 %v795_v18, %v794_v11  ;;  %v563_v22 = vmin.f32 %v545_v17, 0.0 }
 0x104   : > { %886 = vpow2.f32 %v576_v16  ;;  %vm555_vm7 = vcmp.gt.f32.partialorder %v545_v17, 0.0 }
 0x105   : > { %888 = vpow2.f32 %v570_v19  ;;  %v560_v23 = vmin.f32 %v534_v20, 0.0  ;;  %v472_v24 = vadd.f32 %v796_v21, %v702_v39  ;;  %v578_v25 = vmul.f32 1.442695, %v563_v22 }
 0x106   : > { %vm552_vm8 = vcmp.gt.f32.partialorder %v534_v20, 0.0 }
 0x107   : > { %v572_v27 = vmul.f32 1.442695, %v560_v23  ;;  %v537_v28 = vadd.f32 %v536_v26, %v472_v24  ;;  %890 = vpow2.f32 %v578_v25 }
 0x109   : > { %892 = vpow2.f32 %v572_v27  ;;  %v561_v29 = vmin.f32 %v537_v28, 0.0  ;;  %vm553_vm9 = vcmp.gt.f32.partialorder %v537_v28, 0.0 }
 0x10a   : > { %v881_v30 = vpop.eup %880 }
 0x10b   : > { %v737_v31 = vadd.f32 -1.0, %v881_v30  ;;  %v574_v32 = vmul.f32 1.442695, %v561_v29 }
 0x10d   : > { %v588_v33 = vsel %vm548_vm1, %v518_v47, %v737_v31  ;;  %894 = vpow2.f32 %v574_v32 }
 0x10e   : > { %v883_v34 = vpop.eup %882  ;;  %v755_v35 = vpack.c.bf16 %v588_v33, %v588_v33 }
 0x10f   : > { %v885_v36 = vpop.eup %884  ;;  %v739_v37 = vadd.f32 -1.0, %v883_v34 }
 0x110   : > { %629 = vst.msk [vmem:[%s1023_s8] sm:$0xf] %vm628_vm2, %v755_v35  ;;  %v738_v38 = vadd.f32 -1.0, %v885_v36 }
 0x111   : > { %v887_v39 = vpop.eup %886  ;;  %v590_v40 = vsel %vm550_vm3, %v1013_v56, %v739_v37 }
 0x112   : > { %v889_v41 = vpop.eup %888  ;;  %v757_v42 = vpack.c.bf16 %v590_v40, %v590_v40  ;;  %v589_v43 = vsel %vm549_vm4, %v1015_v59, %v738_v38  ;;  %v743_v44 = vadd.f32 -1.0, %v887_v39 }
 0x113   : > { %v740_v45 = vadd.f32 -1.0, %v889_v41  ;;  %v756_v46 = vpack.c.bf16 %v589_v43, %v589_v43 }
 0x114   : > { %631 = vst.msk [vmem:[%s1023_s8 + $0x8] sm:$0xf] %vm628_vm2, %v757_v42  ;;  %v594_v47 = vsel %vm554_vm5, %v542_v3, %v743_v44  ;;  %v891_v48 = vpop.eup %890 }
 0x115   : > { %v591_v49 = vsel %vm551_vm6, %v529_v7, %v740_v45  ;;  %630 = vst.msk [vmem:[%s1023_s8 + $0x4] sm:$0xf] %vm628_vm2, %v756_v46  ;;  %v761_v50 = vpack.c.bf16 %v594_v47, %v594_v47  ;;  %v744_v53 = vadd.f32 -1.0, %v891_v48 }
 0x116   : > { %v893_v51 = vpop.eup %892  ;;  %v758_v52 = vpack.c.bf16 %v591_v49, %v591_v49 }
 0x117   : > { %635 = vst.msk [vmem:[%s1023_s8 + $0x18] sm:$0xf] %vm628_vm2, %v761_v50  ;;  %v741_v54 = vadd.f32 -1.0, %v893_v51  ;;  %v595_v55 = vsel %vm555_vm7, %v545_v17, %v744_v53 }
 0x118   : > { %632 = vst.msk [vmem:[%s1023_s8 + $0xc] sm:$0xf] %vm628_vm2, %v758_v52  ;;  %v762_v57 = vpack.c.bf16 %v595_v55, %v595_v55 }
 0x119   : > { %v592_v56 = vsel %vm552_vm8, %v534_v20, %v741_v54 }
 0x11a   : > { %v895_v58 = vpop.eup %894  ;;  %v759_v59 = vpack.c.bf16 %v592_v56, %v592_v56  ;;  %636 = vst.msk [vmem:[%s1023_s8 + $0x1c] sm:$0xf] %vm628_vm2, %v762_v57 }
 0x11b   : > { %v742_v60 = vadd.f32 -1.0, %v895_v58 }
 0x11c   : > { %633 = vst.msk [vmem:[%s1023_s8 + $0x10] sm:$0xf] %vm628_vm2, %v759_v59 }
 0x11d   : > { %v593_v61 = vsel %vm553_vm9, %v537_v28, %v742_v60 }
 0x11e   : > { %v760_v62 = vpack.c.bf16 %v593_v61, %v593_v61 }
 0x120   : > { %634 = vst.msk [vmem:[%s1023_s8 + $0x14] sm:$0xf] %vm628_vm2, %v760_v62 }
 0x121 PF: > { %s13_s12 = sadd.s32 1, %s902_s12  }
 0x122   : > { %p10_p4 = scmp.ge.s32.totalorder %s13_s12, 4  }
 0x124   :  { %12 = sbr.rel (!%p10_p4) target bundleno = 1 (0x1), region = 62 }

// kernel: lidcamnet_forward.22
= control target key start
LH: loop header
LB: loop body
LE: loop exit
PB: predicated region body
PF: predicated region fallthrough
CT: control target
= control target key end

     0   :  { %s804_s12 = smov 0   ;;  %s926_s0 = inlined_call_operand.vmem [shape: bf16[32,512], index: 0, kind: input, shape index: {}]   ;;  %s927_s1 = inlined_call_operand.vmem [shape: bf16[512,64], index: 1, kind: input, shape index: {}]   ;;  %s928_s2 = inlined_call_operand.vmem [shape: f32[1,64], index: 2, kind: input, shape index: {}]   ;;  %s929_s3 = inlined_call_operand.vmem [shape: bf16[32,64], index: 3, kind: output, shape index: {}]  }
   0x1 LB: > { %s626_s13 = sadd.s32 4294967295, %s782_s12   ;;  %p630_p0 = scmp.ge.s32.totalorder %s782_s12, 1  ;;  %s782_s12 = sphi %s804_s12, %s13_s12  }
   0x2   : > { %p139_p1 = scmp.lt.s32.totalorder %s782_s12, 3 }
   0x4   : > { %p140_p2 = pnand %p630_p0, %p139_p1 }
   0x5   : > { %s631_s21 = sshll.u32 (!%p140_p2), %s626_s13, 1 }
   0x6   : > { %143 = sbr.rel (%p140_p2) target bundleno = 274 (0x112), region = 32  ;;  %p165_p3 = scmp.lt.s32.totalorder (!%p140_p2), %s631_s21, 3 }
   0xb   : > { %v734_v0 = vld [vmem:[%s927_s1 + $0x78] sm:$0xff]   ;;  %v738_v4 = vld [vmem:[%s927_s1 + $0x70] sm:$0xff]   ;;  %v742_v8 = vld [vmem:[%s927_s1 + $0x68] sm:$0xff]   ;;  %s931_s21 = smov (!%p165_p3, %s631_s21), 3  ;;  %vm567_vm1 = vcmask 519168  }
   0xc   : > { %v735_v1 = vld [vmem:[%s927_s1 + $0xf8] sm:$0xff]   ;;  %682 = vmatprep.subr.bf16.mxu0 %v734_v0  ;;  %v739_v5 = vld [vmem:[%s927_s1 + $0xf0] sm:$0xff]   ;;  %v743_v9 = vld [vmem:[%s927_s1 + $0xe8] sm:$0xff]   ;;  %s679_s18 = sshll.u32 %s931_s21, 4  ;;  %s635_s7 = sshll.u32 %s931_s21, 2 }
   0xd   : > { %v736_v2 = vld [vmem:[%s927_s1 + $0x38] sm:$0xff]   ;;  %704 = vmatprep.subr.bf16.mxu1 %v735_v1  ;;  %v740_v6 = vld [vmem:[%s927_s1 + $0x30] sm:$0xff]   ;;  %v744_v10 = vld [vmem:[%s927_s1 + $0x28] sm:$0xff]   ;;  %s169_s28 = scalar_lea.vmem %s926_s0, %s679_s18  ;;  %s175_s10 = scalar_lea.vmem %s929_s3, %s635_s7 }
   0xe   : > { %v737_v3 = vld [vmem:[%s927_s1 + $0xb8] sm:$0xff]   ;;  %683 = vmatpush3.bf16.msra.mxu0 %v736_v2  ;;  %v741_v7 = vld [vmem:[%s927_s1 + $0xb0] sm:$0xff]   ;;  %v745_v11 = vld [vmem:[%s927_s1 + $0xa8] sm:$0xff]  }
   0xf   : > { %705 = vmatpush3.bf16.msra.mxu1 %v737_v3  ;;  %684 = vmatprep.subr.bf16.mxu0 %v738_v4  ;;  %v746_v12 = vld [vmem:[%s927_s1 + $0x60] sm:$0xff]   ;;  %v750_v16 = vld [vmem:[%s927_s1 + $0x58] sm:$0xff]   ;;  %v754_v20 = vld [vmem:[%s927_s1 + $0x50] sm:$0xff]  }
  0x10   : > { %706 = vmatprep.subr.bf16.mxu1 %v739_v5  ;;  %v747_v13 = vld [vmem:[%s927_s1 + $0xe0] sm:$0xff]   ;;  %v751_v17 = vld [vmem:[%s927_s1 + $0xd8] sm:$0xff]   ;;  %v755_v21 = vld [vmem:[%s927_s1 + $0xd0] sm:$0xff]  }
  0x11   : > { %v748_v14 = vld [vmem:[%s927_s1 + $0x20] sm:$0xff]   ;;  %v752_v18 = vld [vmem:[%s927_s1 + $0x18] sm:$0xff]   ;;  %v756_v22 = vld [vmem:[%s927_s1 + $0x10] sm:$0xff]  }
  0x12   : > { %685 = vmatpush3.bf16.msra.mxu0 %v740_v6  ;;  %v749_v15 = vld [vmem:[%s927_s1 + $0xa0] sm:$0xff]   ;;  %v753_v19 = vld [vmem:[%s927_s1 + $0x98] sm:$0xff]   ;;  %v757_v23 = vld [vmem:[%s927_s1 + $0x90] sm:$0xff]  }
  0x13   : > { %707 = vmatpush3.bf16.msra.mxu1 %v741_v7  ;;  %686 = vmatprep.subr.bf16.mxu0 %v742_v8  ;;  %v758_v24 = vld [vmem:[%s927_s1 + $0x48] sm:$0xff]   ;;  %v762_v28 = vld [vmem:[%s927_s1 + $0x40] sm:$0xff]  }
  0x14   : > { %708 = vmatprep.subr.bf16.mxu1 %v743_v9  ;;  %v759_v25 = vld [vmem:[%s927_s1 + $0xc8] sm:$0xff]   ;;  %v763_v29 = vld [vmem:[%s927_s1 + $0xc0] sm:$0xff]  }
  0x15   : > { %v760_v26 = vld [vmem:[%s927_s1 + $0x8] sm:$0xff]   ;;  %v764_v30 = vld [vmem:[%s927_s1] sm:$0xff]  }
  0x16   : > { %687 = vmatpush3.bf16.msra.mxu0 %v744_v10  ;;  %v761_v27 = vld [vmem:[%s927_s1 + $0x88] sm:$0xff]   ;;  %v765_v31 = vld [vmem:[%s927_s1 + $0x80] sm:$0xff]  }
  0x17   : > { %709 = vmatpush3.bf16.msra.mxu1 %v745_v11  ;;  %688 = vmatprep.subr.bf16.mxu0 %v746_v12  ;;  %v766_v32 = vld [vmem:[%s169_s28] ss:$16 sps:$4 sm:$0xff]   ;;  %v768_v33 = vld [vmem:[%s169_s28 + $0x4] ss:$16 sps:$4 sm:$0xff]   ;;  %v769_v34 = vld [vmem:[%s169_s28 + $0x8] ss:$16 sps:$4 sm:$0xff]  }
  0x18   : > { %710 = vmatprep.subr.bf16.mxu1 %v747_v13  ;;  %v771_v35 = vld [vmem:[%s169_s28 + $0xc] ss:$16 sps:$4 sm:$0xff]   ;;  %497 = vmatprep.mubr.bf16.mxu0 %v768_v33  ;;  %v636_v38 = vld [vmem:[%s928_s2] ss:$0 sm:$0xff] }
  0x19   : > { %538 = vmatprep.mubr.bf16.mxu1 %v771_v35 }
  0x1a   : > { %689 = vmatpush3.bf16.msra.mxu0 %v748_v14 }
  0x1b   : > { %711 = vmatpush3.bf16.msra.mxu1 %v749_v15  ;;  %690 = vmatprep.subr.bf16.mxu0 %v750_v16 }
  0x1c   : > { %712 = vmatprep.subr.bf16.mxu1 %v751_v17 }
  0x1e   : > { %691 = vmatpush3.bf16.msra.mxu0 %v752_v18 }
  0x1f   : > { %713 = vmatpush3.bf16.msra.mxu1 %v753_v19  ;;  %692 = vmatprep.subr.bf16.mxu0 %v754_v20 }
  0x20   : > { %714 = vmatprep.subr.bf16.mxu1 %v755_v21 }
  0x22   : > { %693 = vmatpush3.bf16.msra.mxu0 %v756_v22 }
  0x23   : > { %715 = vmatpush3.bf16.msra.mxu1 %v757_v23  ;;  %694 = vmatprep.subr.bf16.mxu0 %v758_v24 }
  0x24   : > { %716 = vmatprep.subr.bf16.mxu1 %v759_v25 }
  0x26   : > { %695 = vmatpush3.bf16.msra.mxu0 %v760_v26 }
  0x27   : > { %717 = vmatpush3.bf16.msra.mxu1 %v761_v27  ;;  %696 = vmatprep.subr.bf16.mxu0 %v762_v28 }
  0x28   : > { %718 = vmatprep.subr.bf16.mxu1 %v763_v29 }
  0x2a   : > { %697 = vmatpush3.bf16.msra.mxu0 %v764_v30 }
  0x2b   : > { %719 = vmatpush3.bf16.msra.mxu1 %v765_v31 }
  0x2d   : > { %498 = vmatmul.mubr.bf16.vlgmr.msra.gmra.mxu0 %v766_v32 }
  0x2e   : > { %539 = vmatmul.mubr.bf16.vlgmr.msra.gmra.mxu1 %v769_v34 }
  0xed   : > { %v698_v36 = vpop.f32.mrf.mxu0 }
  0xee   : > { %v720_v37 = vpop.f32.mrf.mxu1 }
  0xef   : > { %v699_v39 = vpop.f32.mrf.mxu0 }
  0xf0   : > { %v700_v40 = vadd.f32 %v699_v39, %v698_v36  ;;  %v721_v41 = vpop.f32.mrf.mxu1 }
  0xf1   : > { %v701_v42 = vpop.f32.mrf.mxu0  ;;  %v722_v44 = vadd.f32 %v721_v41, %v720_v37 }
  0xf2   : > { %v500_v43 = vadd.f32 %v700_v40, %v636_v38  ;;  %v723_v45 = vpop.f32.mrf.mxu1 }
  0xf3   : > { %v702_v46 = vpop.f32.mrf.mxu0 }
  0xf4   : > { %v541_v47 = vadd.f32 %v722_v44, %v500_v43  ;;  %v703_v48 = vadd.f32 %v702_v46, %v701_v42  ;;  %v724_v49 = vpop.f32.mrf.mxu1 }
  0xf5   : > { %v725_v52 = vadd.f32 %v724_v49, %v723_v45 }
  0xf6   : > { %v549_v50 = vmin.f32 %v541_v47, 0.0  ;;  %v503_v51 = vadd.f32 %v703_v48, %v636_v38  ;;  %vm547_vm0 = vcmp.gt.f32.partialorder %v541_v47, 0.0 }
  0xf8   : > { %v551_v53 = vmul.f32 1.442695, %v549_v50  ;;  %v544_v54 = vadd.f32 %v725_v52, %v503_v51 }
  0xfa   : > { %772 = vpow2.f32 %v551_v53  ;;  %v550_v55 = vmin.f32 %v544_v54, 0.0  ;;  %vm548_vm2 = vcmp.gt.f32.partialorder %v544_v54, 0.0 }
  0xfc   : > { %v553_v56 = vmul.f32 1.442695, %v550_v55 }
  0xfe   : > { %774 = vpow2.f32 %v553_v56 }
 0x107   : > { %v773_v57 = vpop.eup %772 }
 0x108   : > { %v673_v58 = vadd.f32 -1.0, %v773_v57 }
 0x10a   : > { %v557_v59 = vsel %vm547_vm0, %v541_v47, %v673_v58 }
 0x10b   : > { %v775_v60 = vpop.eup %774  ;;  %v680_v61 = vpack.c.bf16 %v557_v59, %v557_v59 }
 0x10c   : > { %v674_v62 = vadd.f32 -1.0, %v775_v60 }
 0x10d   : > { %568 = vst.msk [vmem:[%s175_s10] sm:$0xf] %vm567_vm1, %v680_v61 }
 0x10e   : > { %v558_v63 = vsel %vm548_vm2, %v544_v54, %v674_v62 }
 0x10f   : > { %v681_v0 = vpack.c.bf16 %v558_v63, %v558_v63 }
 0x111   : > { %569 = vst.msk [vmem:[%s175_s10 + $0x4] sm:$0xf] %vm567_vm1, %v681_v0 }
 0x112 PF: > { %s13_s12 = sadd.s32 1, %s782_s12  }
 0x113   : > { %p10_p4 = scmp.ge.s32.totalorder %s13_s12, 4  }
 0x115   :  { %12 = sbr.rel (!%p10_p4) target bundleno = 1 (0x1), region = 62 }

// kernel: lidcamnet_forward.23
= control target key start
LH: loop header
LB: loop body
LE: loop exit
PB: predicated region body
PF: predicated region fallthrough
CT: control target
= control target key end

     0   :  { %s919_s12 = smov 0   ;;  %s1060_s0 = inlined_call_operand.vmem [shape: bf16[32,576], index: 0, kind: input, shape index: {}]   ;;  %s1061_s1 = inlined_call_operand.vmem [shape: bf16[576,64], index: 1, kind: input, shape index: {}]   ;;  %s1062_s2 = inlined_call_operand.vmem [shape: f32[1,64], index: 2, kind: input, shape index: {}]   ;;  %s1063_s3 = inlined_call_operand.vmem [shape: bf16[32,64], index: 3, kind: output, shape index: {}]  }
   0x1 LB: > { %s710_s13 = sadd.s32 4294967295, %s895_s12   ;;  %p714_p0 = scmp.ge.s32.totalorder %s895_s12, 1  ;;  %s895_s12 = sphi %s919_s12, %s13_s12  }
   0x2   : > { %p139_p1 = scmp.lt.s32.totalorder %s895_s12, 3 }
   0x4   : > { %p140_p2 = pnand %p714_p0, %p139_p1 }
   0x5   : > { %s715_s17 = sshll.u32 (!%p140_p2), %s710_s13, 1 }
   0x6   : > { %143 = sbr.rel (%p140_p2) target bundleno = 283 (0x11b), region = 32  ;;  %p165_p3 = scmp.lt.s32.totalorder (!%p140_p2), %s715_s17, 3 }
   0xb   : > { %v842_v0 = vld [vmem:[%s1061_s1 + $0x78] sm:$0xff]   ;;  %v846_v4 = vld [vmem:[%s1061_s1 + $0x70] sm:$0xff]   ;;  %v850_v8 = vld [vmem:[%s1061_s1 + $0x68] sm:$0xff]   ;;  %s1065_s17 = smov (!%p165_p3, %s715_s17), 3  ;;  %v897_v33 = vmov 0.0   ;;  %vm898_vm0 = vmmov 0  }
   0xc   : > { %v843_v1 = vld [vmem:[%s1061_s1 + $0x38] sm:$0xff]   ;;  %770 = vmatprep.subr.bf16.mxu0 %v842_v0  ;;  %v847_v5 = vld [vmem:[%s1061_s1 + $0x30] sm:$0xff]   ;;  %v851_v9 = vld [vmem:[%s1061_s1 + $0x28] sm:$0xff]   ;;  %s831_s14 = smul.u32 20, %s1065_s17  ;;  %vm504_vm1 = vcmask 523264   ;;  %s718_s18 = sshll.u32 %s1065_s17, 2 }
   0xd   : > { %v844_v2 = vld [vmem:[%s1061_s1 + $0xf8] sm:$0xff]   ;;  %771 = vmatpush3.bf16.msra.mxu0 %v843_v1  ;;  %v848_v6 = vld [vmem:[%s1061_s1 + $0xf0] sm:$0xff]   ;;  %v852_v10 = vld [vmem:[%s1061_s1 + $0xe8] sm:$0xff]   ;;  %s175_s21 = scalar_lea.vmem %s1063_s3, %s718_s18  ;;  %vm651_vm3 = vcmask 519168  }
   0xe   : > { %v845_v3 = vld [vmem:[%s1061_s1 + $0xb8] sm:$0xff]   ;;  %792 = vmatprep.subr.bf16.mxu1 %v844_v2  ;;  %772 = vmatprep.subr.bf16.mxu0 %v846_v4  ;;  %v849_v7 = vld [vmem:[%s1061_s1 + $0xb0] sm:$0xff]   ;;  %v853_v11 = vld [vmem:[%s1061_s1 + $0xa8] sm:$0xff]   ;;  %s1022_s13 = scalar_lea.vmem %s1060_s0, %s831_s14 }
   0xf   : > { %793 = vmatpush3.bf16.msra.mxu1 %v845_v3  ;;  %v854_v12 = vld [vmem:[%s1061_s1 + $0x60] sm:$0xff]   ;;  %v858_v16 = vld [vmem:[%s1061_s1 + $0x58] sm:$0xff]   ;;  %v862_v20 = vld [vmem:[%s1061_s1 + $0x50] sm:$0xff]  }
  0x10   : > { %794 = vmatprep.subr.bf16.mxu1 %v848_v6  ;;  %v855_v13 = vld [vmem:[%s1061_s1 + $0x20] sm:$0xff]   ;;  %v859_v17 = vld [vmem:[%s1061_s1 + $0x18] sm:$0xff]   ;;  %v863_v21 = vld [vmem:[%s1061_s1 + $0x10] sm:$0xff]  }
  0x11   : > { %773 = vmatpush3.bf16.msra.mxu0 %v847_v5  ;;  %v856_v14 = vld [vmem:[%s1061_s1 + $0xe0] sm:$0xff]   ;;  %v860_v18 = vld [vmem:[%s1061_s1 + $0xd8] sm:$0xff]   ;;  %v864_v22 = vld [vmem:[%s1061_s1 + $0xd0] sm:$0xff]  }
  0x12   : > { %774 = vmatprep.subr.bf16.mxu0 %v850_v8  ;;  %v857_v15 = vld [vmem:[%s1061_s1 + $0xa0] sm:$0xff]   ;;  %v861_v19 = vld [vmem:[%s1061_s1 + $0x98] sm:$0xff]   ;;  %v865_v23 = vld [vmem:[%s1061_s1 + $0x90] sm:$0xff]  }
  0x13   : > { %795 = vmatpush3.bf16.msra.mxu1 %v849_v7  ;;  %v866_v24 = vld [vmem:[%s1061_s1 + $0x48] sm:$0xff]   ;;  %v870_v28 = vld [vmem:[%s1061_s1 + $0x40] sm:$0xff]   ;;  %v880_v37 = vld [vmem:[%s1061_s1 + $0x118] sm:$0xff]  }
  0x14   : > { %796 = vmatprep.subr.bf16.mxu1 %v852_v10  ;;  %v867_v25 = vld [vmem:[%s1061_s1 + $0x8] sm:$0xff]   ;;  %v871_v29 = vld [vmem:[%s1061_s1] sm:$0xff]   ;;  %v881_v38 = vld [vmem:[%s1061_s1 + $0x110] sm:$0xff]  }
  0x15   : > { %775 = vmatpush3.bf16.msra.mxu0 %v851_v9  ;;  %v868_v26 = vld [vmem:[%s1061_s1 + $0xc8] sm:$0xff]   ;;  %v872_v30 = vld [vmem:[%s1061_s1 + $0xc0] sm:$0xff]  }
  0x16   : > { %776 = vmatprep.subr.bf16.mxu0 %v854_v12  ;;  %v869_v27 = vld [vmem:[%s1061_s1 + $0x88] sm:$0xff]   ;;  %v873_v31 = vld [vmem:[%s1022_s13] ss:$20 sps:$4 sm:$0xff]   ;;  %v875_v32 = vld [vmem:[%s1022_s13 + $0x4] ss:$20 sps:$4 sm:$0xff]  }
  0x17   : > { %797 = vmatpush3.bf16.msra.mxu1 %v853_v11  ;;  %v876_v34 = vld [vmem:[%s1061_s1 + $0x80] sm:$0xff]   ;;  %540 = vmatprep.mubr.bf16.mxu0 %v875_v32  ;;  %v877_v35 = vld [vmem:[%s1022_s13 + $0x8] ss:$20 sps:$4 sm:$0xff]  }
  0x18   : > { %798 = vmatprep.subr.bf16.mxu1 %v856_v14  ;;  %v879_v36 = vld [vmem:[%s1022_s13 + $0xc] ss:$20 sps:$4 sm:$0xff]   ;;  %v884_v41 = vld [vmem:[%s1022_s13 + $0x10] ss:$20 sps:$4 sm:$0xff]  }
  0x19   : > { %777 = vmatpush3.bf16.msra.mxu0 %v855_v13  ;;  %581 = vmatprep.mubr.bf16.mxu1 %v879_v36  ;;  %v882_v39 = vld [vmem:[%s1061_s1 + $0x108] sm:$0xff]   ;;  %v883_v40 = vld [vmem:[%s1061_s1 + $0x100] sm:$0xff]  }
  0x1a   : > { %778 = vmatprep.subr.bf16.mxu0 %v858_v16  ;;  %v719_v48 = vld [vmem:[%s1062_s2] ss:$0 sm:$0xff] }
  0x1b   : > { %799 = vmatpush3.bf16.msra.mxu1 %v857_v15 }
  0x1c   : > { %800 = vmatprep.subr.bf16.mxu1 %v860_v18 }
  0x1d   : > { %779 = vmatpush3.bf16.msra.mxu0 %v859_v17 }
  0x1e   : > { %780 = vmatprep.subr.bf16.mxu0 %v862_v20 }
  0x1f   : > { %801 = vmatpush3.bf16.msra.mxu1 %v861_v19 }
  0x20   : > { %802 = vmatprep.subr.bf16.mxu1 %v864_v22 }
  0x21   : > { %781 = vmatpush3.bf16.msra.mxu0 %v863_v21 }
  0x22   : > { %782 = vmatprep.subr.bf16.mxu0 %v866_v24 }
  0x23   : > { %803 = vmatpush3.bf16.msra.mxu1 %v865_v23 }
  0x24   : > { %804 = vmatprep.subr.bf16.mxu1 %v868_v26 }
  0x25   : > { %783 = vmatpush3.bf16.msra.mxu0 %v867_v25 }
  0x26   : > { %784 = vmatprep.subr.bf16.mxu0 %v870_v28 }
  0x27   : > { %805 = vmatpush3.bf16.msra.mxu1 %v869_v27 }
  0x28   : > { %806 = vmatprep.subr.bf16.mxu1 %v872_v30 }
  0x29   : > { %785 = vmatpush3.bf16.msra.mxu0 %v871_v29 }
  0x2a   : > { %819 = vmatprep.subr.bf16.mxu0 %v897_v33 }
  0x2b   : > { %807 = vmatpush3.bf16.msra.mxu1 %v876_v34 }
  0x2c   : > { %541 = vmatmul.mubr.bf16.vlgmr.msra.gmra.mxu0 %v873_v31 }
  0x2d   : > { %827 = vmatprep.mubr.msk.bf16.mxu0 %vm898_vm0, %v897_v33  ;;  %820 = vmatpush3.bf16.msra.mxu0 %v880_v37 }
  0x2e   : > { %582 = vmatmul.mubr.bf16.vlgmr.msra.gmra.mxu1 %v877_v35  ;;  %821 = vmatprep.subr.bf16.mxu0 %v897_v33 }
  0x31   : > { %822 = vmatpush3.bf16.msra.mxu0 %v881_v38 }
  0x32   : > { %823 = vmatprep.subr.bf16.mxu0 %v897_v33 }
  0x35   : > { %824 = vmatpush3.bf16.msra.mxu0 %v882_v39 }
  0x36   : > { %825 = vmatprep.subr.bf16.mxu0 %v897_v33 }
  0x39   : > { %826 = vmatpush3.bf16.msra.mxu0 %v883_v40 }
  0x3c   : > { %828 = vmatmul.mubr.msk.bf16.vlgmr.msra.gmra.mxu0 %vm504_vm1, %v884_v41 }
  0xec   : > { %v786_v42 = vpop.f32.mrf.mxu0 }
  0xee   : > { %v787_v43 = vpop.f32.mrf.mxu0  ;;  %v808_v44 = vpop.f32.mrf.mxu1 }
  0xef   : > { %v788_v47 = vadd.f32 %v787_v43, %v786_v42 }
  0xf0   : > { %v789_v45 = vpop.f32.mrf.mxu0  ;;  %v809_v46 = vpop.f32.mrf.mxu1 }
  0xf1   : > { %v543_v51 = vadd.f32 %v788_v47, %v719_v48  ;;  %v810_v52 = vadd.f32 %v809_v46, %v808_v44 }
  0xf2   : > { %v790_v49 = vpop.f32.mrf.mxu0  ;;  %v811_v50 = vpop.f32.mrf.mxu1 }
  0xf3   : > { %v791_v53 = vadd.f32 %v790_v49, %v789_v45  ;;  %v584_v57 = vadd.f32 %v810_v52, %v543_v51 }
  0xf4   : > { %v812_v54 = vpop.f32.mrf.mxu1 }
  0xf5   : > { %v546_v55 = vadd.f32 %v791_v53, %v719_v48  ;;  %v813_v56 = vadd.f32 %v812_v54, %v811_v50 }
  0xf7   : > { %v587_v62 = vadd.f32 %v813_v56, %v546_v55 }
  0xfc   : > { %v624_v58 = vpop.f32.mrf.mxu0 }
  0xfd   : > { %v625_v59 = vadd.f32 %v624_v58, %v584_v57 }
  0xfe   : > { %v829_v60 = vpop.f32.mrf.mxu0 }
  0xff   : > { %v633_v61 = vmin.f32 %v625_v59, 0.0  ;;  %vm631_vm2 = vcmp.gt.f32.partialorder %v625_v59, 0.0 }
 0x100   : > { %v627_v63 = vpop.f32.mrf.mxu0 }
 0x101   : > { %v635_v0 = vmul.f32 1.442695, %v633_v61  ;;  %v628_v1 = vadd.f32 %v627_v63, %v587_v62 }
 0x102   : > { %v830_v2 = vpop.f32.mrf.mxu0 }
 0x103   : > { %885 = vpow2.f32 %v635_v0  ;;  %v634_v3 = vmin.f32 %v628_v1, 0.0  ;;  %vm632_vm4 = vcmp.gt.f32.partialorder %v628_v1, 0.0 }
 0x105   : > { %v637_v4 = vmul.f32 1.442695, %v634_v3 }
 0x107   : > { %887 = vpow2.f32 %v637_v4 }
 0x110   : > { %v886_v5 = vpop.eup %885 }
 0x111   : > { %v762_v6 = vadd.f32 -1.0, %v886_v5 }
 0x113   : > { %v641_v7 = vsel %vm631_vm2, %v625_v59, %v762_v6 }
 0x114   : > { %v888_v8 = vpop.eup %887  ;;  %v768_v9 = vpack.c.bf16 %v641_v7, %v641_v7 }
 0x115   : > { %v763_v10 = vadd.f32 -1.0, %v888_v8 }
 0x116   : > { %652 = vst.msk [vmem:[%s175_s21] sm:$0xf] %vm651_vm3, %v768_v9 }
 0x117   : > { %v642_v11 = vsel %vm632_vm4, %v628_v1, %v763_v10 }
 0x118   : > { %v769_v12 = vpack.c.bf16 %v642_v11, %v642_v11 }
 0x11a   : > { %653 = vst.msk [vmem:[%s175_s21 + $0x4] sm:$0xf] %vm651_vm3, %v769_v12 }
 0x11b PF: > { %s13_s12 = sadd.s32 1, %s895_s12  }
 0x11c   : > { %p10_p4 = scmp.ge.s32.totalorder %s13_s12, 4  }
 0x11e   :  { %12 = sbr.rel (!%p10_p4) target bundleno = 1 (0x1), region = 62 }

// kernel: lidcamnet_forward.24
= control target key start
LH: loop header
LB: loop body
LE: loop exit
PB: predicated region body
PF: predicated region fallthrough
CT: control target
= control target key end

     0   :  { %s1254_s1 = inlined_call_operand.vmem [shape: bf16[1024,128], index: 1, kind: input, shape index: {}]   ;;  %s1255_s0 = inlined_call_operand.vmem [shape: bf16[16,1024], index: 0, kind: input, shape index: {}]   ;;  %s1256_s2 = inlined_call_operand.vmem [shape: f32[1,128], index: 2, kind: input, shape index: {}]   ;;  %s1257_s3 = inlined_call_operand.vmem [shape: bf16[16,128], index: 3, kind: output, shape index: {}]  }
   0x1   :  { %v944_v0 = vld [vmem:[%s1254_s1 + $0x78] sm:$0xff]   ;;  %v948_v4 = vld [vmem:[%s1254_s1 + $0x70] sm:$0xff]   ;;  %v952_v8 = vld [vmem:[%s1254_s1 + $0x68] sm:$0xff]  }
   0x2   :  { %v945_v1 = vld [vmem:[%s1254_s1 + $0xf8] sm:$0xff]   ;;  %856 = vmatprep.subr.bf16.mxu0 %v944_v0  ;;  %v949_v5 = vld [vmem:[%s1254_s1 + $0xf0] sm:$0xff]   ;;  %v953_v9 = vld [vmem:[%s1254_s1 + $0xe8] sm:$0xff]  }
   0x3   :  { %v946_v2 = vld [vmem:[%s1254_s1 + $0x38] sm:$0xff]   ;;  %878 = vmatprep.subr.bf16.mxu1 %v945_v1  ;;  %v950_v6 = vld [vmem:[%s1254_s1 + $0x30] sm:$0xff]   ;;  %v954_v10 = vld [vmem:[%s1254_s1 + $0x28] sm:$0xff]  }
   0x4   :  { %v947_v3 = vld [vmem:[%s1254_s1 + $0xb8] sm:$0xff]   ;;  %857 = vmatpush3.bf16.msra.mxu0 %v946_v2  ;;  %v951_v7 = vld [vmem:[%s1254_s1 + $0xb0] sm:$0xff]   ;;  %v955_v11 = vld [vmem:[%s1254_s1 + $0xa8] sm:$0xff]  }
   0x5   :  { %879 = vmatpush3.bf16.msra.mxu1 %v947_v3  ;;  %858 = vmatprep.subr.bf16.mxu0 %v948_v4  ;;  %v956_v12 = vld [vmem:[%s1254_s1 + $0x60] sm:$0xff]   ;;  %v960_v16 = vld [vmem:[%s1254_s1 + $0x58] sm:$0xff]   ;;  %v964_v20 = vld [vmem:[%s1254_s1 + $0x50] sm:$0xff]  }
   0x6   :  { %880 = vmatprep.subr.bf16.mxu1 %v949_v5  ;;  %v957_v13 = vld [vmem:[%s1254_s1 + $0xe0] sm:$0xff]   ;;  %v961_v17 = vld [vmem:[%s1254_s1 + $0xd8] sm:$0xff]   ;;  %v965_v21 = vld [vmem:[%s1254_s1 + $0xd0] sm:$0xff]  }
   0x7   :  { %v958_v14 = vld [vmem:[%s1254_s1 + $0x20] sm:$0xff]   ;;  %v962_v18 = vld [vmem:[%s1254_s1 + $0x18] sm:$0xff]   ;;  %v966_v22 = vld [vmem:[%s1254_s1 + $0x10] sm:$0xff]  }
   0x8   :  { %859 = vmatpush3.bf16.msra.mxu0 %v950_v6  ;;  %v959_v15 = vld [vmem:[%s1254_s1 + $0xa0] sm:$0xff]   ;;  %v963_v19 = vld [vmem:[%s1254_s1 + $0x98] sm:$0xff]   ;;  %v967_v23 = vld [vmem:[%s1254_s1 + $0x90] sm:$0xff]  }
   0x9   :  { %881 = vmatpush3.bf16.msra.mxu1 %v951_v7  ;;  %860 = vmatprep.subr.bf16.mxu0 %v952_v8  ;;  %v968_v24 = vld [vmem:[%s1254_s1 + $0x48] sm:$0xff]   ;;  %v972_v28 = vld [vmem:[%s1254_s1 + $0x40] sm:$0xff]   ;;  %v976_v40 = vld [vmem:[%s1254_s1 + $0x178] sm:$0xff]  }
   0xa   :  { %882 = vmatprep.subr.bf16.mxu1 %v953_v9  ;;  %v969_v25 = vld [vmem:[%s1254_s1 + $0xc8] sm:$0xff]   ;;  %v973_v29 = vld [vmem:[%s1254_s1 + $0xc0] sm:$0xff]   ;;  %v977_v41 = vld [vmem:[%s1254_s1 + $0x1f8] sm:$0xff]  }
   0xb   :  { %v970_v26 = vld [vmem:[%s1254_s1 + $0x8] sm:$0xff]   ;;  %v974_v30 = vld [vmem:[%s1254_s1] sm:$0xff]   ;;  %v978_v42 = vld [vmem:[%s1254_s1 + $0x138] sm:$0xff]  }
   0xc   :  { %861 = vmatpush3.bf16.msra.mxu0 %v954_v10  ;;  %v971_v27 = vld [vmem:[%s1254_s1 + $0x88] sm:$0xff]   ;;  %v975_v31 = vld [vmem:[%s1254_s1 + $0x80] sm:$0xff]   ;;  %v979_v43 = vld [vmem:[%s1254_s1 + $0x1b8] sm:$0xff]  }
   0xd   :  { %883 = vmatpush3.bf16.msra.mxu1 %v955_v11  ;;  %862 = vmatprep.subr.bf16.mxu0 %v956_v12  ;;  %v15_v32 = vld [vmem:[%s1255_s0] sm:$0xff]  ;;  %v16_v34 = vld [vmem:[%s1255_s0 + $0x8] sm:$0xff]  ;;  %v980_v44 = vld [vmem:[%s1254_s1 + $0x170] sm:$0xff]  }
   0xe   :  { %884 = vmatprep.subr.bf16.mxu1 %v957_v13  ;;  %v19_v33 = vld [vmem:[%s1255_s0 + $0x20] sm:$0xff]  ;;  %v20_v37 = vld [vmem:[%s1255_s0 + $0x28] sm:$0xff]  ;;  %v981_v45 = vld [vmem:[%s1254_s1 + $0x1f0] sm:$0xff]  }
   0xf   :  { %v773_v35 = vcombine.low %v15_v32, %v19_v33  ;;  %v774_v36 = vcombine.high %v15_v32, %v19_v33  ;;  %v775_v38 = vcombine.low %v16_v34, %v20_v37  ;;  %v776_v39 = vcombine.high %v16_v34, %v20_v37  ;;  %v982_v46 = vld [vmem:[%s1254_s1 + $0x130] sm:$0xff]   ;;  %v984_v48 = vld [vmem:[%s1254_s1 + $0x168] sm:$0xff]   ;;  %v988_v52 = vld [vmem:[%s1254_s1 + $0x160] sm:$0xff]  }
  0x10   :  { %863 = vmatpush3.bf16.msra.mxu0 %v958_v14  ;;  %v983_v47 = vld [vmem:[%s1254_s1 + $0x1b0] sm:$0xff]   ;;  %v985_v49 = vld [vmem:[%s1254_s1 + $0x1e8] sm:$0xff]   ;;  %v989_v53 = vld [vmem:[%s1254_s1 + $0x1e0] sm:$0xff]  }
  0x11   :  { %885 = vmatpush3.bf16.msra.mxu1 %v959_v15  ;;  %864 = vmatprep.subr.bf16.mxu0 %v960_v16  ;;  %v986_v50 = vld [vmem:[%s1254_s1 + $0x128] sm:$0xff]   ;;  %v990_v54 = vld [vmem:[%s1254_s1 + $0x120] sm:$0xff]   ;;  %v992_v56 = vld [vmem:[%s1254_s1 + $0x158] sm:$0xff]  }
  0x12   :  { %886 = vmatprep.subr.bf16.mxu1 %v961_v17  ;;  %614 = vmatprep.mubr.bf16.mxu0 %v774_v36  ;;  %v987_v51 = vld [vmem:[%s1254_s1 + $0x1a8] sm:$0xff]   ;;  %v991_v55 = vld [vmem:[%s1254_s1 + $0x1a0] sm:$0xff]   ;;  %v993_v57 = vld [vmem:[%s1254_s1 + $0x1d8] sm:$0xff]  }
  0x13   :  { %655 = vmatprep.mubr.bf16.mxu1 %v776_v39  ;;  %v994_v58 = vld [vmem:[%s1254_s1 + $0x118] sm:$0xff]   ;;  %v996_v60 = vld [vmem:[%s1254_s1 + $0x150] sm:$0xff]   ;;  %v1000_v0 = vld [vmem:[%s1254_s1 + $0x148] sm:$0xff]  }
  0x14   :  { %865 = vmatpush3.bf16.msra.mxu0 %v962_v18  ;;  %v995_v59 = vld [vmem:[%s1254_s1 + $0x198] sm:$0xff]   ;;  %v997_v61 = vld [vmem:[%s1254_s1 + $0x1d0] sm:$0xff]   ;;  %v1001_v1 = vld [vmem:[%s1254_s1 + $0x1c8] sm:$0xff]  }
  0x15   :  { %887 = vmatpush3.bf16.msra.mxu1 %v963_v19  ;;  %866 = vmatprep.subr.bf16.mxu0 %v964_v20  ;;  %v998_v62 = vld [vmem:[%s1254_s1 + $0x110] sm:$0xff]   ;;  %v1002_v2 = vld [vmem:[%s1254_s1 + $0x108] sm:$0xff]   ;;  %v1004_v4 = vld [vmem:[%s1254_s1 + $0x140] sm:$0xff]  }
  0x16   :  { %888 = vmatprep.subr.bf16.mxu1 %v965_v21  ;;  %v999_v63 = vld [vmem:[%s1254_s1 + $0x190] sm:$0xff]   ;;  %v1003_v3 = vld [vmem:[%s1254_s1 + $0x188] sm:$0xff]   ;;  %v1005_v5 = vld [vmem:[%s1254_s1 + $0x1c0] sm:$0xff]  }
  0x17   :  { %v1006_v6 = vld [vmem:[%s1254_s1 + $0x100] sm:$0xff]   ;;  %v17_v8 = vld [vmem:[%s1255_s0 + $0x10] sm:$0xff]  ;;  %v18_v12 = vld [vmem:[%s1255_s0 + $0x18] sm:$0xff] }
  0x18   :  { %867 = vmatpush3.bf16.msra.mxu0 %v966_v22  ;;  %v1007_v7 = vld [vmem:[%s1254_s1 + $0x180] sm:$0xff]   ;;  %v21_v9 = vld [vmem:[%s1255_s0 + $0x30] sm:$0xff]  ;;  %v22_v13 = vld [vmem:[%s1255_s0 + $0x38] sm:$0xff] }
  0x19   :  { %889 = vmatpush3.bf16.msra.mxu1 %v967_v23  ;;  %868 = vmatprep.subr.bf16.mxu0 %v968_v24  ;;  %v777_v10 = vcombine.low %v17_v8, %v21_v9  ;;  %v778_v11 = vcombine.high %v17_v8, %v21_v9  ;;  %v779_v14 = vcombine.low %v18_v12, %v22_v13  ;;  %v772_v23 = vld [vmem:[%s1256_s2] ss:$0 sm:$0xff] }
  0x1a   :  { %890 = vmatprep.subr.bf16.mxu1 %v969_v25  ;;  %v780_v15 = vcombine.high %v18_v12, %v22_v13 }
  0x1c   :  { %869 = vmatpush3.bf16.msra.mxu0 %v970_v26 }
  0x1d   :  { %891 = vmatpush3.bf16.msra.mxu1 %v971_v27  ;;  %870 = vmatprep.subr.bf16.mxu0 %v972_v28 }
  0x1e   :  { %892 = vmatprep.subr.bf16.mxu1 %v973_v29 }
  0x20   :  { %871 = vmatpush3.bf16.msra.mxu0 %v974_v30 }
  0x21   :  { %893 = vmatpush3.bf16.msra.mxu1 %v975_v31  ;;  %900 = vmatprep.subr.bf16.mxu0 %v976_v40 }
  0x22   :  { %922 = vmatprep.subr.bf16.mxu1 %v977_v41 }
  0x23   :  { %615 = vmatmul.mubr.bf16.vlgmr.msra.gmra.mxu0 %v773_v35 }
  0x24   :  { %656 = vmatmul.mubr.bf16.vlgmr.msra.gmra.mxu1 %v775_v38  ;;  %901 = vmatpush3.bf16.msra.mxu0 %v978_v42 }
  0x25   :  { %923 = vmatpush3.bf16.msra.mxu1 %v979_v43  ;;  %902 = vmatprep.subr.bf16.mxu0 %v980_v44 }
  0x26   :  { %924 = vmatprep.subr.bf16.mxu1 %v981_v45  ;;  %696 = vmatprep.mubr.bf16.mxu0 %v778_v11 }
  0x27   :  { %737 = vmatprep.mubr.bf16.mxu1 %v780_v15 }
  0x28   :  { %903 = vmatpush3.bf16.msra.mxu0 %v982_v46 }
  0x29   :  { %925 = vmatpush3.bf16.msra.mxu1 %v983_v47  ;;  %904 = vmatprep.subr.bf16.mxu0 %v984_v48 }
  0x2a   :  { %926 = vmatprep.subr.bf16.mxu1 %v985_v49 }
  0x2c   :  { %905 = vmatpush3.bf16.msra.mxu0 %v986_v50 }
  0x2d   :  { %927 = vmatpush3.bf16.msra.mxu1 %v987_v51  ;;  %906 = vmatprep.subr.bf16.mxu0 %v988_v52 }
  0x2e   :  { %928 = vmatprep.subr.bf16.mxu1 %v989_v53 }
  0x30   :  { %907 = vmatpush3.bf16.msra.mxu0 %v990_v54 }
  0x31   :  { %929 = vmatpush3.bf16.msra.mxu1 %v991_v55  ;;  %908 = vmatprep.subr.bf16.mxu0 %v992_v56 }
  0x32   :  { %930 = vmatprep.subr.bf16.mxu1 %v993_v57 }
  0x34   :  { %909 = vmatpush3.bf16.msra.mxu0 %v994_v58 }
  0x35   :  { %931 = vmatpush3.bf16.msra.mxu1 %v995_v59  ;;  %910 = vmatprep.subr.bf16.mxu0 %v996_v60 }
  0x36   :  { %932 = vmatprep.subr.bf16.mxu1 %v997_v61 }
  0x38   :  { %911 = vmatpush3.bf16.msra.mxu0 %v998_v62 }
  0x39   :  { %933 = vmatpush3.bf16.msra.mxu1 %v999_v63  ;;  %912 = vmatprep.subr.bf16.mxu0 %v1000_v0 }
  0x3a   :  { %934 = vmatprep.subr.bf16.mxu1 %v1001_v1 }
  0x3c   :  { %913 = vmatpush3.bf16.msra.mxu0 %v1002_v2 }
  0x3d   :  { %935 = vmatpush3.bf16.msra.mxu1 %v1003_v3  ;;  %914 = vmatprep.subr.bf16.mxu0 %v1004_v4 }
  0x3e   :  { %936 = vmatprep.subr.bf16.mxu1 %v1005_v5 }
  0x40   :  { %915 = vmatpush3.bf16.msra.mxu0 %v1006_v6 }
  0x41   :  { %937 = vmatpush3.bf16.msra.mxu1 %v1007_v7 }
  0x43   :  { %697 = vmatmul.mubr.bf16.vlgmr.msra.gmra.mxu0 %v777_v10 }
  0x44   :  { %738 = vmatmul.mubr.bf16.vlgmr.msra.gmra.mxu1 %v779_v14 }
  0xe3   :  { %v872_v16 = vpop.f32.mrf.mxu0 }
  0xe4   :  { %v894_v17 = vpop.f32.mrf.mxu1 }
  0xe5   :  { %v873_v18 = vpop.f32.mrf.mxu0 }
  0xe6   :  { %v895_v19 = vpop.f32.mrf.mxu1  ;;  %v874_v21 = vadd.f32 %v873_v18, %v872_v16 }
  0xe7   :  { %v875_v20 = vpop.f32.mrf.mxu0  ;;  %v896_v26 = vadd.f32 %v895_v19, %v894_v17 }
  0xe8   :  { %v897_v22 = vpop.f32.mrf.mxu1  ;;  %v617_v25 = vadd.f32 %v874_v21, %v772_v23 }
  0xe9   :  { %v876_v24 = vpop.f32.mrf.mxu0 }
  0xea   :  { %v877_v27 = vadd.f32 %v876_v24, %v875_v20  ;;  %v898_v28 = vpop.f32.mrf.mxu1  ;;  %v658_v32 = vadd.f32 %v896_v26, %v617_v25 }
  0xeb   :  { %v899_v37 = vadd.f32 %v898_v28, %v897_v22 }
  0xec   :  { %v620_v33 = vadd.f32 %v877_v27, %v772_v23 }
  0xee   :  { %v661_v42 = vadd.f32 %v899_v37, %v620_v33 }
 0x103   :  { %v916_v29 = vpop.f32.mrf.mxu0 }
 0x104   :  { %v938_v30 = vpop.f32.mrf.mxu1 }
 0x105   :  { %v917_v31 = vpop.f32.mrf.mxu0 }
 0x106   :  { %v918_v34 = vadd.f32 %v917_v31, %v916_v29  ;;  %v939_v35 = vpop.f32.mrf.mxu1 }
 0x107   :  { %v919_v36 = vpop.f32.mrf.mxu0  ;;  %v940_v39 = vadd.f32 %v939_v35, %v938_v30 }
 0x108   :  { %v699_v38 = vadd.f32 %v918_v34, %v658_v32  ;;  %v941_v40 = vpop.f32.mrf.mxu1 }
 0x109   :  { %v920_v41 = vpop.f32.mrf.mxu0 }
 0x10a   :  { %v740_v43 = vadd.f32 %v940_v39, %v699_v38  ;;  %v921_v44 = vadd.f32 %v920_v41, %v919_v36  ;;  %v942_v45 = vpop.f32.mrf.mxu1 }
 0x10b   :  { %v943_v48 = vadd.f32 %v942_v45, %v941_v40 }
 0x10c   :  { %v748_v46 = vmin.f32 %v740_v43, 0.0  ;;  %v702_v47 = vadd.f32 %v921_v44, %v661_v42  ;;  %vm746_vm0 = vcmp.gt.f32.partialorder %v740_v43, 0.0 }
 0x10e   :  { %v750_v49 = vmul.f32 1.442695, %v748_v46  ;;  %v743_v50 = vadd.f32 %v943_v48, %v702_v47 }
 0x110   :  { %1008 = vpow2.f32 %v750_v49  ;;  %v749_v51 = vmin.f32 %v743_v50, 0.0  ;;  %vm747_vm1 = vcmp.gt.f32.partialorder %v743_v50, 0.0 }
 0x112   :  { %v752_v52 = vmul.f32 1.442695, %v749_v51 }
 0x114   :  { %1010 = vpow2.f32 %v752_v52 }
 0x11d   :  { %v1009_v53 = vpop.eup %1008 }
 0x11e   :  { %v845_v54 = vadd.f32 -1.0, %v1009_v53 }
 0x120   :  { %v756_v57 = vsel %vm746_vm0, %v740_v43, %v845_v54 }
 0x121   :  { %v1011_v55 = vpop.eup %1010 }
 0x122   :  { %v846_v56 = vadd.f32 -1.0, %v1011_v55 }
 0x124   :  { %v757_v58 = vsel %vm747_vm1, %v743_v50, %v846_v56 }
 0x125   :  { %v854_v59 = vpack.c.bf16 %v757_v58, %v756_v57 }
 0x127   :  { %855 = vst [vmem:[%s1257_s3] sm:$0xff] %v854_v59  }

// kernel: lidcamnet_forward.33
= control target key start
LH: loop header
LB: loop body
LE: loop exit
PB: predicated region body
PF: predicated region fallthrough
CT: control target
= control target key end

     0   :  { %v226_v0 = vmov 0.0   ;;  %vm227_vm0 = vmmov 0   ;;  %s281_s1 = inlined_call_operand.vmem [shape: bf16[128,128], index: 1, kind: input, shape index: {}]   ;;  %s282_s0 = inlined_call_operand.vmem [shape: bf16[16,128], index: 0, kind: input, shape index: {}]   ;;  %s283_s2 = inlined_call_operand.vmem [shape: f32[1,128], index: 2, kind: input, shape index: {}]   ;;  %s284_s3 = inlined_call_operand.vmem [shape: bf16[16,128], index: 3, kind: output, shape index: {}]  }
   0x1   :  { %191 = vmatprep.subr.bf16.mxu0 %v226_v0  ;;  %v213_v1 = vld [vmem:[%s281_s1 + $0x38] sm:$0xff]   ;;  %207 = vmatprep.mubr.msk.bf16.mxu0 %vm227_vm0, %v226_v0  ;;  %v214_v2 = vld [vmem:[%s281_s1 + $0x30] sm:$0xff]   ;;  %v215_v3 = vld [vmem:[%s281_s1 + $0x28] sm:$0xff]  }
   0x2   :  { %192 = vmatpush3.bf16.msra.mxu0 %v213_v1  ;;  %v216_v4 = vld [vmem:[%s281_s1 + $0x20] sm:$0xff]   ;;  %v217_v5 = vld [vmem:[%s281_s1 + $0x18] sm:$0xff]   ;;  %v218_v6 = vld [vmem:[%s281_s1 + $0x10] sm:$0xff]  }
   0x3   :  { %193 = vmatprep.subr.bf16.mxu0 %v226_v0  ;;  %v219_v7 = vld [vmem:[%s281_s1 + $0x8] sm:$0xff]   ;;  %v220_v8 = vld [vmem:[%s281_s1] sm:$0xff]  }
   0x4   :  { %v221_v9 = vld [vmem:[%s282_s0] sm:$0xff]  }
   0x5   :  { %v161_v10 = vld [vmem:[%s283_s2] ss:$0 sm:$0xff] }
   0x6   :  { %194 = vmatpush3.bf16.msra.mxu0 %v214_v2 }
   0x7   :  { %195 = vmatprep.subr.bf16.mxu0 %v226_v0 }
   0xa   :  { %196 = vmatpush3.bf16.msra.mxu0 %v215_v3 }
   0xb   :  { %197 = vmatprep.subr.bf16.mxu0 %v226_v0 }
   0xe   :  { %198 = vmatpush3.bf16.msra.mxu0 %v216_v4 }
   0xf   :  { %199 = vmatprep.subr.bf16.mxu0 %v226_v0 }
  0x12   :  { %200 = vmatpush3.bf16.msra.mxu0 %v217_v5 }
  0x13   :  { %201 = vmatprep.subr.bf16.mxu0 %v226_v0 }
  0x16   :  { %202 = vmatpush3.bf16.msra.mxu0 %v218_v6 }
  0x17   :  { %203 = vmatprep.subr.bf16.mxu0 %v226_v0 }
  0x1a   :  { %204 = vmatpush3.bf16.msra.mxu0 %v219_v7 }
  0x1b   :  { %205 = vmatprep.subr.bf16.mxu0 %v226_v0 }
  0x1e   :  { %206 = vmatpush3.bf16.msra.mxu0 %v220_v8 }
  0x21   :  { %208 = vmatmul.mubr.bf16.vlgmr.msra.gmra.mxu0 %v221_v9 }
  0xe1   :  { %v128_v11 = vpop.f32.mrf.mxu0 }
  0xe2   :  { %v129_v12 = vadd.f32 %v161_v10, %v128_v11 }
  0xe3   :  { %v209_v13 = vpop.f32.mrf.mxu0 }
  0xe4   :  { %v137_v14 = vmin.f32 %v129_v12, 0.0  ;;  %vm135_vm1 = vcmp.gt.f32.partialorder %v129_v12, 0.0 }
  0xe5   :  { %v131_v15 = vpop.f32.mrf.mxu0 }
  0xe6   :  { %v139_v16 = vmul.f32 1.442695, %v137_v14  ;;  %v132_v17 = vadd.f32 %v161_v10, %v131_v15 }
  0xe7   :  { %v210_v18 = vpop.f32.mrf.mxu0 }
  0xe8   :  { %222 = vpow2.f32 %v139_v16  ;;  %v138_v19 = vmin.f32 %v132_v17, 0.0  ;;  %vm136_vm2 = vcmp.gt.f32.partialorder %v132_v17, 0.0 }
  0xea   :  { %v141_v20 = vmul.f32 1.442695, %v138_v19 }
  0xec   :  { %224 = vpow2.f32 %v141_v20 }
  0xf5   :  { %v223_v21 = vpop.eup %222 }
  0xf6   :  { %v171_v22 = vadd.f32 -1.0, %v223_v21 }
  0xf8   :  { %v145_v25 = vsel %vm135_vm1, %v129_v12, %v171_v22 }
  0xf9   :  { %v225_v23 = vpop.eup %224 }
  0xfa   :  { %v172_v24 = vadd.f32 -1.0, %v225_v23 }
  0xfc   :  { %v146_v26 = vsel %vm136_vm2, %v132_v17, %v172_v24 }
  0xfd   :  { %v180_v27 = vpack.c.bf16 %v146_v26, %v145_v25 }
  0xff   :  { %181 = vst [vmem:[%s284_s3] sm:$0xff] %v180_v27  }

// kernel: lidcamnet_forward.25
= control target key start
LH: loop header
LB: loop body
LE: loop exit
PB: predicated region body
PF: predicated region fallthrough
CT: control target
= control target key end

     0   :  { %vm1187_vm0 = vmmov 0   ;;  %s1457_s1 = inlined_call_operand.vmem [shape: bf16[1152,128], index: 1, kind: input, shape index: {}]   ;;  %s1458_s0 = inlined_call_operand.vmem [shape: bf16[16,1152], index: 0, kind: input, shape index: {}]   ;;  %s1459_s2 = inlined_call_operand.vmem [shape: f32[1,128], index: 2, kind: input, shape index: {}]   ;;  %s1460_s3 = inlined_call_operand.vmem [shape: bf16[16,128], index: 3, kind: output, shape index: {}]  }
   0x1   :  { %v1097_v0 = vld [vmem:[%s1457_s1 + $0x78] sm:$0xff]   ;;  %v1101_v4 = vld [vmem:[%s1457_s1 + $0x70] sm:$0xff]   ;;  %v1105_v8 = vld [vmem:[%s1457_s1 + $0x68] sm:$0xff]  }
   0x2   :  { %v1098_v1 = vld [vmem:[%s1457_s1 + $0x38] sm:$0xff]   ;;  %978 = vmatprep.subr.bf16.mxu0 %v1097_v0  ;;  %v1102_v5 = vld [vmem:[%s1457_s1 + $0x30] sm:$0xff]   ;;  %v1106_v9 = vld [vmem:[%s1457_s1 + $0x28] sm:$0xff]  }
   0x3   :  { %v1099_v2 = vld [vmem:[%s1457_s1 + $0xf8] sm:$0xff]   ;;  %979 = vmatpush3.bf16.msra.mxu0 %v1098_v1  ;;  %v1103_v6 = vld [vmem:[%s1457_s1 + $0xf0] sm:$0xff]   ;;  %v1107_v10 = vld [vmem:[%s1457_s1 + $0xe8] sm:$0xff]  }
   0x4   :  { %v1100_v3 = vld [vmem:[%s1457_s1 + $0xb8] sm:$0xff]   ;;  %1000 = vmatprep.subr.bf16.mxu1 %v1099_v2  ;;  %980 = vmatprep.subr.bf16.mxu0 %v1101_v4  ;;  %v1104_v7 = vld [vmem:[%s1457_s1 + $0xb0] sm:$0xff]   ;;  %v1108_v11 = vld [vmem:[%s1457_s1 + $0xa8] sm:$0xff]  }
   0x5   :  { %1001 = vmatpush3.bf16.msra.mxu1 %v1100_v3  ;;  %v1109_v12 = vld [vmem:[%s1457_s1 + $0x60] sm:$0xff]   ;;  %v1113_v16 = vld [vmem:[%s1457_s1 + $0x58] sm:$0xff]   ;;  %v1117_v20 = vld [vmem:[%s1457_s1 + $0x50] sm:$0xff]  }
   0x6   :  { %1002 = vmatprep.subr.bf16.mxu1 %v1103_v6  ;;  %v1110_v13 = vld [vmem:[%s1457_s1 + $0x20] sm:$0xff]   ;;  %v1114_v17 = vld [vmem:[%s1457_s1 + $0x18] sm:$0xff]   ;;  %v1118_v21 = vld [vmem:[%s1457_s1 + $0x10] sm:$0xff]   ;;  %v1186_v6 = vmov 0.0  }
   0x7   :  { %981 = vmatpush3.bf16.msra.mxu0 %v1102_v5  ;;  %v1111_v14 = vld [vmem:[%s1457_s1 + $0xe0] sm:$0xff]   ;;  %v1115_v18 = vld [vmem:[%s1457_s1 + $0xd8] sm:$0xff]   ;;  %v1119_v22 = vld [vmem:[%s1457_s1 + $0xd0] sm:$0xff]  }
   0x8   :  { %982 = vmatprep.subr.bf16.mxu0 %v1105_v8  ;;  %v1112_v15 = vld [vmem:[%s1457_s1 + $0xa0] sm:$0xff]   ;;  %v1116_v19 = vld [vmem:[%s1457_s1 + $0x98] sm:$0xff]   ;;  %v1120_v23 = vld [vmem:[%s1457_s1 + $0x90] sm:$0xff]  }
   0x9   :  { %1003 = vmatpush3.bf16.msra.mxu1 %v1104_v7  ;;  %v1121_v24 = vld [vmem:[%s1457_s1 + $0x48] sm:$0xff]   ;;  %v1125_v28 = vld [vmem:[%s1457_s1 + $0x40] sm:$0xff]   ;;  %v1132_v34 = vld [vmem:[%s1457_s1 + $0x178] sm:$0xff]  }
   0xa   :  { %1004 = vmatprep.subr.bf16.mxu1 %v1107_v10  ;;  %v1122_v25 = vld [vmem:[%s1457_s1 + $0x8] sm:$0xff]   ;;  %v1126_v29 = vld [vmem:[%s1457_s1] sm:$0xff]   ;;  %v1136_v37 = vld [vmem:[%s1457_s1 + $0x138] sm:$0xff]  }
   0xb   :  { %983 = vmatpush3.bf16.msra.mxu0 %v1106_v9  ;;  %v1123_v26 = vld [vmem:[%s1457_s1 + $0xc8] sm:$0xff]   ;;  %v1127_v30 = vld [vmem:[%s1457_s1 + $0xc0] sm:$0xff]   ;;  %v1137_v38 = vld [vmem:[%s1457_s1 + $0x1f8] sm:$0xff]  }
   0xc   :  { %984 = vmatprep.subr.bf16.mxu0 %v1109_v12  ;;  %v1124_v27 = vld [vmem:[%s1457_s1 + $0x88] sm:$0xff]   ;;  %v1128_v31 = vld [vmem:[%s1458_s0] ss:$36 sps:$4 sm:$0xff]   ;;  %v1138_v39 = vld [vmem:[%s1457_s1 + $0x1b8] sm:$0xff]  }
   0xd   :  { %1005 = vmatpush3.bf16.msra.mxu1 %v1108_v11  ;;  %v1130_v32 = vld [vmem:[%s1458_s0 + $0x4] ss:$36 sps:$4 sm:$0xff]   ;;  %v1135_v36 = vld [vmem:[%s1458_s0 + $0xc] ss:$36 sps:$4 sm:$0xff]   ;;  %v1151_v52 = vld [vmem:[%s1457_s1 + $0x158] sm:$0xff]  }
   0xe   :  { %1006 = vmatprep.subr.bf16.mxu1 %v1111_v14  ;;  %v1131_v33 = vld [vmem:[%s1457_s1 + $0x80] sm:$0xff]   ;;  %686 = vmatprep.mubr.bf16.mxu0 %v1130_v32  ;;  %v1133_v35 = vld [vmem:[%s1458_s0 + $0x8] ss:$36 sps:$4 sm:$0xff]   ;;  %v1139_v40 = vld [vmem:[%s1457_s1 + $0x170] sm:$0xff]  }
   0xf   :  { %985 = vmatpush3.bf16.msra.mxu0 %v1110_v13  ;;  %727 = vmatprep.mubr.bf16.mxu1 %v1135_v36  ;;  %v1140_v41 = vld [vmem:[%s1457_s1 + $0x130] sm:$0xff]   ;;  %v1143_v44 = vld [vmem:[%s1457_s1 + $0x168] sm:$0xff]   ;;  %v1147_v48 = vld [vmem:[%s1457_s1 + $0x160] sm:$0xff]  }
  0x10   :  { %986 = vmatprep.subr.bf16.mxu0 %v1113_v16  ;;  %v1141_v42 = vld [vmem:[%s1457_s1 + $0x1f0] sm:$0xff]   ;;  %v1144_v45 = vld [vmem:[%s1457_s1 + $0x128] sm:$0xff]   ;;  %v1148_v49 = vld [vmem:[%s1457_s1 + $0x120] sm:$0xff]  }
  0x11   :  { %1007 = vmatpush3.bf16.msra.mxu1 %v1112_v15  ;;  %v1142_v43 = vld [vmem:[%s1457_s1 + $0x1b0] sm:$0xff]   ;;  %v1145_v46 = vld [vmem:[%s1457_s1 + $0x1e8] sm:$0xff]   ;;  %v1149_v50 = vld [vmem:[%s1457_s1 + $0x1e0] sm:$0xff]  }
  0x12   :  { %1008 = vmatprep.subr.bf16.mxu1 %v1115_v18  ;;  %v1146_v47 = vld [vmem:[%s1457_s1 + $0x1a8] sm:$0xff]   ;;  %v1150_v51 = vld [vmem:[%s1457_s1 + $0x1a0] sm:$0xff]   ;;  %v1152_v53 = vld [vmem:[%s1457_s1 + $0x118] sm:$0xff]  }
  0x13   :  { %987 = vmatpush3.bf16.msra.mxu0 %v1114_v17  ;;  %v1153_v54 = vld [vmem:[%s1457_s1 + $0x1d8] sm:$0xff]   ;;  %v1155_v56 = vld [vmem:[%s1457_s1 + $0x150] sm:$0xff]   ;;  %v1159_v60 = vld [vmem:[%s1457_s1 + $0x148] sm:$0xff]  }
  0x14   :  { %988 = vmatprep.subr.bf16.mxu0 %v1117_v20  ;;  %v1154_v55 = vld [vmem:[%s1457_s1 + $0x198] sm:$0xff]   ;;  %v1156_v57 = vld [vmem:[%s1457_s1 + $0x110] sm:$0xff]   ;;  %v1160_v61 = vld [vmem:[%s1457_s1 + $0x108] sm:$0xff]  }
  0x15   :  { %1009 = vmatpush3.bf16.msra.mxu1 %v1116_v19  ;;  %v1157_v58 = vld [vmem:[%s1457_s1 + $0x1d0] sm:$0xff]   ;;  %v1161_v62 = vld [vmem:[%s1457_s1 + $0x1c8] sm:$0xff]   ;;  %v1163_v0 = vld [vmem:[%s1457_s1 + $0x140] sm:$0xff]  }
  0x16   :  { %1010 = vmatprep.subr.bf16.mxu1 %v1119_v22  ;;  %v1158_v59 = vld [vmem:[%s1457_s1 + $0x190] sm:$0xff]   ;;  %v1162_v63 = vld [vmem:[%s1457_s1 + $0x188] sm:$0xff]   ;;  %v1164_v1 = vld [vmem:[%s1457_s1 + $0x100] sm:$0xff]  }
  0x17   :  { %989 = vmatpush3.bf16.msra.mxu0 %v1118_v21  ;;  %v1165_v2 = vld [vmem:[%s1457_s1 + $0x1c0] sm:$0xff]   ;;  %v1166_v3 = vld [vmem:[%s1458_s0 + $0x10] ss:$36 sps:$4 sm:$0xff]   ;;  %v1170_v7 = vld [vmem:[%s1458_s0 + $0x18] ss:$36 sps:$4 sm:$0xff]  }
  0x18   :  { %990 = vmatprep.subr.bf16.mxu0 %v1121_v24  ;;  %v1168_v4 = vld [vmem:[%s1458_s0 + $0x14] ss:$36 sps:$4 sm:$0xff]   ;;  %v1169_v5 = vld [vmem:[%s1457_s1 + $0x180] sm:$0xff]   ;;  %v1175_v11 = vld [vmem:[%s1457_s1 + $0x228] sm:$0xff]  }
  0x19   :  { %1011 = vmatpush3.bf16.msra.mxu1 %v1120_v23  ;;  %v1172_v8 = vld [vmem:[%s1458_s0 + $0x1c] ss:$36 sps:$4 sm:$0xff]   ;;  %v1174_v10 = vld [vmem:[%s1457_s1 + $0x230] sm:$0xff]   ;;  %v1179_v15 = vld [vmem:[%s1457_s1 + $0x208] sm:$0xff]  }
  0x1a   :  { %1012 = vmatprep.subr.bf16.mxu1 %v1123_v26  ;;  %v1173_v9 = vld [vmem:[%s1457_s1 + $0x238] sm:$0xff]   ;;  %v1176_v12 = vld [vmem:[%s1457_s1 + $0x220] sm:$0xff]   ;;  %v1178_v14 = vld [vmem:[%s1457_s1 + $0x210] sm:$0xff]  }
  0x1b   :  { %991 = vmatpush3.bf16.msra.mxu0 %v1122_v25  ;;  %v1177_v13 = vld [vmem:[%s1457_s1 + $0x218] sm:$0xff]   ;;  %v1180_v16 = vld [vmem:[%s1457_s1 + $0x200] sm:$0xff]  }
  0x1c   :  { %992 = vmatprep.subr.bf16.mxu0 %v1125_v28  ;;  %v1181_v17 = vld [vmem:[%s1458_s0 + $0x20] ss:$36 sps:$4 sm:$0xff]  }
  0x1d   :  { %1013 = vmatpush3.bf16.msra.mxu1 %v1124_v27 }
  0x1e   :  { %1014 = vmatprep.subr.bf16.mxu1 %v1127_v30  ;;  %v885_v30 = vld [vmem:[%s1459_s2] ss:$0 sm:$0xff] }
  0x1f   :  { %993 = vmatpush3.bf16.msra.mxu0 %v1126_v29 }
  0x20   :  { %1022 = vmatprep.subr.bf16.mxu0 %v1132_v34 }
  0x21   :  { %1015 = vmatpush3.bf16.msra.mxu1 %v1131_v33 }
  0x22   :  { %687 = vmatmul.mubr.bf16.vlgmr.msra.gmra.mxu0 %v1128_v31  ;;  %1044 = vmatprep.subr.bf16.mxu1 %v1137_v38 }
  0x23   :  { %1023 = vmatpush3.bf16.msra.mxu0 %v1136_v37  ;;  %768 = vmatprep.mubr.bf16.mxu0 %v1168_v4 }
  0x24   :  { %728 = vmatmul.mubr.bf16.vlgmr.msra.gmra.mxu1 %v1133_v35  ;;  %1024 = vmatprep.subr.bf16.mxu0 %v1139_v40 }
  0x25   :  { %1045 = vmatpush3.bf16.msra.mxu1 %v1138_v39  ;;  %809 = vmatprep.mubr.bf16.mxu1 %v1172_v8 }
  0x26   :  { %1046 = vmatprep.subr.bf16.mxu1 %v1141_v42 }
  0x27   :  { %1025 = vmatpush3.bf16.msra.mxu0 %v1140_v41 }
  0x28   :  { %1026 = vmatprep.subr.bf16.mxu0 %v1143_v44 }
  0x29   :  { %1047 = vmatpush3.bf16.msra.mxu1 %v1142_v43 }
  0x2a   :  { %1048 = vmatprep.subr.bf16.mxu1 %v1145_v46 }
  0x2b   :  { %1027 = vmatpush3.bf16.msra.mxu0 %v1144_v45 }
  0x2c   :  { %1028 = vmatprep.subr.bf16.mxu0 %v1147_v48 }
  0x2d   :  { %1049 = vmatpush3.bf16.msra.mxu1 %v1146_v47 }
  0x2e   :  { %1050 = vmatprep.subr.bf16.mxu1 %v1149_v50 }
  0x2f   :  { %1029 = vmatpush3.bf16.msra.mxu0 %v1148_v49 }
  0x30   :  { %1030 = vmatprep.subr.bf16.mxu0 %v1151_v52 }
  0x31   :  { %1051 = vmatpush3.bf16.msra.mxu1 %v1150_v51 }
  0x32   :  { %1052 = vmatprep.subr.bf16.mxu1 %v1153_v54 }
  0x33   :  { %1031 = vmatpush3.bf16.msra.mxu0 %v1152_v53 }
  0x34   :  { %1032 = vmatprep.subr.bf16.mxu0 %v1155_v56 }
  0x35   :  { %1053 = vmatpush3.bf16.msra.mxu1 %v1154_v55 }
  0x36   :  { %1054 = vmatprep.subr.bf16.mxu1 %v1157_v58 }
  0x37   :  { %1033 = vmatpush3.bf16.msra.mxu0 %v1156_v57 }
  0x38   :  { %1034 = vmatprep.subr.bf16.mxu0 %v1159_v60 }
  0x39   :  { %1055 = vmatpush3.bf16.msra.mxu1 %v1158_v59 }
  0x3a   :  { %1056 = vmatprep.subr.bf16.mxu1 %v1161_v62 }
  0x3b   :  { %1035 = vmatpush3.bf16.msra.mxu0 %v1160_v61 }
  0x3c   :  { %1036 = vmatprep.subr.bf16.mxu0 %v1163_v0 }
  0x3d   :  { %1057 = vmatpush3.bf16.msra.mxu1 %v1162_v63 }
  0x3e   :  { %1058 = vmatprep.subr.bf16.mxu1 %v1165_v2 }
  0x3f   :  { %1037 = vmatpush3.bf16.msra.mxu0 %v1164_v1 }
  0x40   :  { %1075 = vmatprep.subr.bf16.mxu0 %v1186_v6 }
  0x41   :  { %1059 = vmatpush3.bf16.msra.mxu1 %v1169_v5 }
  0x42   :  { %769 = vmatmul.mubr.bf16.vlgmr.msra.gmra.mxu0 %v1166_v3 }
  0x43   :  { %1091 = vmatprep.mubr.msk.bf16.mxu0 %vm1187_vm0, %v1186_v6  ;;  %1076 = vmatpush3.bf16.msra.mxu0 %v1173_v9 }
  0x44   :  { %810 = vmatmul.mubr.bf16.vlgmr.msra.gmra.mxu1 %v1170_v7  ;;  %1077 = vmatprep.subr.bf16.mxu0 %v1186_v6 }
  0x47   :  { %1078 = vmatpush3.bf16.msra.mxu0 %v1174_v10 }
  0x48   :  { %1079 = vmatprep.subr.bf16.mxu0 %v1186_v6 }
  0x4b   :  { %1080 = vmatpush3.bf16.msra.mxu0 %v1175_v11 }
  0x4c   :  { %1081 = vmatprep.subr.bf16.mxu0 %v1186_v6 }
  0x4f   :  { %1082 = vmatpush3.bf16.msra.mxu0 %v1176_v12 }
  0x50   :  { %1083 = vmatprep.subr.bf16.mxu0 %v1186_v6 }
  0x53   :  { %1084 = vmatpush3.bf16.msra.mxu0 %v1177_v13 }
  0x54   :  { %1085 = vmatprep.subr.bf16.mxu0 %v1186_v6 }
  0x57   :  { %1086 = vmatpush3.bf16.msra.mxu0 %v1178_v14 }
  0x58   :  { %1087 = vmatprep.subr.bf16.mxu0 %v1186_v6 }
  0x5b   :  { %1088 = vmatpush3.bf16.msra.mxu0 %v1179_v15 }
  0x5c   :  { %1089 = vmatprep.subr.bf16.mxu0 %v1186_v6 }
  0x5f   :  { %1090 = vmatpush3.bf16.msra.mxu0 %v1180_v16 }
  0x62   :  { %1092 = vmatmul.mubr.bf16.vlgmr.msra.gmra.mxu0 %v1181_v17 }
  0xe2   :  { %v994_v18 = vpop.f32.mrf.mxu0 }
  0xe4   :  { %v995_v19 = vpop.f32.mrf.mxu0  ;;  %v1016_v20 = vpop.f32.mrf.mxu1 }
  0xe5   :  { %v996_v29 = vadd.f32 %v995_v19, %v994_v18 }
  0xe6   :  { %v997_v21 = vpop.f32.mrf.mxu0  ;;  %v1017_v22 = vpop.f32.mrf.mxu1 }
  0xe7   :  { %v689_v33 = vadd.f32 %v996_v29, %v885_v30  ;;  %v1018_v34 = vadd.f32 %v1017_v22, %v1016_v20 }
  0xe8   :  { %v998_v23 = vpop.f32.mrf.mxu0  ;;  %v1019_v24 = vpop.f32.mrf.mxu1 }
  0xe9   :  { %v999_v35 = vadd.f32 %v998_v23, %v997_v21  ;;  %v730_v39 = vadd.f32 %v1018_v34, %v689_v33 }
  0xea   :  { %v1020_v26 = vpop.f32.mrf.mxu1 }
  0xeb   :  { %v692_v40 = vadd.f32 %v999_v35, %v885_v30  ;;  %v1021_v41 = vadd.f32 %v1020_v26, %v1019_v24 }
  0xed   :  { %v733_v46 = vadd.f32 %v1021_v41, %v692_v40 }
 0x102   :  { %v1038_v25 = vpop.f32.mrf.mxu0 }
 0x104   :  { %v1039_v27 = vpop.f32.mrf.mxu0  ;;  %v1060_v28 = vpop.f32.mrf.mxu1 }
 0x105   :  { %v1040_v36 = vadd.f32 %v1039_v27, %v1038_v25 }
 0x106   :  { %v1041_v31 = vpop.f32.mrf.mxu0  ;;  %v1061_v32 = vpop.f32.mrf.mxu1 }
 0x107   :  { %v771_v42 = vadd.f32 %v1040_v36, %v730_v39  ;;  %v1062_v43 = vadd.f32 %v1061_v32, %v1060_v28 }
 0x108   :  { %v1042_v37 = vpop.f32.mrf.mxu0  ;;  %v1063_v38 = vpop.f32.mrf.mxu1 }
 0x109   :  { %v1043_v44 = vadd.f32 %v1042_v37, %v1041_v31  ;;  %v812_v49 = vadd.f32 %v1062_v43, %v771_v42 }
 0x10a   :  { %v1064_v45 = vpop.f32.mrf.mxu1 }
 0x10b   :  { %v774_v47 = vadd.f32 %v1043_v44, %v733_v46  ;;  %v1065_v48 = vadd.f32 %v1064_v45, %v1063_v38 }
 0x10d   :  { %v815_v54 = vadd.f32 %v1065_v48, %v774_v47 }
 0x122   :  { %v852_v50 = vpop.f32.mrf.mxu0 }
 0x123   :  { %v853_v51 = vadd.f32 %v852_v50, %v812_v49 }
 0x124   :  { %v1093_v52 = vpop.f32.mrf.mxu0 }
 0x125   :  { %v861_v53 = vmin.f32 %v853_v51, 0.0  ;;  %vm859_vm1 = vcmp.gt.f32.partialorder %v853_v51, 0.0 }
 0x126   :  { %v855_v55 = vpop.f32.mrf.mxu0 }
 0x127   :  { %v863_v56 = vmul.f32 1.442695, %v861_v53  ;;  %v856_v57 = vadd.f32 %v855_v55, %v815_v54 }
 0x128   :  { %v1094_v58 = vpop.f32.mrf.mxu0 }
 0x129   :  { %1182 = vpow2.f32 %v863_v56  ;;  %v862_v59 = vmin.f32 %v856_v57, 0.0  ;;  %vm860_vm2 = vcmp.gt.f32.partialorder %v856_v57, 0.0 }
 0x12b   :  { %v865_v60 = vmul.f32 1.442695, %v862_v59 }
 0x12d   :  { %1184 = vpow2.f32 %v865_v60 }
 0x136   :  { %v1183_v61 = vpop.eup %1182 }
 0x137   :  { %v967_v62 = vadd.f32 -1.0, %v1183_v61 }
 0x139   :  { %v869_v1 = vsel %vm859_vm1, %v853_v51, %v967_v62 }
 0x13a   :  { %v1185_v63 = vpop.eup %1184 }
 0x13b   :  { %v968_v0 = vadd.f32 -1.0, %v1185_v63 }
 0x13d   :  { %v870_v2 = vsel %vm860_vm2, %v856_v57, %v968_v0 }
 0x13e   :  { %v976_v3 = vpack.c.bf16 %v870_v2, %v869_v1 }
 0x140   :  { %977 = vst [vmem:[%s1460_s3] sm:$0xff] %v976_v3  }

// kernel: lidcamnet_forward.34
= control target key start
LH: loop header
LB: loop body
LE: loop exit
PB: predicated region body
PF: predicated region fallthrough
CT: control target
= control target key end

     0   :  { %s1018_s12 = smov 0   ;;  %s1242_s0 = inlined_call_operand.vmem [shape: bf16[32,512], index: 0, kind: input, shape index: {}]   ;;  %s1243_s1 = inlined_call_operand.vmem [shape: bf16[512,256], index: 1, kind: input, shape index: {}]   ;;  %s1244_s2 = inlined_call_operand.vmem [shape: f32[1,256], index: 2, kind: input, shape index: {}]   ;;  %s1245_s3 = inlined_call_operand.vmem [shape: bf16[32,256], index: 3, kind: output, shape index: {}]  }
   0x1 LB: > { %s781_s13 = sadd.s32 4294967295, %s996_s12   ;;  %p785_p0 = scmp.ge.s32.totalorder %s996_s12, 1  ;;  %s996_s12 = sphi %s1018_s12, %s13_s12  }
   0x2   : > { %p139_p1 = scmp.lt.s32.totalorder %s996_s12, 3 }
   0x4   : > { %p140_p2 = pnand %p785_p0, %p139_p1 }
   0x5   : > { %s786_s24 = sshll.u32 (!%p140_p2), %s781_s13, 1 }
   0x6   : > { %143 = sbr.rel (%p140_p2) target bundleno = 303 (0x12f), region = 32  ;;  %p166_p3 = scmp.lt.s32.totalorder (!%p140_p2), %s786_s24, 3 }
   0xb   : > { %v880_v0 = vld [vmem:[%s1243_s1 + $0x74] ss:$8 sps:$4 sm:$0xff]   ;;  %v884_v2 = vld [vmem:[%s1243_s1 + $0x70] ss:$8 sps:$4 sm:$0xff]   ;;  %v886_v4 = vld [vmem:[%s1243_s1 + $0x64] ss:$8 sps:$4 sm:$0xff]  }
   0xc   : > { %v882_v1 = vld [vmem:[%s1243_s1 + $0x174] ss:$8 sps:$4 sm:$0xff]   ;;  %599 = vmatprep.subr.bf16.mxu0 %v880_v0  ;;  %v885_v3 = vld [vmem:[%s1243_s1 + $0x170] ss:$8 sps:$4 sm:$0xff]   ;;  %v888_v5 = vld [vmem:[%s1243_s1 + $0x164] ss:$8 sps:$4 sm:$0xff]  }
   0xd   : > { %642 = vmatprep.subr.bf16.mxu1 %v882_v1  ;;  %600 = vmatpush1.bf16.msra.mxu0 %v884_v2  ;;  %v890_v6 = vld [vmem:[%s1243_s1 + $0x60] ss:$8 sps:$4 sm:$0xff]   ;;  %v892_v8 = vld [vmem:[%s1243_s1 + $0x54] ss:$8 sps:$4 sm:$0xff]   ;;  %v896_v10 = vld [vmem:[%s1243_s1 + $0x50] ss:$8 sps:$4 sm:$0xff]  }
   0xe   : > { %643 = vmatpush1.bf16.msra.mxu1 %v885_v3  ;;  %601 = vmatprep.subr.bf16.mxu0 %v886_v4  ;;  %v891_v7 = vld [vmem:[%s1243_s1 + $0x160] ss:$8 sps:$4 sm:$0xff]   ;;  %v894_v9 = vld [vmem:[%s1243_s1 + $0x154] ss:$8 sps:$4 sm:$0xff]   ;;  %v897_v11 = vld [vmem:[%s1243_s1 + $0x150] ss:$8 sps:$4 sm:$0xff]   ;;  %v249_v4 = vlaneseq }
   0xf   : > { %644 = vmatprep.subr.bf16.mxu1 %v888_v5  ;;  %v898_v12 = vld [vmem:[%s1243_s1 + $0x44] ss:$8 sps:$4 sm:$0xff]   ;;  %v902_v14 = vld [vmem:[%s1243_s1 + $0x40] ss:$8 sps:$4 sm:$0xff]   ;;  %v904_v16 = vld [vmem:[%s1243_s1 + $0x34] ss:$8 sps:$4 sm:$0xff]  }
  0x10   : > { %v900_v13 = vld [vmem:[%s1243_s1 + $0x144] ss:$8 sps:$4 sm:$0xff]   ;;  %v903_v15 = vld [vmem:[%s1243_s1 + $0x140] ss:$8 sps:$4 sm:$0xff]   ;;  %v906_v17 = vld [vmem:[%s1243_s1 + $0x134] ss:$8 sps:$4 sm:$0xff]  }
  0x11   : > { %602 = vmatpush1.bf16.msra.mxu0 %v890_v6  ;;  %v908_v18 = vld [vmem:[%s1243_s1 + $0x30] ss:$8 sps:$4 sm:$0xff]   ;;  %v910_v20 = vld [vmem:[%s1243_s1 + $0x24] ss:$8 sps:$4 sm:$0xff]   ;;  %v914_v22 = vld [vmem:[%s1243_s1 + $0x20] ss:$8 sps:$4 sm:$0xff]  }
  0x12   : > { %645 = vmatpush1.bf16.msra.mxu1 %v891_v7  ;;  %603 = vmatprep.subr.bf16.mxu0 %v892_v8  ;;  %v909_v19 = vld [vmem:[%s1243_s1 + $0x130] ss:$8 sps:$4 sm:$0xff]   ;;  %v912_v21 = vld [vmem:[%s1243_s1 + $0x124] ss:$8 sps:$4 sm:$0xff]   ;;  %v915_v23 = vld [vmem:[%s1243_s1 + $0x120] ss:$8 sps:$4 sm:$0xff]  }
  0x13   : > { %646 = vmatprep.subr.bf16.mxu1 %v894_v9  ;;  %v916_v24 = vld [vmem:[%s1243_s1 + $0x14] ss:$8 sps:$4 sm:$0xff]   ;;  %v920_v26 = vld [vmem:[%s1243_s1 + $0x10] ss:$8 sps:$4 sm:$0xff]   ;;  %v922_v28 = vld [vmem:[%s1243_s1 + $0x4] ss:$8 sps:$4 sm:$0xff]  }
  0x14   : > { %v918_v25 = vld [vmem:[%s1243_s1 + $0x114] ss:$8 sps:$4 sm:$0xff]   ;;  %v921_v27 = vld [vmem:[%s1243_s1 + $0x110] ss:$8 sps:$4 sm:$0xff]   ;;  %v924_v29 = vld [vmem:[%s1243_s1 + $0x104] ss:$8 sps:$4 sm:$0xff]  }
  0x15   : > { %604 = vmatpush1.bf16.msra.mxu0 %v896_v10  ;;  %v926_v30 = vld [vmem:[%s1243_s1] ss:$8 sps:$4 sm:$0xff]   ;;  %v928_v32 = vld [vmem:[%s1243_s1 + $0xf4] ss:$8 sps:$4 sm:$0xff]   ;;  %v932_v34 = vld [vmem:[%s1243_s1 + $0xf0] ss:$8 sps:$4 sm:$0xff]  }
  0x16   : > { %647 = vmatpush1.bf16.msra.mxu1 %v897_v11  ;;  %605 = vmatprep.subr.bf16.mxu0 %v898_v12  ;;  %v927_v31 = vld [vmem:[%s1243_s1 + $0x100] ss:$8 sps:$4 sm:$0xff]   ;;  %v930_v33 = vld [vmem:[%s1243_s1 + $0x1f4] ss:$8 sps:$4 sm:$0xff]   ;;  %v933_v35 = vld [vmem:[%s1243_s1 + $0x1f0] ss:$8 sps:$4 sm:$0xff]  }
  0x17   : > { %648 = vmatprep.subr.bf16.mxu1 %v900_v13  ;;  %v934_v36 = vld [vmem:[%s1243_s1 + $0xe4] ss:$8 sps:$4 sm:$0xff]   ;;  %s1247_s24 = smov (!%p166_p3, %s786_s24), 3  ;;  %v938_v38 = vld [vmem:[%s1243_s1 + $0xe0] ss:$8 sps:$4 sm:$0xff]   ;;  %v250_v5 = vshrl.u32 %v249_v4, 7 }
  0x18   : > { %v936_v37 = vld [vmem:[%s1243_s1 + $0x1e4] ss:$8 sps:$4 sm:$0xff]   ;;  %v939_v39 = vld [vmem:[%s1243_s1 + $0x1e0] ss:$8 sps:$4 sm:$0xff]   ;;  %v940_v40 = vld [vmem:[%s1243_s1 + $0xd4] ss:$8 sps:$4 sm:$0xff]  }
  0x19   : > { %606 = vmatpush1.bf16.msra.mxu0 %v902_v14  ;;  %v942_v41 = vld [vmem:[%s1243_s1 + $0x1d4] ss:$8 sps:$4 sm:$0xff]   ;;  %s868_s23 = sshll.u32 %s1247_s24, 4  ;;  %v944_v42 = vld [vmem:[%s1243_s1 + $0xd0] ss:$8 sps:$4 sm:$0xff]   ;;  %v251_v6 = vsub.s32 0, %v250_v5 }
  0x1a   : > { %649 = vmatpush1.bf16.msra.mxu1 %v903_v15  ;;  %607 = vmatprep.subr.bf16.mxu0 %v904_v16  ;;  %v945_v43 = vld [vmem:[%s1243_s1 + $0x1d0] ss:$8 sps:$4 sm:$0xff]   ;;  %v946_v44 = vld [vmem:[%s1243_s1 + $0xc4] ss:$8 sps:$4 sm:$0xff]   ;;  %s1169_s13 = scalar_lea.vmem %s1242_s0, %s868_s23  ;;  %v950_v46 = vld [vmem:[%s1243_s1 + $0xc0] ss:$8 sps:$4 sm:$0xff]  }
  0x1b   : > { %650 = vmatprep.subr.bf16.mxu1 %v906_v17  ;;  %v948_v45 = vld [vmem:[%s1243_s1 + $0x1c4] ss:$8 sps:$4 sm:$0xff]   ;;  %v951_v48 = vld [vmem:[%s1243_s1 + $0x1c0] ss:$8 sps:$4 sm:$0xff]   ;;  %v952_v49 = vld [vmem:[%s1243_s1 + $0xb4] ss:$8 sps:$4 sm:$0xff]  }
  0x1c   : > { %v978_v47 = vld [vmem:[%s1169_s13 + $0x4] ss:$16 sps:$4 sm:$0xff]   ;;  %v981_v51 = vld [vmem:[%s1169_s13 + $0xc] ss:$16 sps:$4 sm:$0xff]   ;;  %v956_v52 = vld [vmem:[%s1243_s1 + $0xb0] ss:$8 sps:$4 sm:$0xff]  }
  0x1d   : > { %608 = vmatpush1.bf16.msra.mxu0 %v908_v18  ;;  %v954_v50 = vld [vmem:[%s1243_s1 + $0x1b4] ss:$8 sps:$4 sm:$0xff]   ;;  %631 = vmatprep.mubr.bf16.mxu0 %v978_v47  ;;  %v957_v53 = vld [vmem:[%s1243_s1 + $0x1b0] ss:$8 sps:$4 sm:$0xff]   ;;  %v958_v54 = vld [vmem:[%s1243_s1 + $0xa4] ss:$8 sps:$4 sm:$0xff]  }
  0x1e   : > { %651 = vmatpush1.bf16.msra.mxu1 %v909_v19  ;;  %609 = vmatprep.subr.bf16.mxu0 %v910_v20  ;;  %v960_v55 = vld [vmem:[%s1243_s1 + $0x1a4] ss:$8 sps:$4 sm:$0xff]   ;;  %v962_v56 = vld [vmem:[%s1243_s1 + $0xa0] ss:$8 sps:$4 sm:$0xff]   ;;  %v964_v58 = vld [vmem:[%s1243_s1 + $0x94] ss:$8 sps:$4 sm:$0xff]  }
  0x1f   : > { %652 = vmatprep.subr.bf16.mxu1 %v912_v21  ;;  %674 = vmatprep.mubr.bf16.mxu1 %v981_v51  ;;  %v963_v57 = vld [vmem:[%s1243_s1 + $0x1a0] ss:$8 sps:$4 sm:$0xff]   ;;  %v966_v59 = vld [vmem:[%s1243_s1 + $0x194] ss:$8 sps:$4 sm:$0xff]   ;;  %v968_v60 = vld [vmem:[%s1243_s1 + $0x90] ss:$8 sps:$4 sm:$0xff]  }
  0x20   : > { %v969_v61 = vld [vmem:[%s1243_s1 + $0x190] ss:$8 sps:$4 sm:$0xff]   ;;  %v970_v62 = vld [vmem:[%s1243_s1 + $0x84] ss:$8 sps:$4 sm:$0xff]   ;;  %v974_v0 = vld [vmem:[%s1243_s1 + $0x80] ss:$8 sps:$4 sm:$0xff]  }
  0x21   : > { %610 = vmatpush1.bf16.msra.mxu0 %v914_v22  ;;  %v972_v63 = vld [vmem:[%s1243_s1 + $0x184] ss:$8 sps:$4 sm:$0xff]   ;;  %v975_v1 = vld [vmem:[%s1243_s1 + $0x180] ss:$8 sps:$4 sm:$0xff]   ;;  %v255_v8 = vsub.s32 1, %v250_v5 }
  0x22   : > { %653 = vmatpush1.bf16.msra.mxu1 %v915_v23  ;;  %611 = vmatprep.subr.bf16.mxu0 %v916_v24  ;;  %v976_v2 = vld [vmem:[%s1169_s13] ss:$16 sps:$4 sm:$0xff]   ;;  %v979_v3 = vld [vmem:[%s1169_s13 + $0x8] ss:$16 sps:$4 sm:$0xff]   ;;  %s869_s13 = sshll.u32 %s1247_s24, 3 }
  0x23   : > { %654 = vmatprep.subr.bf16.mxu1 %v918_v25  ;;  %v247_v7 = vld [vmem:[%s1244_s2] sm:$0x3]  ;;  %s177_s27 = scalar_lea.vmem %s1245_s3, %s869_s13 }
  0x24   : > { %v252_v9 = vrot.slane %v247_v7, %v251_v6  ;;  %v256_v10 = vrot.slane %v247_v7, %v255_v8 }
  0x25   : > { %612 = vmatpush1.bf16.msra.mxu0 %v920_v26 }
  0x26   : > { %655 = vmatpush1.bf16.msra.mxu1 %v921_v27  ;;  %613 = vmatprep.subr.bf16.mxu0 %v922_v28 }
  0x27   : > { %656 = vmatprep.subr.bf16.mxu1 %v924_v29 }
  0x29   : > { %614 = vmatpush1.bf16.msra.mxu0 %v926_v30 }
  0x2a   : > { %657 = vmatpush1.bf16.msra.mxu1 %v927_v31  ;;  %615 = vmatprep.subr.bf16.mxu0 %v928_v32 }
  0x2b   : > { %658 = vmatprep.subr.bf16.mxu1 %v930_v33 }
  0x2d   : > { %616 = vmatpush2.bf16.msra.mxu0 %v932_v34 }
  0x2e   : > { %659 = vmatpush2.bf16.msra.mxu1 %v933_v35  ;;  %617 = vmatprep.subr.bf16.mxu0 %v934_v36 }
  0x2f   : > { %660 = vmatprep.subr.bf16.mxu1 %v936_v37 }
  0x31   : > { %618 = vmatpush2.bf16.msra.mxu0 %v938_v38 }
  0x32   : > { %661 = vmatpush2.bf16.msra.mxu1 %v939_v39  ;;  %619 = vmatprep.subr.bf16.mxu0 %v940_v40 }
  0x33   : > { %662 = vmatprep.subr.bf16.mxu1 %v942_v41 }
  0x35   : > { %620 = vmatpush2.bf16.msra.mxu0 %v944_v42 }
  0x36   : > { %663 = vmatpush2.bf16.msra.mxu1 %v945_v43  ;;  %621 = vmatprep.subr.bf16.mxu0 %v946_v44 }
  0x37   : > { %664 = vmatprep.subr.bf16.mxu1 %v948_v45 }
  0x39   : > { %622 = vmatpush2.bf16.msra.mxu0 %v950_v46 }
  0x3a   : > { %665 = vmatpush2.bf16.msra.mxu1 %v951_v48  ;;  %623 = vmatprep.subr.bf16.mxu0 %v952_v49 }
  0x3b   : > { %666 = vmatprep.subr.bf16.mxu1 %v954_v50 }
  0x3d   : > { %624 = vmatpush2.bf16.msra.mxu0 %v956_v52 }
  0x3e   : > { %667 = vmatpush2.bf16.msra.mxu1 %v957_v53  ;;  %625 = vmatprep.subr.bf16.mxu0 %v958_v54 }
  0x3f   : > { %668 = vmatprep.subr.bf16.mxu1 %v960_v55 }
  0x41   : > { %626 = vmatpush2.bf16.msra.mxu0 %v962_v56 }
  0x42   : > { %669 = vmatpush2.bf16.msra.mxu1 %v963_v57  ;;  %627 = vmatprep.subr.bf16.mxu0 %v964_v58 }
  0x43   : > { %670 = vmatprep.subr.bf16.mxu1 %v966_v59 }
  0x45   : > { %628 = vmatpush2.bf16.msra.mxu0 %v968_v60 }
  0x46   : > { %671 = vmatpush2.bf16.msra.mxu1 %v969_v61  ;;  %629 = vmatprep.subr.bf16.mxu0 %v970_v62 }
  0x47   : > { %672 = vmatprep.subr.bf16.mxu1 %v972_v63 }
  0x49   : > { %630 = vmatpush2.bf16.msra.mxu0 %v974_v0 }
  0x4a   : > { %673 = vmatpush2.bf16.msra.mxu1 %v975_v1 }
  0x4c   : > { %632 = vmatmul.mubr.bf16.vlgmr.msra.gmra.mxu0 %v976_v2 }
  0x4d   : > { %675 = vmatmul.mubr.bf16.vlgmr.msra.gmra.mxu1 %v979_v3 }
 0x10c   : > { %v633_v11 = vpop.f32.mrf.mxu0 }
 0x10d   : > { %v676_v12 = vpop.f32.mrf.mxu1  ;;  %v634_v13 = vadd.f32 %v633_v11, %v252_v9 }
 0x10e   : > { %v635_v14 = vpop.f32.mrf.mxu0 }
 0x10f   : > { %v678_v15 = vpop.f32.mrf.mxu1  ;;  %v677_v16 = vadd.f32 %v676_v12, %v634_v13  ;;  %v636_v17 = vadd.f32 %v635_v14, %v256_v10 }
 0x110   : > { %v637_v18 = vpop.f32.mrf.mxu0 }
 0x111   : > { %v689_v19 = vmin.f32 %v677_v16, 0.0  ;;  %v679_v20 = vadd.f32 %v678_v15, %v636_v17  ;;  %v638_v21 = vadd.f32 %v637_v18, %v252_v9  ;;  %v680_v22 = vpop.f32.mrf.mxu1  ;;  %vm685_vm0 = vcmp.gt.f32.partialorder %v677_v16, 0.0 }
 0x112   : > { %v639_v23 = vpop.f32.mrf.mxu0 }
 0x113   : > { %v693_v24 = vmul.f32 1.442695, %v689_v19  ;;  %v690_v25 = vmin.f32 %v679_v20, 0.0  ;;  %v681_v26 = vadd.f32 %v680_v22, %v638_v21  ;;  %v640_v27 = vadd.f32 %v639_v23, %v256_v10  ;;  %v682_v30 = vpop.f32.mrf.mxu1 }
 0x114   : > { %vm686_vm1 = vcmp.gt.f32.partialorder %v679_v20, 0.0 }
 0x115   : > { %982 = vpow2.f32 %v693_v24  ;;  %v695_v28 = vmul.f32 1.442695, %v690_v25  ;;  %v691_v29 = vmin.f32 %v681_v26, 0.0  ;;  %v683_v31 = vadd.f32 %v682_v30, %v640_v27 }
 0x116   : > { %vm687_vm2 = vcmp.gt.f32.partialorder %v681_v26, 0.0 }
 0x117   : > { %984 = vpow2.f32 %v695_v28  ;;  %v697_v32 = vmul.f32 1.442695, %v691_v29  ;;  %v692_v33 = vmin.f32 %v683_v31, 0.0  ;;  %vm688_vm3 = vcmp.gt.f32.partialorder %v683_v31, 0.0 }
 0x119   : > { %986 = vpow2.f32 %v697_v32  ;;  %v699_v34 = vmul.f32 1.442695, %v692_v33 }
 0x11b   : > { %988 = vpow2.f32 %v699_v34 }
 0x122   : > { %v983_v35 = vpop.eup %982 }
 0x123   : > { %v860_v36 = vadd.f32 -1.0, %v983_v35 }
 0x124   : > { %v985_v37 = vpop.eup %984 }
 0x125   : > { %v861_v38 = vadd.f32 -1.0, %v985_v37  ;;  %v705_v40 = vsel %vm685_vm0, %v677_v16, %v860_v36 }
 0x126   : > { %v987_v39 = vpop.eup %986 }
 0x127   : > { %v706_v41 = vsel %vm686_vm1, %v679_v20, %v861_v38  ;;  %v862_v43 = vadd.f32 -1.0, %v987_v39 }
 0x128   : > { %v870_v42 = vpack.c.bf16 %v706_v41, %v705_v40  ;;  %v989_v44 = vpop.eup %988 }
 0x129   : > { %v863_v45 = vadd.f32 -1.0, %v989_v44  ;;  %v707_v46 = vsel %vm687_vm2, %v681_v26, %v862_v43 }
 0x12a   : > { %721 = vst [vmem:[%s177_s27] sm:$0xff] %v870_v42 }
 0x12b   : > { %v708_v47 = vsel %vm688_vm3, %v683_v31, %v863_v45 }
 0x12c   : > { %v871_v48 = vpack.c.bf16 %v708_v47, %v707_v46 }
 0x12e   : > { %722 = vst [vmem:[%s177_s27 + $0x8] sm:$0xff] %v871_v48 }
 0x12f PF: > { %s13_s12 = sadd.s32 1, %s996_s12  }
 0x130   : > { %p10_p4 = scmp.ge.s32.totalorder %s13_s12, 4  }
 0x132   :  { %12 = sbr.rel (!%p10_p4) target bundleno = 1 (0x1), region = 62 }

// kernel: lidcamnet_forward.36
= control target key start
LH: loop header
LB: loop body
LE: loop exit
PB: predicated region body
PF: predicated region fallthrough
CT: control target
= control target key end

     0   :  { %s653_s12 = smov 0   ;;  %s725_s0 = inlined_call_operand.vmem [shape: bf16[64,256], index: 0, kind: input, shape index: {}]   ;;  %s726_s1 = inlined_call_operand.vmem [shape: bf16[256,128], index: 1, kind: input, shape index: {}]   ;;  %s727_s2 = inlined_call_operand.vmem [shape: f32[1,128], index: 2, kind: input, shape index: {}]   ;;  %s728_s3 = inlined_call_operand.vmem [shape: bf16[64,128], index: 3, kind: output, shape index: {}]  }
   0x1 LB: > { %s486_s13 = sadd.s32 4294967295, %s631_s12   ;;  %p490_p0 = scmp.ge.s32.totalorder %s631_s12, 1  ;;  %s631_s12 = sphi %s653_s12, %s13_s12  }
   0x2   : > { %p139_p1 = scmp.lt.s32.totalorder %s631_s12, 3 }
   0x4   : > { %p140_p2 = pnand %p490_p0, %p139_p1 }
   0x5   : > { %s491_s16 = sshll.u32 (!%p140_p2), %s486_s13, 2 }
   0x6   : > { %143 = sbr.rel (%p140_p2) target bundleno = 272 (0x110), region = 32  ;;  %p165_p3 = scmp.lt.s32.totalorder (!%p140_p2), %s491_s16, 7 }
   0xb   : > { %v595_v0 = vld [vmem:[%s726_s1 + $0x78] sm:$0xff]   ;;  %v597_v2 = vld [vmem:[%s726_s1 + $0x70] sm:$0xff]   ;;  %v599_v4 = vld [vmem:[%s726_s1 + $0x68] sm:$0xff]   ;;  %s730_s16 = smov (!%p165_p3, %s491_s16), 7 }
   0xc   : > { %v596_v1 = vld [vmem:[%s726_s1 + $0x38] sm:$0xff]   ;;  %543 = vmatprep.subr.bf16.mxu0 %v595_v0  ;;  %571 = vmatprep.subr.bf16.mxu1 %v595_v0  ;;  %v598_v3 = vld [vmem:[%s726_s1 + $0x30] sm:$0xff]   ;;  %v600_v5 = vld [vmem:[%s726_s1 + $0x28] sm:$0xff]   ;;  %s527_s4 = sshll.u32 %s730_s16, 3  ;;  %s495_s28 = sshll.u32 %s730_s16, 2 }
   0xd   : > { %544 = vmatpush3.bf16.msra.mxu0 %v596_v1  ;;  %579 = vmatpush3.bf16.msra.mxu1 %v596_v1  ;;  %v601_v6 = vld [vmem:[%s726_s1 + $0x60] sm:$0xff]   ;;  %v603_v8 = vld [vmem:[%s726_s1 + $0x58] sm:$0xff]   ;;  %s169_s9 = scalar_lea.vmem %s725_s0, %s527_s4  ;;  %v605_v10 = vld [vmem:[%s726_s1 + $0x50] sm:$0xff]   ;;  %s175_s4 = scalar_lea.vmem %s728_s3, %s495_s28 }
   0xe   : > { %545 = vmatprep.subr.bf16.mxu0 %v597_v2  ;;  %572 = vmatprep.subr.bf16.mxu1 %v597_v2  ;;  %v602_v7 = vld [vmem:[%s726_s1 + $0x20] sm:$0xff]   ;;  %v604_v9 = vld [vmem:[%s726_s1 + $0x18] sm:$0xff]   ;;  %v606_v13 = vld [vmem:[%s726_s1 + $0x10] sm:$0xff]  }
   0xf   : > { %v613_v11 = vld [vmem:[%s169_s9 + $0x4] ss:$8 sps:$4 sm:$0xff]   ;;  %v616_v12 = vld [vmem:[%s169_s9 + $0x14] ss:$8 sps:$4 sm:$0xff]   ;;  %v611_v18 = vld [vmem:[%s169_s9] ss:$8 sps:$4 sm:$0xff]  }
  0x10   : > { %v607_v14 = vld [vmem:[%s726_s1 + $0x48] sm:$0xff]   ;;  %369 = vmatprep.mubr.bf16.mxu0 %v613_v11  ;;  %377 = vmatprep.mubr.bf16.mxu1 %v616_v12  ;;  %v609_v16 = vld [vmem:[%s726_s1 + $0x40] sm:$0xff]   ;;  %v614_v19 = vld [vmem:[%s169_s9 + $0x10] ss:$8 sps:$4 sm:$0xff]  }
  0x11   : > { %546 = vmatpush3.bf16.msra.mxu0 %v598_v3  ;;  %580 = vmatpush3.bf16.msra.mxu1 %v598_v3  ;;  %v608_v15 = vld [vmem:[%s726_s1 + $0x8] sm:$0xff]   ;;  %v610_v17 = vld [vmem:[%s726_s1] sm:$0xff]  }
  0x12   : > { %547 = vmatprep.subr.bf16.mxu0 %v599_v4  ;;  %573 = vmatprep.subr.bf16.mxu1 %v599_v4  ;;  %v496_v22 = vld [vmem:[%s727_s2] ss:$0 sm:$0xff] }
  0x15   : > { %548 = vmatpush3.bf16.msra.mxu0 %v600_v5  ;;  %581 = vmatpush3.bf16.msra.mxu1 %v600_v5 }
  0x16   : > { %549 = vmatprep.subr.bf16.mxu0 %v601_v6  ;;  %574 = vmatprep.subr.bf16.mxu1 %v601_v6 }
  0x19   : > { %550 = vmatpush3.bf16.msra.mxu0 %v602_v7  ;;  %582 = vmatpush3.bf16.msra.mxu1 %v602_v7 }
  0x1a   : > { %551 = vmatprep.subr.bf16.mxu0 %v603_v8  ;;  %575 = vmatprep.subr.bf16.mxu1 %v603_v8 }
  0x1d   : > { %552 = vmatpush3.bf16.msra.mxu0 %v604_v9  ;;  %583 = vmatpush3.bf16.msra.mxu1 %v604_v9 }
  0x1e   : > { %553 = vmatprep.subr.bf16.mxu0 %v605_v10  ;;  %576 = vmatprep.subr.bf16.mxu1 %v605_v10 }
  0x21   : > { %554 = vmatpush3.bf16.msra.mxu0 %v606_v13  ;;  %584 = vmatpush3.bf16.msra.mxu1 %v606_v13 }
  0x22   : > { %555 = vmatprep.subr.bf16.mxu0 %v607_v14  ;;  %577 = vmatprep.subr.bf16.mxu1 %v607_v14 }
  0x25   : > { %556 = vmatpush3.bf16.msra.mxu0 %v608_v15  ;;  %585 = vmatpush3.bf16.msra.mxu1 %v608_v15 }
  0x26   : > { %557 = vmatprep.subr.bf16.mxu0 %v609_v16  ;;  %578 = vmatprep.subr.bf16.mxu1 %v609_v16 }
  0x29   : > { %558 = vmatpush3.bf16.msra.mxu0 %v610_v17  ;;  %586 = vmatpush3.bf16.msra.mxu1 %v610_v17 }
  0x2c   : > { %370 = vmatmul.mubr.bf16.vlgmr.msra.gmra.mxu0 %v611_v18  ;;  %378 = vmatmul.mubr.bf16.vlgmr.msra.gmra.mxu1 %v614_v19 }
  0xec   : > { %v559_v20 = vpop.f32.mrf.mxu0  ;;  %v565_v21 = vpop.f32.mrf.mxu1 }
  0xee   : > { %v560_v23 = vpop.f32.mrf.mxu0  ;;  %v566_v24 = vpop.f32.mrf.mxu1 }
  0xef   : > { %v561_v25 = vadd.f32 %v560_v23, %v559_v20  ;;  %v567_v26 = vadd.f32 %v566_v24, %v565_v21 }
  0xf0   : > { %v562_v27 = vpop.f32.mrf.mxu0  ;;  %v568_v28 = vpop.f32.mrf.mxu1 }
  0xf1   : > { %v372_v29 = vadd.f32 %v561_v25, %v496_v22  ;;  %v380_v30 = vadd.f32 %v567_v26, %v496_v22 }
  0xf2   : > { %v563_v31 = vpop.f32.mrf.mxu0  ;;  %v569_v32 = vpop.f32.mrf.mxu1 }
  0xf3   : > { %v390_v33 = vmin.f32 %v372_v29, 0.0  ;;  %v392_v34 = vmin.f32 %v380_v30, 0.0  ;;  %v564_v35 = vadd.f32 %v563_v31, %v562_v27  ;;  %v570_v36 = vadd.f32 %v569_v32, %v568_v28 }
  0xf4   : > { %vm386_vm0 = vcmp.gt.f32.partialorder %v372_v29, 0.0  ;;  %vm388_vm2 = vcmp.gt.f32.partialorder %v380_v30, 0.0 }
  0xf5   : > { %v394_v37 = vmul.f32 1.442695, %v390_v33  ;;  %v398_v38 = vmul.f32 1.442695, %v392_v34  ;;  %v375_v39 = vadd.f32 %v564_v35, %v496_v22  ;;  %v383_v40 = vadd.f32 %v570_v36, %v496_v22 }
  0xf7   : > { %617 = vpow2.f32 %v394_v37  ;;  %v391_v41 = vmin.f32 %v375_v39, 0.0  ;;  %v393_v42 = vmin.f32 %v383_v40, 0.0  ;;  %vm387_vm1 = vcmp.gt.f32.partialorder %v375_v39, 0.0 }
  0xf8   : > { %619 = vpow2.f32 %v398_v38  ;;  %vm389_vm3 = vcmp.gt.f32.partialorder %v383_v40, 0.0 }
  0xf9   : > { %v396_v43 = vmul.f32 1.442695, %v391_v41  ;;  %v400_v44 = vmul.f32 1.442695, %v393_v42 }
  0xfb   : > { %621 = vpow2.f32 %v396_v43 }
  0xfc   : > { %623 = vpow2.f32 %v400_v44 }
 0x104   : > { %v618_v45 = vpop.eup %617 }
 0x105   : > { %v620_v46 = vpop.eup %619  ;;  %v517_v47 = vadd.f32 -1.0, %v618_v45 }
 0x106   : > { %v519_v49 = vadd.f32 -1.0, %v620_v46 }
 0x107   : > { %v406_v53 = vsel %vm386_vm0, %v372_v29, %v517_v47 }
 0x108   : > { %v622_v48 = vpop.eup %621  ;;  %v408_v55 = vsel %vm388_vm2, %v380_v30, %v519_v49 }
 0x109   : > { %v624_v50 = vpop.eup %623  ;;  %v518_v51 = vadd.f32 -1.0, %v622_v48 }
 0x10a   : > { %v520_v52 = vadd.f32 -1.0, %v624_v50 }
 0x10b   : > { %v407_v54 = vsel %vm387_vm1, %v375_v39, %v518_v51 }
 0x10c   : > { %v535_v56 = vpack.c.bf16 %v407_v54, %v406_v53  ;;  %v409_v57 = vsel %vm389_vm3, %v383_v40, %v520_v52 }
 0x10d   : > { %v540_v58 = vpack.c.bf16 %v409_v57, %v408_v55 }
 0x10e   : > { %536 = vst [vmem:[%s175_s4] sm:$0xff] %v535_v56  }
 0x10f   : > { %542 = vst [vmem:[%s175_s4 + $0x8] sm:$0xff] %v540_v58  }
 0x110 PF: > { %s13_s12 = sadd.s32 1, %s631_s12  }
 0x111   : > { %p10_p4 = scmp.ge.s32.totalorder %s13_s12, 4  }
 0x113   :  { %12 = sbr.rel (!%p10_p4) target bundleno = 1 (0x1), region = 62 }

// kernel: lidcamnet_forward.38
= control target key start
LH: loop header
LB: loop body
LE: loop exit
PB: predicated region body
PF: predicated region fallthrough
CT: control target
= control target key end

     0   :  { %s756_s12 = smov 0   ;;  %s901_s0 = inlined_call_operand.vmem [shape: bf16[192,128], index: 0, kind: input, shape index: {}]   ;;  %s902_s1 = inlined_call_operand.vmem [shape: bf16[128,32], index: 1, kind: input, shape index: {}]   ;;  %s903_s2 = inlined_call_operand.vmem [shape: f32[1,32], index: 2, kind: input, shape index: {}]   ;;  %s904_s3 = inlined_call_operand.vmem [shape: bf16[192,32], index: 3, kind: output, shape index: {}]  }
   0x1 LB: > { %s564_s13 = sadd.s32 4294967295, %s734_s12   ;;  %p568_p0 = scmp.ge.s32.totalorder %s734_s12, 1  ;;  %s734_s12 = sphi %s756_s12, %s13_s12  }
   0x2   : > { %p138_p1 = scmp.lt.s32.totalorder %s734_s12, 3 }
   0x4   : > { %p139_p2 = pnand %p568_p0, %p138_p1 }
   0x5   : > { %s162_s16 = smul.u32 (!%p139_p2), 12, %s564_s13 }
   0x6   : > { %142 = sbr.rel (%p139_p2) target bundleno = 277 (0x115), region = 32 }
   0x7   : > { %p163_p3 = scmp.lt.s32.totalorder (!%p139_p2), %s162_s16, 23 }
   0xb   : > { %v690_v0 = vld [vmem:[%s902_s1 + $0x38] sm:$0xff]   ;;  %v691_v1 = vld [vmem:[%s902_s1 + $0x30] sm:$0xff]   ;;  %v692_v2 = vld [vmem:[%s902_s1 + $0x28] sm:$0xff]   ;;  %s906_s16 = smov (!%p163_p3, %s162_s16), 23  ;;  %vm495_vm1 = vcmask 257024  }
   0xc   : > { %638 = vmatprep.subr.bf16.mxu0 %v690_v0  ;;  %666 = vmatprep.subr.bf16.mxu1 %v690_v0  ;;  %s569_s21 = sshll.u32 %s906_s16, 2  ;;  %v693_v3 = vld [vmem:[%s902_s1 + $0x20] sm:$0xff]   ;;  %v694_v6 = vld [vmem:[%s902_s1 + $0x18] sm:$0xff]   ;;  %v695_v7 = vld [vmem:[%s902_s1 + $0x10] sm:$0xff]  }
   0xd   : > { %639 = vmatpush3.bf16.msra.mxu0 %v690_v0  ;;  %674 = vmatpush3.bf16.msra.mxu1 %v690_v0  ;;  %s784_s26 = scalar_lea.vmem %s901_s0, %s569_s21  ;;  %v696_v8 = vld [vmem:[%s902_s1 + $0x8] sm:$0xff]   ;;  %v697_v9 = vld [vmem:[%s902_s1] sm:$0xff]   ;;  %s849_s13 = scalar_lea.vmem %s904_s3, %s569_s21 }
   0xe   : > { %640 = vmatprep.subr.bf16.mxu0 %v691_v1  ;;  %667 = vmatprep.subr.bf16.mxu1 %v691_v1  ;;  %v698_v4 = vld [vmem:[%s784_s26] sm:$0xff]   ;;  %v699_v5 = vld [vmem:[%s784_s26 + $0x10] sm:$0xff]   ;;  %v700_v10 = vld [vmem:[%s784_s26 + $0x8] sm:$0xff]  }
   0xf   : > { %654 = vmatprep.mubr.bf16.mxu0 %v698_v4  ;;  %658 = vmatprep.mubr.bf16.mxu1 %v699_v5  ;;  %v701_v11 = vld [vmem:[%s784_s26 + $0x18] sm:$0xff]   ;;  %v702_v12 = vld [vmem:[%s784_s26 + $0x20] sm:$0xff]   ;;  %v703_v13 = vld [vmem:[%s784_s26 + $0x28] sm:$0xff]  }
  0x10   : > { %v571_v14 = vld [vmem:[%s903_s2] ss:$0 sm:$0xff] }
  0x11   : > { %641 = vmatpush3.bf16.msra.mxu0 %v691_v1  ;;  %675 = vmatpush3.bf16.msra.mxu1 %v691_v1 }
  0x12   : > { %642 = vmatprep.subr.bf16.mxu0 %v692_v2  ;;  %668 = vmatprep.subr.bf16.mxu1 %v692_v2 }
  0x15   : > { %643 = vmatpush3.bf16.msra.mxu0 %v692_v2  ;;  %676 = vmatpush3.bf16.msra.mxu1 %v692_v2 }
  0x16   : > { %644 = vmatprep.subr.bf16.mxu0 %v693_v3  ;;  %669 = vmatprep.subr.bf16.mxu1 %v693_v3 }
  0x19   : > { %645 = vmatpush3.bf16.msra.mxu0 %v693_v3  ;;  %677 = vmatpush3.bf16.msra.mxu1 %v693_v3 }
  0x1a   : > { %646 = vmatprep.subr.bf16.mxu0 %v694_v6  ;;  %670 = vmatprep.subr.bf16.mxu1 %v694_v6 }
  0x1d   : > { %647 = vmatpush3.bf16.msra.mxu0 %v694_v6  ;;  %678 = vmatpush3.bf16.msra.mxu1 %v694_v6 }
  0x1e   : > { %648 = vmatprep.subr.bf16.mxu0 %v695_v7  ;;  %671 = vmatprep.subr.bf16.mxu1 %v695_v7 }
  0x21   : > { %649 = vmatpush3.bf16.msra.mxu0 %v695_v7  ;;  %679 = vmatpush3.bf16.msra.mxu1 %v695_v7 }
  0x22   : > { %650 = vmatprep.subr.bf16.mxu0 %v696_v8  ;;  %672 = vmatprep.subr.bf16.mxu1 %v696_v8 }
  0x25   : > { %651 = vmatpush3.bf16.msra.mxu0 %v696_v8  ;;  %680 = vmatpush3.bf16.msra.mxu1 %v696_v8 }
  0x26   : > { %652 = vmatprep.subr.bf16.mxu0 %v697_v9  ;;  %673 = vmatprep.subr.bf16.mxu1 %v697_v9 }
  0x29   : > { %653 = vmatpush3.bf16.msra.mxu0 %v697_v9  ;;  %681 = vmatpush3.bf16.msra.mxu1 %v697_v9 }
  0x2c   : > { %655 = vmatmul.mubr.bf16.vlgmr.msra.gmra.mxu0 %v700_v10  ;;  %659 = vmatmul.mubr.bf16.vlgmr.msra.gmra.mxu1 %v701_v11 }
  0x2d   : > { %662 = vmatprep.mubr.bf16.mxu1 %v702_v12 }
  0x34   : > { %663 = vmatmul.mubr.bf16.gmra.mxu1 %v703_v13 }
  0xec   : > { %v656_v15 = vpop.f32.mrf.mxu0  ;;  %v660_v16 = vpop.f32.mrf.mxu1 }
  0xed   : > { %v807_v17 = vadd.f32 %v656_v15, %v571_v14  ;;  %v809_v18 = vadd.f32 %v660_v16, %v571_v14 }
  0xee   : > { %v328_v19 = vpop.f32.mrf.mxu0  ;;  %v344_v20 = vpop.f32.mrf.mxu1 }
  0xef   : > { %v389_v21 = vmin.f32 %v807_v17, 0.0  ;;  %v393_v22 = vmin.f32 %v809_v18, 0.0  ;;  %v813_v23 = vadd.f32 %v571_v14, %v328_v19  ;;  %v815_v24 = vadd.f32 %v571_v14, %v344_v20 }
  0xf0   : > { %v657_v25 = vpop.f32.mrf.mxu0  ;;  %v661_v26 = vpop.f32.mrf.mxu1  ;;  %vm377_vm0 = vcmp.gt.f32.partialorder %v807_v17, 0.0  ;;  %vm381_vm2 = vcmp.gt.f32.partialorder %v809_v18, 0.0 }
  0xf1   : > { %v403_v27 = vmul.f32 1.442695, %v389_v21  ;;  %v411_v28 = vmul.f32 1.442695, %v393_v22  ;;  %v817_v29 = vadd.f32 %v657_v25, %v571_v14  ;;  %v819_v30 = vadd.f32 %v661_v26, %v571_v14 }
  0xf2   : > { %v387_v31 = vmin.f32 %v813_v23, 0.0  ;;  %v391_v32 = vmin.f32 %v815_v24, 0.0  ;;  %v331_v33 = vpop.f32.mrf.mxu0  ;;  %v347_v34 = vpop.f32.mrf.mxu1  ;;  %vm375_vm3 = vcmp.gt.f32.partialorder %v813_v23, 0.0  ;;  %vm379_vm4 = vcmp.gt.f32.partialorder %v815_v24, 0.0 }
  0xf3   : > { %704 = vpow2.f32 %v403_v27  ;;  %v390_v35 = vmin.f32 %v817_v29, 0.0  ;;  %v394_v38 = vmin.f32 %v819_v30, 0.0  ;;  %v825_v41 = vadd.f32 %v571_v14, %v331_v33 }
  0xf4   : > { %706 = vpow2.f32 %v411_v28  ;;  %v399_v36 = vmul.f32 1.442695, %v387_v31  ;;  %v407_v37 = vmul.f32 1.442695, %v391_v32  ;;  %v664_v39 = vpop.f32.mrf.mxu1  ;;  %v827_v42 = vadd.f32 %v571_v14, %v347_v34 }
  0xf5   : > { %v405_v40 = vmul.f32 1.442695, %v390_v35  ;;  %v829_v43 = vadd.f32 %v664_v39, %v571_v14  ;;  %v413_v44 = vmul.f32 1.442695, %v394_v38  ;;  %v388_v46 = vmin.f32 %v825_v41, 0.0 }
  0xf6   : > { %708 = vpow2.f32 %v399_v36  ;;  %v360_v45 = vpop.f32.mrf.mxu1  ;;  %v392_v47 = vmin.f32 %v827_v42, 0.0  ;;  %vm378_vm5 = vcmp.gt.f32.partialorder %v817_v29, 0.0  ;;  %vm382_vm6 = vcmp.gt.f32.partialorder %v819_v30, 0.0 }
  0xf7   : > { %710 = vpow2.f32 %v407_v37  ;;  %v397_v48 = vmin.f32 %v829_v43, 0.0  ;;  %v401_v50 = vmul.f32 1.442695, %v388_v46  ;;  %v834_v51 = vadd.f32 %v571_v14, %v360_v45 }
  0xf8   : > { %712 = vpow2.f32 %v405_v40  ;;  %v665_v49 = vpop.f32.mrf.mxu1  ;;  %v409_v53 = vmul.f32 1.442695, %v392_v47  ;;  %vm376_vm7 = vcmp.gt.f32.partialorder %v825_v41, 0.0  ;;  %vm380_vm8 = vcmp.gt.f32.partialorder %v827_v42, 0.0 }
  0xf9   : > { %714 = vpow2.f32 %v413_v44  ;;  %v836_v52 = vadd.f32 %v665_v49, %v571_v14  ;;  %v419_v54 = vmul.f32 1.442695, %v397_v48  ;;  %v395_v56 = vmin.f32 %v834_v51, 0.0 }
  0xfa   : > { %v363_v55 = vpop.f32.mrf.mxu1  ;;  %716 = vpow2.f32 %v401_v50  ;;  %vm385_vm9 = vcmp.gt.f32.partialorder %v829_v43, 0.0  ;;  %vm383_vm10 = vcmp.gt.f32.partialorder %v834_v51, 0.0 }
  0xfb   : > { %718 = vpow2.f32 %v409_v53  ;;  %v398_v57 = vmin.f32 %v836_v52, 0.0  ;;  %v840_v58 = vadd.f32 %v571_v14, %v363_v55  ;;  %v415_v59 = vmul.f32 1.442695, %v395_v56 }
  0xfc   : > { %720 = vpow2.f32 %v419_v54  ;;  %vm386_vm11 = vcmp.gt.f32.partialorder %v836_v52, 0.0 }
  0xfd   : > { %v421_v60 = vmul.f32 1.442695, %v398_v57  ;;  %v396_v61 = vmin.f32 %v840_v58, 0.0  ;;  %722 = vpow2.f32 %v415_v59  ;;  %vm384_vm12 = vcmp.gt.f32.partialorder %v840_v58, 0.0 }
  0xff   : > { %724 = vpow2.f32 %v421_v60  ;;  %v417_v63 = vmul.f32 1.442695, %v396_v61 }
 0x100   : > { %v705_v62 = vpop.eup %704 }
 0x101   : > { %v707_v0 = vpop.eup %706  ;;  %v588_v1 = vadd.f32 -1.0, %v705_v62  ;;  %726 = vpow2.f32 %v417_v63 }
 0x102   : > { %v592_v2 = vadd.f32 -1.0, %v707_v0 }
 0x103   : > { %v709_v3 = vpop.eup %708  ;;  %v437_v4 = vsel %vm377_vm0, %v807_v17, %v588_v1 }
 0x104   : > { %v711_v5 = vpop.eup %710  ;;  %v614_v6 = vpack.c.bf16 %v437_v4, %v437_v4  ;;  %v441_v7 = vsel %vm381_vm2, %v809_v18, %v592_v2  ;;  %v586_v8 = vadd.f32 -1.0, %v709_v3 }
 0x105   : > { %v713_v9 = vpop.eup %712  ;;  %v618_v10 = vpack.c.bf16 %v441_v7, %v441_v7  ;;  %v590_v11 = vadd.f32 -1.0, %v711_v5 }
 0x106   : > { %v715_v12 = vpop.eup %714  ;;  %498 = vst.msk [vmem:[%s849_s13 + $0x8] sm:$0xf] %vm495_vm1, %v614_v6  ;;  %v435_v13 = vsel %vm375_vm3, %v813_v23, %v586_v8  ;;  %v589_v14 = vadd.f32 -1.0, %v713_v9 }
 0x107   : > { %502 = vst.msk [vmem:[%s849_s13 + $0x18] sm:$0xf] %vm495_vm1, %v618_v10  ;;  %v612_v15 = vpack.c.bf16 %v435_v13, %v435_v13  ;;  %v439_v16 = vsel %vm379_vm4, %v815_v24, %v590_v11  ;;  %v593_v17 = vadd.f32 -1.0, %v715_v12  ;;  %v717_v18 = vpop.eup %716 }
 0x108   : > { %v616_v19 = vpack.c.bf16 %v439_v16, %v439_v16  ;;  %v438_v20 = vsel %vm378_vm5, %v817_v29, %v589_v14  ;;  %v719_v21 = vpop.eup %718  ;;  %v587_v25 = vadd.f32 -1.0, %v717_v18 }
 0x109   : > { %496 = vst.msk [vmem:[%s849_s13] sm:$0xf] %vm495_vm1, %v612_v15  ;;  %v615_v22 = vpack.c.bf16 %v438_v20, %v438_v20  ;;  %v442_v23 = vsel %vm382_vm6, %v819_v30, %v593_v17  ;;  %v721_v26 = vpop.eup %720  ;;  %v591_v27 = vadd.f32 -1.0, %v719_v21 }
 0x10a   : > { %500 = vst.msk [vmem:[%s849_s13 + $0x10] sm:$0xf] %vm495_vm1, %v616_v19  ;;  %v619_v24 = vpack.c.bf16 %v442_v23, %v442_v23  ;;  %v436_v28 = vsel %vm376_vm7, %v825_v41, %v587_v25  ;;  %v596_v29 = vadd.f32 -1.0, %v721_v26  ;;  %v723_v31 = vpop.eup %722 }
 0x10b   : > { %499 = vst.msk [vmem:[%s849_s13 + $0xc] sm:$0xf] %vm495_vm1, %v615_v22  ;;  %v613_v30 = vpack.c.bf16 %v436_v28, %v436_v28  ;;  %v440_v32 = vsel %vm380_vm8, %v827_v42, %v591_v27  ;;  %v594_v36 = vadd.f32 -1.0, %v723_v31 }
 0x10c   : > { %503 = vst.msk [vmem:[%s849_s13 + $0x1c] sm:$0xf] %vm495_vm1, %v619_v24  ;;  %v725_v33 = vpop.eup %724  ;;  %v617_v34 = vpack.c.bf16 %v440_v32, %v440_v32  ;;  %v445_v35 = vsel %vm385_vm9, %v829_v43, %v596_v29 }
 0x10d   : > { %497 = vst.msk [vmem:[%s849_s13 + $0x4] sm:$0xf] %vm495_vm1, %v613_v30  ;;  %v622_v37 = vpack.c.bf16 %v445_v35, %v445_v35  ;;  %v597_v38 = vadd.f32 -1.0, %v725_v33  ;;  %v443_v40 = vsel %vm383_vm10, %v834_v51, %v594_v36 }
 0x10e   : > { %v727_v39 = vpop.eup %726  ;;  %501 = vst.msk [vmem:[%s849_s13 + $0x14] sm:$0xf] %vm495_vm1, %v617_v34  ;;  %v620_v41 = vpack.c.bf16 %v443_v40, %v443_v40 }
 0x10f   : > { %506 = vst.msk [vmem:[%s849_s13 + $0x28] sm:$0xf] %vm495_vm1, %v622_v37  ;;  %v446_v42 = vsel %vm386_vm11, %v836_v52, %v597_v38  ;;  %v595_v43 = vadd.f32 -1.0, %v727_v39 }
 0x110   : > { %v623_v44 = vpack.c.bf16 %v446_v42, %v446_v42  ;;  %504 = vst.msk [vmem:[%s849_s13 + $0x20] sm:$0xf] %vm495_vm1, %v620_v41 }
 0x111   : > { %v444_v45 = vsel %vm384_vm12, %v840_v58, %v595_v43 }
 0x112   : > { %507 = vst.msk [vmem:[%s849_s13 + $0x2c] sm:$0xf] %vm495_vm1, %v623_v44  ;;  %v621_v46 = vpack.c.bf16 %v444_v45, %v444_v45 }
 0x114   : > { %505 = vst.msk [vmem:[%s849_s13 + $0x24] sm:$0xf] %vm495_vm1, %v621_v46 }
 0x115 PF: > { %s13_s12 = sadd.s32 1, %s734_s12  }
 0x116   : > { %p10_p4 = scmp.ge.s32.totalorder %s13_s12, 4  }
 0x118   :  { %12 = sbr.rel (!%p10_p4) target bundleno = 1 (0x1), region = 62 }

// kernel: lidcamnet_forward.39
= control target key start
LH: loop header
LB: loop body
LE: loop exit
PB: predicated region body
PF: predicated region fallthrough
CT: control target
= control target key end

     0   :  { %s813_s12 = smov 0   ;;  %s954_s0 = inlined_call_operand.vmem [shape: bf16[512,72], index: 0, kind: input, shape index: {}]   ;;  %s955_s1 = inlined_call_operand.vmem [shape: bf16[72,128], index: 1, kind: input, shape index: {}]   ;;  %s956_s2 = inlined_call_operand.vmem [shape: f32[1,128], index: 2, kind: input, shape index: {}]   ;;  %s957_s3 = inlined_call_operand.vmem [shape: f32[512,128], index: 3, kind: output, shape index: {}]  }
   0x1 LB: > { %s632_s13 = sadd.s32 4294967295, %s791_s12   ;;  %p636_p0 = scmp.ge.s32.totalorder %s791_s12, 1  ;;  %s791_s12 = sphi %s813_s12, %s13_s12  }
   0x2   : > { %p138_p1 = scmp.lt.s32.totalorder %s791_s12, 3 }
   0x4   : > { %p139_p2 = pnand %p636_p0, %p138_p1 }
   0x5   : > { %s637_s18 = sshll.u32 (!%p139_p2), %s632_s13, 5 }
   0x6   : > { %142 = sbr.rel (%p139_p2) target bundleno = 258 (0x102), region = 32  ;;  %p163_p3 = scmp.lt.s32.totalorder (!%p139_p2), %s637_s18, 63 }
   0xb   : > { %v764_v0 = vld [vmem:[%s955_s1 + $0x20] ss:$0 sps:$4 sm:$0xff]   ;;  %vm379_vm0 = vcmask 1043456   ;;  %v765_v1 = vld [vmem:[%s955_s1 + $0x18] sm:$0xff]   ;;  %v766_v3 = vld [vmem:[%s955_s1 + $0x10] sm:$0xff]   ;;  %s959_s18 = smov (!%p163_p3, %s637_s18), 63 }
   0xc   : > { %754 = vmatprep.subr.msk.bf16.mxu0 %vm379_vm0, %v764_v0  ;;  %755 = vmatprep.subr.msk.bf16.mxu1 %vm379_vm0, %v764_v0  ;;  %v381_v2 = vsel %vm379_vm0, %v764_v0, 0  ;;  %v767_v4 = vld [vmem:[%s955_s1 + $0x8] sm:$0xff]   ;;  %s638_s23 = sshll.u32 %s959_s18, 2  ;;  %vm330_vm1 = vcmask 588800   ;;  %v768_v7 = vld [vmem:[%s955_s1] sm:$0xff]   ;;  %s640_s29 = sshll.u32 %s959_s18, 3 }
   0xd   : > { %703 = vmatpush3.bf16.msra.mxu0 %v381_v2  ;;  %749 = vmatpush3.bf16.msra.mxu1 %v381_v2  ;;  %s839_s26 = scalar_lea.vmem %s954_s0, %s638_s23  ;;  %v880_v22 = vld [vmem:[%s956_s2] ss:$0 sm:$0xff]  ;;  %s885_s7 = scalar_lea.vmem %s957_s3, %s640_s29 }
   0xe   : > { %704 = vmatprep.subr.bf16.mxu0 %v765_v1  ;;  %745 = vmatprep.subr.bf16.mxu1 %v765_v1  ;;  %v769_v5 = vld [vmem:[%s839_s26] sm:$0xff]   ;;  %v771_v8 = vld [vmem:[%s839_s26 + $0x8] sm:$0xff]   ;;  %v773_v10 = vld [vmem:[%s839_s26 + $0x10] sm:$0xff]  }
   0xf   : > { %v770_v6 = vld [vmem:[%s839_s26 + $0x40] sm:$0xff]   ;;  %712 = vmatprep.mubr.msk.bf16.mxu0 %vm330_vm1, %v769_v5  ;;  %v772_v9 = vld [vmem:[%s839_s26 + $0x48] sm:$0xff]   ;;  %v774_v11 = vld [vmem:[%s839_s26 + $0x50] sm:$0xff]  }
  0x10   : > { %728 = vmatprep.mubr.msk.bf16.mxu1 %vm330_vm1, %v770_v6  ;;  %v775_v12 = vld [vmem:[%s839_s26 + $0x18] sm:$0xff]   ;;  %v777_v14 = vld [vmem:[%s839_s26 + $0x20] sm:$0xff]   ;;  %v779_v16 = vld [vmem:[%s839_s26 + $0x28] sm:$0xff]  }
  0x11   : > { %705 = vmatpush3.bf16.msra.mxu0 %v765_v1  ;;  %750 = vmatpush3.bf16.msra.mxu1 %v765_v1  ;;  %v776_v13 = vld [vmem:[%s839_s26 + $0x58] sm:$0xff]   ;;  %v778_v15 = vld [vmem:[%s839_s26 + $0x60] sm:$0xff]   ;;  %v780_v17 = vld [vmem:[%s839_s26 + $0x68] sm:$0xff]  }
  0x12   : > { %706 = vmatprep.subr.bf16.mxu0 %v766_v3  ;;  %746 = vmatprep.subr.bf16.mxu1 %v766_v3  ;;  %v781_v18 = vld [vmem:[%s839_s26 + $0x30] sm:$0xff]   ;;  %v783_v20 = vld [vmem:[%s839_s26 + $0x38] sm:$0xff]  }
  0x13   : > { %v782_v19 = vld [vmem:[%s839_s26 + $0x70] sm:$0xff]   ;;  %v784_v21 = vld [vmem:[%s839_s26 + $0x78] sm:$0xff]  }
  0x15   : > { %707 = vmatpush3.bf16.msra.mxu0 %v766_v3  ;;  %751 = vmatpush3.bf16.msra.mxu1 %v766_v3 }
  0x16   : > { %708 = vmatprep.subr.bf16.mxu0 %v767_v4  ;;  %747 = vmatprep.subr.bf16.mxu1 %v767_v4 }
  0x19   : > { %709 = vmatpush3.bf16.msra.mxu0 %v767_v4  ;;  %752 = vmatpush3.bf16.msra.mxu1 %v767_v4 }
  0x1a   : > { %710 = vmatprep.subr.bf16.mxu0 %v768_v7  ;;  %748 = vmatprep.subr.bf16.mxu1 %v768_v7 }
  0x1d   : > { %711 = vmatpush3.bf16.msra.mxu0 %v768_v7  ;;  %753 = vmatpush3.bf16.msra.mxu1 %v768_v7 }
  0x20   : > { %713 = vmatmul.mubr.msk.bf16.vlgmr.msra.gmra.mxu0 %vm330_vm1, %v771_v8  ;;  %729 = vmatmul.mubr.msk.bf16.vlgmr.msra.gmra.mxu1 %vm330_vm1, %v772_v9 }
  0x21   : > { %716 = vmatprep.mubr.msk.bf16.mxu0 %vm330_vm1, %v773_v10  ;;  %732 = vmatprep.mubr.msk.bf16.mxu1 %vm330_vm1, %v774_v11 }
  0x28   : > { %717 = vmatmul.mubr.msk.bf16.gmra.mxu0 %vm330_vm1, %v775_v12  ;;  %733 = vmatmul.mubr.msk.bf16.gmra.mxu1 %vm330_vm1, %v776_v13 }
  0x29   : > { %720 = vmatprep.mubr.msk.bf16.mxu0 %vm330_vm1, %v777_v14  ;;  %736 = vmatprep.mubr.msk.bf16.mxu1 %vm330_vm1, %v778_v15 }
  0x30   : > { %721 = vmatmul.mubr.msk.bf16.gmra.mxu0 %vm330_vm1, %v779_v16  ;;  %737 = vmatmul.mubr.msk.bf16.gmra.mxu1 %vm330_vm1, %v780_v17 }
  0x31   : > { %724 = vmatprep.mubr.msk.bf16.mxu0 %vm330_vm1, %v781_v18  ;;  %740 = vmatprep.mubr.msk.bf16.mxu1 %vm330_vm1, %v782_v19 }
  0x38   : > { %725 = vmatmul.mubr.msk.bf16.gmra.mxu0 %vm330_vm1, %v783_v20  ;;  %741 = vmatmul.mubr.msk.bf16.gmra.mxu1 %vm330_vm1, %v784_v21 }
  0xe0   : > { %v714_v23 = vpop.f32.mrf.mxu0  ;;  %v730_v24 = vpop.f32.mrf.mxu1 }
  0xe1   : > { %v426_v25 = vadd.f32 %v714_v23, %v880_v22  ;;  %v490_v26 = vadd.f32 %v730_v24, %v880_v22 }
  0xe2   : > { %v417_v27 = vpop.f32.mrf.mxu0  ;;  %v481_v28 = vpop.f32.mrf.mxu1 }
  0xe3   : > { %546 = vst [vmem:[%s885_s7 + $0x10] sm:$0xff] %v426_v25  ;;  %562 = vst [vmem:[%s885_s7 + $0x90] sm:$0xff] %v490_v26  ;;  %v418_v29 = vadd.f32 %v880_v22, %v417_v27  ;;  %v482_v30 = vadd.f32 %v880_v22, %v481_v28 }
  0xe4   : > { %v715_v31 = vpop.f32.mrf.mxu0  ;;  %v731_v32 = vpop.f32.mrf.mxu1 }
  0xe5   : > { %544 = vst [vmem:[%s885_s7] sm:$0xff] %v418_v29  ;;  %560 = vst [vmem:[%s885_s7 + $0x80] sm:$0xff] %v482_v30  ;;  %v429_v33 = vadd.f32 %v715_v31, %v880_v22  ;;  %v493_v34 = vadd.f32 %v731_v32, %v880_v22 }
  0xe6   : > { %v420_v35 = vpop.f32.mrf.mxu0  ;;  %v484_v36 = vpop.f32.mrf.mxu1 }
  0xe7   : > { %547 = vst [vmem:[%s885_s7 + $0x18] sm:$0xff] %v429_v33  ;;  %563 = vst [vmem:[%s885_s7 + $0x98] sm:$0xff] %v493_v34  ;;  %v421_v37 = vadd.f32 %v880_v22, %v420_v35  ;;  %v485_v38 = vadd.f32 %v880_v22, %v484_v36 }
  0xe8   : > { %v718_v39 = vpop.f32.mrf.mxu0  ;;  %v734_v40 = vpop.f32.mrf.mxu1 }
  0xe9   : > { %545 = vst [vmem:[%s885_s7 + $0x8] sm:$0xff] %v421_v37  ;;  %561 = vst [vmem:[%s885_s7 + $0x88] sm:$0xff] %v485_v38  ;;  %v442_v41 = vadd.f32 %v718_v39, %v880_v22  ;;  %v506_v42 = vadd.f32 %v734_v40, %v880_v22 }
  0xea   : > { %v433_v43 = vpop.f32.mrf.mxu0  ;;  %v497_v44 = vpop.f32.mrf.mxu1 }
  0xeb   : > { %550 = vst [vmem:[%s885_s7 + $0x30] sm:$0xff] %v442_v41  ;;  %566 = vst [vmem:[%s885_s7 + $0xb0] sm:$0xff] %v506_v42  ;;  %v434_v45 = vadd.f32 %v880_v22, %v433_v43  ;;  %v498_v46 = vadd.f32 %v880_v22, %v497_v44 }
  0xec   : > { %v719_v47 = vpop.f32.mrf.mxu0  ;;  %v735_v48 = vpop.f32.mrf.mxu1 }
  0xed   : > { %548 = vst [vmem:[%s885_s7 + $0x20] sm:$0xff] %v434_v45  ;;  %564 = vst [vmem:[%s885_s7 + $0xa0] sm:$0xff] %v498_v46  ;;  %v445_v49 = vadd.f32 %v719_v47, %v880_v22  ;;  %v509_v50 = vadd.f32 %v735_v48, %v880_v22 }
  0xee   : > { %v436_v51 = vpop.f32.mrf.mxu0  ;;  %v500_v52 = vpop.f32.mrf.mxu1 }
  0xef   : > { %551 = vst [vmem:[%s885_s7 + $0x38] sm:$0xff] %v445_v49  ;;  %567 = vst [vmem:[%s885_s7 + $0xb8] sm:$0xff] %v509_v50  ;;  %v437_v53 = vadd.f32 %v880_v22, %v436_v51  ;;  %v501_v54 = vadd.f32 %v880_v22, %v500_v52 }
  0xf0   : > { %v722_v55 = vpop.f32.mrf.mxu0  ;;  %v738_v56 = vpop.f32.mrf.mxu1 }
  0xf1   : > { %549 = vst [vmem:[%s885_s7 + $0x28] sm:$0xff] %v437_v53  ;;  %565 = vst [vmem:[%s885_s7 + $0xa8] sm:$0xff] %v501_v54  ;;  %v458_v57 = vadd.f32 %v722_v55, %v880_v22  ;;  %v522_v58 = vadd.f32 %v738_v56, %v880_v22 }
  0xf2   : > { %v449_v59 = vpop.f32.mrf.mxu0  ;;  %v513_v60 = vpop.f32.mrf.mxu1 }
  0xf3   : > { %554 = vst [vmem:[%s885_s7 + $0x50] sm:$0xff] %v458_v57  ;;  %570 = vst [vmem:[%s885_s7 + $0xd0] sm:$0xff] %v522_v58  ;;  %v450_v61 = vadd.f32 %v880_v22, %v449_v59  ;;  %v514_v62 = vadd.f32 %v880_v22, %v513_v60 }
  0xf4   : > { %v723_v63 = vpop.f32.mrf.mxu0  ;;  %v739_v0 = vpop.f32.mrf.mxu1 }
  0xf5   : > { %552 = vst [vmem:[%s885_s7 + $0x40] sm:$0xff] %v450_v61  ;;  %568 = vst [vmem:[%s885_s7 + $0xc0] sm:$0xff] %v514_v62  ;;  %v461_v1 = vadd.f32 %v723_v63, %v880_v22  ;;  %v525_v2 = vadd.f32 %v739_v0, %v880_v22 }
  0xf6   : > { %v452_v3 = vpop.f32.mrf.mxu0  ;;  %v516_v4 = vpop.f32.mrf.mxu1 }
  0xf7   : > { %555 = vst [vmem:[%s885_s7 + $0x58] sm:$0xff] %v461_v1  ;;  %571 = vst [vmem:[%s885_s7 + $0xd8] sm:$0xff] %v525_v2  ;;  %v453_v5 = vadd.f32 %v880_v22, %v452_v3  ;;  %v517_v6 = vadd.f32 %v880_v22, %v516_v4 }
  0xf8   : > { %v726_v7 = vpop.f32.mrf.mxu0  ;;  %v742_v8 = vpop.f32.mrf.mxu1 }
  0xf9   : > { %553 = vst [vmem:[%s885_s7 + $0x48] sm:$0xff] %v453_v5  ;;  %569 = vst [vmem:[%s885_s7 + $0xc8] sm:$0xff] %v517_v6  ;;  %v474_v9 = vadd.f32 %v726_v7, %v880_v22  ;;  %v538_v10 = vadd.f32 %v742_v8, %v880_v22 }
  0xfa   : > { %v465_v11 = vpop.f32.mrf.mxu0  ;;  %v529_v12 = vpop.f32.mrf.mxu1 }
  0xfb   : > { %558 = vst [vmem:[%s885_s7 + $0x70] sm:$0xff] %v474_v9  ;;  %574 = vst [vmem:[%s885_s7 + $0xf0] sm:$0xff] %v538_v10  ;;  %v466_v13 = vadd.f32 %v880_v22, %v465_v11  ;;  %v530_v14 = vadd.f32 %v880_v22, %v529_v12 }
  0xfc   : > { %v727_v15 = vpop.f32.mrf.mxu0  ;;  %v743_v16 = vpop.f32.mrf.mxu1 }
  0xfd   : > { %556 = vst [vmem:[%s885_s7 + $0x60] sm:$0xff] %v466_v13  ;;  %572 = vst [vmem:[%s885_s7 + $0xe0] sm:$0xff] %v530_v14  ;;  %v477_v17 = vadd.f32 %v727_v15, %v880_v22  ;;  %v541_v18 = vadd.f32 %v743_v16, %v880_v22 }
  0xfe   : > { %v468_v19 = vpop.f32.mrf.mxu0  ;;  %v532_v20 = vpop.f32.mrf.mxu1 }
  0xff   : > { %559 = vst [vmem:[%s885_s7 + $0x78] sm:$0xff] %v477_v17  ;;  %575 = vst [vmem:[%s885_s7 + $0xf8] sm:$0xff] %v541_v18  ;;  %v469_v21 = vadd.f32 %v880_v22, %v468_v19  ;;  %v533_v23 = vadd.f32 %v880_v22, %v532_v20 }
 0x101   : > { %557 = vst [vmem:[%s885_s7 + $0x68] sm:$0xff] %v469_v21  ;;  %573 = vst [vmem:[%s885_s7 + $0xe8] sm:$0xff] %v533_v23 }
 0x102 PF: > { %s13_s12 = sadd.s32 1, %s791_s12  }
 0x103   : > { %p10_p4 = scmp.ge.s32.totalorder %s13_s12, 4  }
 0x105   :  { %12 = sbr.rel (!%p10_p4) target bundleno = 1 (0x1), region = 62 }

</bundles_post_ra>
